<compile_context>
chip_gen: v6e
topology: v6e:2x2x1
jax: 0.10.0
libtpu: 0.0.40
codegen_flags: <defaults>
</compile_context>

<pallas_src>
import functools

import jax
import jax.numpy as jnp
import numpy as np
from jax.experimental import pallas as pl
from jax.experimental.pallas import tpu as pltpu


def decoder_block_kernel(xpad_ref, wc_ref, bc_ref, wt_ref, bt_ref, out_ref,
                         midpad_ref, *, H, W, Cin, Cmid, Cout):
    f32 = jnp.float32

    # ---------------- ConvRelu: 3x3 conv (padding=1) + ReLU -----------------
    # Read only the 3 distinct x-shifted slabs (sublane shifts); y-shifts are
    # free slices of the loaded values.  Fuse all 9 taps into one matmul.
    cols_x = [xpad_ref[:, dx:dx + W, :] for dx in range(3)]       # (H+2, W, Cin) bf16
    taps = [cols_x[dx][dy:dy + H] for dy in range(3) for dx in range(3)]
    patch = jnp.concatenate(taps, axis=-1).reshape(H * W, 9 * Cin)
    mid = jnp.dot(patch, wc_ref[...], preferred_element_type=f32)  # (H*W, Cmid)
    mid = jnp.maximum(mid + bc_ref[...], 0.0)
    mid_bf = mid.astype(jnp.bfloat16).reshape(H, W, Cmid)

    # Zero only the 1-wide halo; the interior is fully overwritten every step.
    zrow = jnp.zeros((1, W + 2, Cmid), jnp.bfloat16)
    zcol = jnp.zeros((H, 1, Cmid), jnp.bfloat16)
    midpad_ref[0:1, :, :] = zrow
    midpad_ref[H + 1:H + 2, :, :] = zrow
    midpad_ref[1:H + 1, 0:1, :] = zcol
    midpad_ref[1:H + 1, W + 1:W + 2, :] = zcol
    midpad_ref[1:H + 1, 1:W + 1, :] = mid_bf

    # ------- ConvTranspose2d(kernel=4, stride=2, padding=1) + ReLU ----------
    # out[2i+py, 2j+px] = sum over taps (ky, kx) with ky%2==(py+1)%2,
    #   kx%2==(px+1)%2 of mid_pad[i+(py+1-ky)//2+1, j+(px+1-kx)//2+1] @ Wt[ky,kx]
    # Per parity the 4 taps are fused into one (H*W, 4*Cmid) matmul; the two
    # px-parities are concatenated along lanes so the output block is already
    # in (i, py, j, px, c) memory order.
    cols_m = [midpad_ref[:, ox:ox + W, :] for ox in range(3)]      # (H+2, W, Cmid) bf16

    def mtap(oy, ox):
        if oy == 1 and ox == 1:
            return mid_bf                     # center tap stays in registers
        return cols_m[ox][oy:oy + H]

    for py in range(2):
        kys = [ky for ky in range(4) if ky % 2 == (py + 1) % 2]
        oys = [(py + 1 - ky) // 2 + 1 for ky in kys]
        halves = []
        for px in range(2):
            kxs = [kx for kx in range(4) if kx % 2 == (px + 1) % 2]
            oxs = [(px + 1 - kx) // 2 + 1 for kx in kxs]
            taps2 = [mtap(oy, ox) for oy in oys for ox in oxs]
            patch2 = jnp.concatenate(taps2, axis=-1).reshape(H * W, 4 * Cmid)
            halves.append(jnp.dot(patch2, wt_ref[py, px],
                                  preferred_element_type=f32))     # (H*W, Cout)
        row = jnp.concatenate(halves, axis=-1)                     # (H*W, 2*Cout)
        row = jnp.maximum(row + bt_ref[...], 0.0)
        out_ref[:, py:py + 1, :, :] = (
            row.reshape(H, 1, W, 2 * Cout).astype(out_ref.dtype))


def decoder_block_unet11(x_nchw, wc, bc, wt, bt):
    """wc: (Cmid, Cin, 3, 3)  bc: (Cmid,)  wt: (Cmid, Cout, 4, 4)  bt: (Cout,)."""
    N, Cin, H, W = x_nchw.shape
    Cmid = wc.shape[0]
    Cout = wt.shape[1]

    # NCHW -> NHWC (+1 spatial zero pad for the 3x3 conv); bf16 for the MXU.
    x = jnp.transpose(x_nchw, (0, 2, 3, 1)).astype(jnp.bfloat16)
    xpad = jnp.pad(x, ((0, 0), (1, 1), (1, 1), (0, 0)))

    # Conv weight: (Cmid, Cin, 3, 3) -> (3, 3, Cin, Cmid) -> (9*Cin, Cmid);
    # tap order (dy, dx, cin) matches the kernel's patch concatenation.
    wc_f = jnp.transpose(wc, (2, 3, 1, 0)).reshape(9 * Cin, Cmid).astype(jnp.bfloat16)
    bc_k = bc.reshape(1, Cmid).astype(jnp.float32)

    # Deconv weights, fused per output parity: for (py, px) the 4 contributing
    # taps (ky, kx) are stacked along the contraction dim in kernel order.
    wt_k = jnp.transpose(wt, (2, 3, 0, 1))                         # (4, 4, Cmid, Cout)
    par_rows = []
    for py in range(2):
        kys = [ky for ky in range(4) if ky % 2 == (py + 1) % 2]
        par_cols = []
        for px in range(2):
            kxs = [kx for kx in range(4) if kx % 2 == (px + 1) % 2]
            w = jnp.concatenate([wt_k[ky, kx] for ky in kys for kx in kxs], axis=0)
            par_cols.append(w)                                     # (4*Cmid, Cout)
        par_rows.append(jnp.stack(par_cols, axis=0))
    wt_f = jnp.stack(par_rows, axis=0).astype(jnp.bfloat16)        # (2, 2, 4*Cmid, Cout)
    bt2 = jnp.concatenate([bt, bt]).reshape(1, 2 * Cout).astype(jnp.float32)

    kernel = functools.partial(decoder_block_kernel,
                               H=H, W=W, Cin=Cin, Cmid=Cmid, Cout=Cout)

    flops = 2 * N * H * W * (9 * Cin * Cmid + 16 * Cmid * Cout)
    bytes_accessed = int(xpad.size * 2 + wc_f.size * 2 + wt_f.size * 2
                         + bc_k.size * 4 + bt2.size * 4
                         + N * 2 * H * 2 * W * Cout * 4)

    out_par = pl.pallas_call(
        kernel,
        out_shape=jax.ShapeDtypeStruct((N, H, 2, W, 2 * Cout), jnp.float32),
        grid=(N,),
        in_specs=[
            pl.BlockSpec((None, H + 2, W + 2, Cin), lambda n: (n, 0, 0, 0)),
            pl.BlockSpec((9 * Cin, Cmid), lambda n: (0, 0)),
            pl.BlockSpec((1, Cmid), lambda n: (0, 0)),
            pl.BlockSpec((2, 2, 4 * Cmid, Cout), lambda n: (0, 0, 0, 0)),
            pl.BlockSpec((1, 2 * Cout), lambda n: (0, 0)),
        ],
        out_specs=pl.BlockSpec((None, H, 2, W, 2 * Cout),
                               lambda n: (n, 0, 0, 0, 0)),
        scratch_shapes=[pltpu.VMEM((H + 2, W + 2, Cmid), jnp.bfloat16)],
        compiler_params=pltpu.CompilerParams(dimension_semantics=("parallel",)),
        cost_estimate=pl.CostEstimate(flops=flops, transcendentals=0,
                                      bytes_accessed=bytes_accessed),
    )(xpad, wc_f, bc_k, wt_f, bt2)

    # Parity interleave is a pure contiguous reshape (no transpose):
    #   out[n, 2i+py, 2j+px, c] = out_par[n, i, py, j, px*Cout + c]
    out_nhwc = out_par.reshape(N, 2 * H, 2 * W, Cout)
    return jnp.transpose(out_nhwc, (0, 3, 1, 2))                   # back to NCHW


def reference(x_nchw, wc, bc, wt, bt):
    """Pure-JAX f32 reference (matches PyTorch Conv2d / ConvTranspose2d)."""
    dn1 = jax.lax.conv_dimension_numbers(x_nchw.shape, wc.shape,
                                         ('NCHW', 'OIHW', 'NCHW'))
    mid = jax.lax.conv_general_dilated(x_nchw, wc, (1, 1), ((1, 1), (1, 1)),
                                       dimension_numbers=dn1)
    mid = jax.nn.relu(mid + bc[None, :, None, None])

    # ConvTranspose2d(k=4, s=2, p=1): dilated conv with swapped + flipped kernel
    wt_conv = jnp.flip(jnp.transpose(wt, (1, 0, 2, 3)), axis=(2, 3))
    dn2 = jax.lax.conv_dimension_numbers(mid.shape, wt_conv.shape,
                                         ('NCHW', 'OIHW', 'NCHW'))
    out = jax.lax.conv_general_dilated(mid, wt_conv, (1, 1), ((2, 2), (2, 2)),
                                       lhs_dilation=(2, 2), dimension_numbers=dn2)
    return jax.nn.relu(out + bt[None, :, None, None])


if __name__ == "__main__":
    N, Cin, Cmid, Cout, H, W = 2, 4, 8, 4, 16, 16

    key = jax.random.PRNGKey(0)
    k1, k2, k3, k4, k5 = jax.random.split(key, 5)
    wc = jax.random.normal(k1, (Cmid, Cin, 3, 3), jnp.float32) * 0.1   # Conv2d (OIHW)
    bc = jax.random.normal(k2, (Cmid,), jnp.float32) * 0.1
    wt = jax.random.normal(k3, (Cmid, Cout, 4, 4), jnp.float32) * 0.1  # ConvTranspose2d (I,O,kH,kW)
    bt = jax.random.normal(k4, (Cout,), jnp.float32) * 0.1
    x = jax.random.normal(k5, (N, Cin, H, W), jnp.float32)

    # The kernel runs its matmuls in bf16 (f32 accumulate); quantise the shared
    # operands once so the f32 reference sees the same inputs.
    q = lambda a: a.astype(jnp.bfloat16).astype(jnp.float32)
    x, wc, wt = q(x), q(wc), q(wt)

    out = jax.block_until_ready(decoder_block_unet11(x, wc, bc, wt, bt))
    ref = jax.block_until_ready(reference(x, wc, bc, wt, bt))

    assert out.shape == (N, Cout, 2 * H, 2 * W), out.shape
    np.testing.assert_allclose(np.asarray(out), np.asarray(ref), rtol=2e-2, atol=2e-2)
    print("KERNEL_OK")
</pallas_src>

<mosaic_0001>
module attributes {stable_mosaic.version = 11 : i64} {
  func.func @decoder_block_kernel(%arg0: i32, %arg1: memref<1x18x18x4xbf16, #tpu.memory_space<vmem>>, %arg2: memref<36x8xbf16, #tpu.memory_space<vmem>>, %arg3: memref<1x8xf32, #tpu.memory_space<vmem>>, %arg4: memref<2x2x32x4xbf16, #tpu.memory_space<vmem>>, %arg5: memref<1x8xf32, #tpu.memory_space<vmem>>, %arg6: memref<1x16x2x16x8xf32, #tpu.memory_space<vmem>>, %arg7: memref<18x18x8xbf16, #tpu.memory_space<vmem>>) attributes {dimension_semantics = [#tpu.dimension_semantics<parallel>], iteration_bounds = array<i64: 2>, scalar_prefetch = 0 : i64, scratch_operands = 1 : i64, tpu.core_type = #tpu.core_type<tc>, window_params = [{transform_indices = @transform_0, window_bounds = array<i64: 1, 18, 18, 4>}, {pipeline_mode = #tpu.pipeline_mode<synchronous>, transform_indices = @transform_1, window_bounds = array<i64: 36, 8>}, {pipeline_mode = #tpu.pipeline_mode<synchronous>, transform_indices = @transform_2, window_bounds = array<i64: 1, 8>}, {pipeline_mode = #tpu.pipeline_mode<synchronous>, transform_indices = @transform_3, window_bounds = array<i64: 2, 2, 32, 4>}, {pipeline_mode = #tpu.pipeline_mode<synchronous>, transform_indices = @transform_4, window_bounds = array<i64: 1, 8>}, {transform_indices = @transform_5, window_bounds = array<i64: 1, 16, 2, 16, 8>}]} {
    %c0 = arith.constant 0 : index
    %c0_0 = arith.constant 0 : index
    %c0_1 = arith.constant 0 : index
    %c0_2 = arith.constant 0 : index
    %0 = vector.load %arg1[%c0, %c0_0, %c0_1, %c0_2] : memref<1x18x18x4xbf16, #tpu.memory_space<vmem>>, vector<1x18x16x4xbf16>
    %1 = vector.shape_cast %0 : vector<1x18x16x4xbf16> to vector<18x16x4xbf16>
    %c0_3 = arith.constant 0 : index
    %c0_4 = arith.constant 0 : index
    %c1 = arith.constant 1 : index
    %c0_5 = arith.constant 0 : index
    %2 = vector.load %arg1[%c0_3, %c0_4, %c1, %c0_5] : memref<1x18x18x4xbf16, #tpu.memory_space<vmem>>, vector<1x18x16x4xbf16>
    %3 = vector.shape_cast %2 : vector<1x18x16x4xbf16> to vector<18x16x4xbf16>
    %c0_6 = arith.constant 0 : index
    %c0_7 = arith.constant 0 : index
    %c2 = arith.constant 2 : index
    %c0_8 = arith.constant 0 : index
    %4 = vector.load %arg1[%c0_6, %c0_7, %c2, %c0_8] : memref<1x18x18x4xbf16, #tpu.memory_space<vmem>>, vector<1x18x16x4xbf16>
    %5 = vector.shape_cast %4 : vector<1x18x16x4xbf16> to vector<18x16x4xbf16>
    %6 = vector.extract_strided_slice %1 {offsets = [0, 0, 0], sizes = [16, 16, 4], strides = [1, 1, 1]} : vector<18x16x4xbf16> to vector<16x16x4xbf16>
    %7 = vector.extract_strided_slice %3 {offsets = [0, 0, 0], sizes = [16, 16, 4], strides = [1, 1, 1]} : vector<18x16x4xbf16> to vector<16x16x4xbf16>
    %8 = vector.extract_strided_slice %5 {offsets = [0, 0, 0], sizes = [16, 16, 4], strides = [1, 1, 1]} : vector<18x16x4xbf16> to vector<16x16x4xbf16>
    %9 = vector.extract_strided_slice %1 {offsets = [1, 0, 0], sizes = [16, 16, 4], strides = [1, 1, 1]} : vector<18x16x4xbf16> to vector<16x16x4xbf16>
    %10 = vector.extract_strided_slice %3 {offsets = [1, 0, 0], sizes = [16, 16, 4], strides = [1, 1, 1]} : vector<18x16x4xbf16> to vector<16x16x4xbf16>
    %11 = vector.extract_strided_slice %5 {offsets = [1, 0, 0], sizes = [16, 16, 4], strides = [1, 1, 1]} : vector<18x16x4xbf16> to vector<16x16x4xbf16>
    %12 = vector.extract_strided_slice %1 {offsets = [2, 0, 0], sizes = [16, 16, 4], strides = [1, 1, 1]} : vector<18x16x4xbf16> to vector<16x16x4xbf16>
    %13 = vector.extract_strided_slice %3 {offsets = [2, 0, 0], sizes = [16, 16, 4], strides = [1, 1, 1]} : vector<18x16x4xbf16> to vector<16x16x4xbf16>
    %14 = vector.extract_strided_slice %5 {offsets = [2, 0, 0], sizes = [16, 16, 4], strides = [1, 1, 1]} : vector<18x16x4xbf16> to vector<16x16x4xbf16>
    %15 = tpu.concatenate %6, %7, %8, %9, %10, %11, %12, %13, %14 in 2 : vector<16x16x4xbf16>, vector<16x16x4xbf16>, vector<16x16x4xbf16>, vector<16x16x4xbf16>, vector<16x16x4xbf16>, vector<16x16x4xbf16>, vector<16x16x4xbf16>, vector<16x16x4xbf16>, vector<16x16x4xbf16> -> vector<16x16x36xbf16>
    %16 = vector.shape_cast %15 : vector<16x16x36xbf16> to vector<256x36xbf16>
    %c0_9 = arith.constant 0 : index
    %c0_10 = arith.constant 0 : index
    %17 = vector.load %arg2[%c0_9, %c0_10] : memref<36x8xbf16, #tpu.memory_space<vmem>>, vector<36x8xbf16>
    %cst = arith.constant dense<0.000000e+00> : vector<256x8xf32>
    %18 = tpu.matmul %16, %17, %cst {dimension_numbers = #tpu.dot_dimension_numbers<[1], [0], [0], [1], [0, 0, 1, 1], [], []>} : vector<256x36xbf16>, vector<36x8xbf16>, vector<256x8xf32> -> vector<256x8xf32>
    %c0_11 = arith.constant 0 : index
    %c0_12 = arith.constant 0 : index
    %19 = vector.load %arg3[%c0_11, %c0_12] : memref<1x8xf32, #tpu.memory_space<vmem>>, vector<1x8xf32>
    %20 = vector.broadcast %19 : vector<1x8xf32> to vector<256x8xf32>
    %21 = arith.addf %18, %20 : vector<256x8xf32>
    %cst_13 = arith.constant 0.000000e+00 : f32
    %22 = vector.broadcast %cst_13 : f32 to vector<256x8xf32>
    %23 = arith.maximumf %21, %22 : vector<256x8xf32>
    %24 = arith.truncf %23 : vector<256x8xf32> to vector<256x8xbf16>
    %25 = vector.shape_cast %24 : vector<256x8xbf16> to vector<16x16x8xbf16>
    %cst_14 = arith.constant 0.000000e+00 : bf16
    %26 = vector.broadcast %cst_14 : bf16 to vector<1x18x8xbf16>
    %cst_15 = arith.constant 0.000000e+00 : bf16
    %27 = vector.broadcast %cst_15 : bf16 to vector<16x1x8xbf16>
    %c0_16 = arith.constant 0 : index
    %c0_17 = arith.constant 0 : index
    %c0_18 = arith.constant 0 : index
    %28 = vector.load %arg7[%c0_16, %c0_17, %c0_18] : memref<18x18x8xbf16, #tpu.memory_space<vmem>>, vector<1x18x8xbf16>
    tpu.vector_store %arg7[%c0_16, %c0_17, %c0_18], %26 {strides = array<i32>} : memref<18x18x8xbf16, #tpu.memory_space<vmem>>, vector<1x18x8xbf16>,
    %c17 = arith.constant 17 : index
    %c0_19 = arith.constant 0 : index
    %c0_20 = arith.constant 0 : index
    %29 = vector.load %arg7[%c17, %c0_19, %c0_20] : memref<18x18x8xbf16, #tpu.memory_space<vmem>>, vector<1x18x8xbf16>
    tpu.vector_store %arg7[%c17, %c0_19, %c0_20], %26 {strides = array<i32>} : memref<18x18x8xbf16, #tpu.memory_space<vmem>>, vector<1x18x8xbf16>,
    %c1_21 = arith.constant 1 : index
    %c0_22 = arith.constant 0 : index
    %c0_23 = arith.constant 0 : index
    %30 = vector.load %arg7[%c1_21, %c0_22, %c0_23] : memref<18x18x8xbf16, #tpu.memory_space<vmem>>, vector<16x1x8xbf16>
    tpu.vector_store %arg7[%c1_21, %c0_22, %c0_23], %27 {strides = array<i32>} : memref<18x18x8xbf16, #tpu.memory_space<vmem>>, vector<16x1x8xbf16>,
    %c1_24 = arith.constant 1 : index
    %c17_25 = arith.constant 17 : index
    %c0_26 = arith.constant 0 : index
    %31 = vector.load %arg7[%c1_24, %c17_25, %c0_26] : memref<18x18x8xbf16, #tpu.memory_space<vmem>>, vector<16x1x8xbf16>
    tpu.vector_store %arg7[%c1_24, %c17_25, %c0_26], %27 {strides = array<i32>} : memref<18x18x8xbf16, #tpu.memory_space<vmem>>, vector<16x1x8xbf16>,
    %c1_27 = arith.constant 1 : index
    %c1_28 = arith.constant 1 : index
    %c0_29 = arith.constant 0 : index
    %32 = vector.load %arg7[%c1_27, %c1_28, %c0_29] : memref<18x18x8xbf16, #tpu.memory_space<vmem>>, vector<16x16x8xbf16>
    tpu.vector_store %arg7[%c1_27, %c1_28, %c0_29], %25 {strides = array<i32>} : memref<18x18x8xbf16, #tpu.memory_space<vmem>>, vector<16x16x8xbf16>,
    %c0_30 = arith.constant 0 : index
    %c0_31 = arith.constant 0 : index
    %c0_32 = arith.constant 0 : index
    %33 = vector.load %arg7[%c0_30, %c0_31, %c0_32] : memref<18x18x8xbf16, #tpu.memory_space<vmem>>, vector<18x16x8xbf16>
    %c0_33 = arith.constant 0 : index
    %c1_34 = arith.constant 1 : index
    %c0_35 = arith.constant 0 : index
    %34 = vector.load %arg7[%c0_33, %c1_34, %c0_35] : memref<18x18x8xbf16, #tpu.memory_space<vmem>>, vector<18x16x8xbf16>
    %c0_36 = arith.constant 0 : index
    %c2_37 = arith.constant 2 : index
    %c0_38 = arith.constant 0 : index
    %35 = vector.load %arg7[%c0_36, %c2_37, %c0_38] : memref<18x18x8xbf16, #tpu.memory_space<vmem>>, vector<18x16x8xbf16>
    %36 = vector.extract_strided_slice %33 {offsets = [1, 0, 0], sizes = [16, 16, 8], strides = [1, 1, 1]} : vector<18x16x8xbf16> to vector<16x16x8xbf16>
    %37 = vector.extract_strided_slice %34 {offsets = [0, 0, 0], sizes = [16, 16, 8], strides = [1, 1, 1]} : vector<18x16x8xbf16> to vector<16x16x8xbf16>
    %38 = vector.extract_strided_slice %33 {offsets = [0, 0, 0], sizes = [16, 16, 8], strides = [1, 1, 1]} : vector<18x16x8xbf16> to vector<16x16x8xbf16>
    %39 = tpu.concatenate %25, %36, %37, %38 in 2 : vector<16x16x8xbf16>, vector<16x16x8xbf16>, vector<16x16x8xbf16>, vector<16x16x8xbf16> -> vector<16x16x32xbf16>
    %40 = vector.shape_cast %39 : vector<16x16x32xbf16> to vector<256x32xbf16>
    %c0_39 = arith.constant 0 : index
    %c0_40 = arith.constant 0 : index
    %c0_41 = arith.constant 0 : index
    %c0_42 = arith.constant 0 : index
    %41 = vector.load %arg4[%c0_39, %c0_40, %c0_41, %c0_42] : memref<2x2x32x4xbf16, #tpu.memory_space<vmem>>, vector<1x1x32x4xbf16>
    %42 = vector.shape_cast %41 : vector<1x1x32x4xbf16> to vector<32x4xbf16>
    %cst_43 = arith.constant dense<0.000000e+00> : vector<256x4xf32>
    %43 = tpu.matmul %40, %42, %cst_43 {dimension_numbers = #tpu.dot_dimension_numbers<[1], [0], [0], [1], [0, 0, 1, 1], [], []>} : vector<256x32xbf16>, vector<32x4xbf16>, vector<256x4xf32> -> vector<256x4xf32>
    %44 = vector.extract_strided_slice %35 {offsets = [1, 0, 0], sizes = [16, 16, 8], strides = [1, 1, 1]} : vector<18x16x8xbf16> to vector<16x16x8xbf16>
    %45 = vector.extract_strided_slice %35 {offsets = [0, 0, 0], sizes = [16, 16, 8], strides = [1, 1, 1]} : vector<18x16x8xbf16> to vector<16x16x8xbf16>
    %46 = vector.extract_strided_slice %34 {offsets = [0, 0, 0], sizes = [16, 16, 8], strides = [1, 1, 1]} : vector<18x16x8xbf16> to vector<16x16x8xbf16>
    %47 = tpu.concatenate %44, %25, %45, %46 in 2 : vector<16x16x8xbf16>, vector<16x16x8xbf16>, vector<16x16x8xbf16>, vector<16x16x8xbf16> -> vector<16x16x32xbf16>
    %48 = vector.shape_cast %47 : vector<16x16x32xbf16> to vector<256x32xbf16>
    %c0_44 = arith.constant 0 : index
    %c1_45 = arith.constant 1 : index
    %c0_46 = arith.constant 0 : index
    %c0_47 = arith.constant 0 : index
    %49 = vector.load %arg4[%c0_44, %c1_45, %c0_46, %c0_47] : memref<2x2x32x4xbf16, #tpu.memory_space<vmem>>, vector<1x1x32x4xbf16>
    %50 = vector.shape_cast %49 : vector<1x1x32x4xbf16> to vector<32x4xbf16>
    %cst_48 = arith.constant dense<0.000000e+00> : vector<256x4xf32>
    %51 = tpu.matmul %48, %50, %cst_48 {dimension_numbers = #tpu.dot_dimension_numbers<[1], [0], [0], [1], [0, 0, 1, 1], [], []>} : vector<256x32xbf16>, vector<32x4xbf16>, vector<256x4xf32> -> vector<256x4xf32>
    %52 = tpu.concatenate %43, %51 in 1 : vector<256x4xf32>, vector<256x4xf32> -> vector<256x8xf32>
    %c0_49 = arith.constant 0 : index
    %c0_50 = arith.constant 0 : index
    %53 = vector.load %arg5[%c0_49, %c0_50] : memref<1x8xf32, #tpu.memory_space<vmem>>, vector<1x8xf32>
    %54 = vector.broadcast %53 : vector<1x8xf32> to vector<256x8xf32>
    %55 = arith.addf %52, %54 : vector<256x8xf32>
    %cst_51 = arith.constant 0.000000e+00 : f32
    %56 = vector.broadcast %cst_51 : f32 to vector<256x8xf32>
    %57 = arith.maximumf %55, %56 : vector<256x8xf32>
    %58 = vector.shape_cast %57 : vector<256x8xf32> to vector<16x1x16x8xf32>
    %c0_52 = arith.constant 0 : index
    %c0_53 = arith.constant 0 : index
    %c0_54 = arith.constant 0 : index
    %c0_55 = arith.constant 0 : index
    %c0_56 = arith.constant 0 : index
    %59 = vector.load %arg6[%c0_52, %c0_53, %c0_54, %c0_55, %c0_56] : memref<1x16x2x16x8xf32, #tpu.memory_space<vmem>>, vector<1x16x1x16x8xf32>
    %60 = vector.shape_cast %59 : vector<1x16x1x16x8xf32> to vector<16x1x16x8xf32>
    %61 = vector.shape_cast %58 : vector<16x1x16x8xf32> to vector<1x16x1x16x8xf32>
    tpu.vector_store %arg6[%c0_52, %c0_53, %c0_54, %c0_55, %c0_56], %61 {strides = array<i32>} : memref<1x16x2x16x8xf32, #tpu.memory_space<vmem>>, vector<1x16x1x16x8xf32>,
    %62 = vector.extract_strided_slice %34 {offsets = [2, 0, 0], sizes = [16, 16, 8], strides = [1, 1, 1]} : vector<18x16x8xbf16> to vector<16x16x8xbf16>
    %63 = vector.extract_strided_slice %33 {offsets = [2, 0, 0], sizes = [16, 16, 8], strides = [1, 1, 1]} : vector<18x16x8xbf16> to vector<16x16x8xbf16>
    %64 = vector.extract_strided_slice %33 {offsets = [1, 0, 0], sizes = [16, 16, 8], strides = [1, 1, 1]} : vector<18x16x8xbf16> to vector<16x16x8xbf16>
    %65 = tpu.concatenate %62, %63, %25, %64 in 2 : vector<16x16x8xbf16>, vector<16x16x8xbf16>, vector<16x16x8xbf16>, vector<16x16x8xbf16> -> vector<16x16x32xbf16>
    %66 = vector.shape_cast %65 : vector<16x16x32xbf16> to vector<256x32xbf16>
    %c1_57 = arith.constant 1 : index
    %c0_58 = arith.constant 0 : index
    %c0_59 = arith.constant 0 : index
    %c0_60 = arith.constant 0 : index
    %67 = vector.load %arg4[%c1_57, %c0_58, %c0_59, %c0_60] : memref<2x2x32x4xbf16, #tpu.memory_space<vmem>>, vector<1x1x32x4xbf16>
    %68 = vector.shape_cast %67 : vector<1x1x32x4xbf16> to vector<32x4xbf16>
    %cst_61 = arith.constant dense<0.000000e+00> : vector<256x4xf32>
    %69 = tpu.matmul %66, %68, %cst_61 {dimension_numbers = #tpu.dot_dimension_numbers<[1], [0], [0], [1], [0, 0, 1, 1], [], []>} : vector<256x32xbf16>, vector<32x4xbf16>, vector<256x4xf32> -> vector<256x4xf32>
    %70 = vector.extract_strided_slice %35 {offsets = [2, 0, 0], sizes = [16, 16, 8], strides = [1, 1, 1]} : vector<18x16x8xbf16> to vector<16x16x8xbf16>
    %71 = vector.extract_strided_slice %34 {offsets = [2, 0, 0], sizes = [16, 16, 8], strides = [1, 1, 1]} : vector<18x16x8xbf16> to vector<16x16x8xbf16>
    %72 = vector.extract_strided_slice %35 {offsets = [1, 0, 0], sizes = [16, 16, 8], strides = [1, 1, 1]} : vector<18x16x8xbf16> to vector<16x16x8xbf16>
    %73 = tpu.concatenate %70, %71, %72, %25 in 2 : vector<16x16x8xbf16>, vector<16x16x8xbf16>, vector<16x16x8xbf16>, vector<16x16x8xbf16> -> vector<16x16x32xbf16>
    %74 = vector.shape_cast %73 : vector<16x16x32xbf16> to vector<256x32xbf16>
    %c1_62 = arith.constant 1 : index
    %c1_63 = arith.constant 1 : index
    %c0_64 = arith.constant 0 : index
    %c0_65 = arith.constant 0 : index
    %75 = vector.load %arg4[%c1_62, %c1_63, %c0_64, %c0_65] : memref<2x2x32x4xbf16, #tpu.memory_space<vmem>>, vector<1x1x32x4xbf16>
    %76 = vector.shape_cast %75 : vector<1x1x32x4xbf16> to vector<32x4xbf16>
    %cst_66 = arith.constant dense<0.000000e+00> : vector<256x4xf32>
    %77 = tpu.matmul %74, %76, %cst_66 {dimension_numbers = #tpu.dot_dimension_numbers<[1], [0], [0], [1], [0, 0, 1, 1], [], []>} : vector<256x32xbf16>, vector<32x4xbf16>, vector<256x4xf32> -> vector<256x4xf32>
    %78 = tpu.concatenate %69, %77 in 1 : vector<256x4xf32>, vector<256x4xf32> -> vector<256x8xf32>
    %c0_67 = arith.constant 0 : index
    %c0_68 = arith.constant 0 : index
    %79 = vector.load %arg5[%c0_67, %c0_68] : memref<1x8xf32, #tpu.memory_space<vmem>>, vector<1x8xf32>
    %80 = vector.broadcast %79 : vector<1x8xf32> to vector<256x8xf32>
    %81 = arith.addf %78, %80 : vector<256x8xf32>
    %cst_69 = arith.constant 0.000000e+00 : f32
    %82 = vector.broadcast %cst_69 : f32 to vector<256x8xf32>
    %83 = arith.maximumf %81, %82 : vector<256x8xf32>
    %84 = vector.shape_cast %83 : vector<256x8xf32> to vector<16x1x16x8xf32>
    %c0_70 = arith.constant 0 : index
    %c0_71 = arith.constant 0 : index
    %c1_72 = arith.constant 1 : index
    %c0_73 = arith.constant 0 : index
    %c0_74 = arith.constant 0 : index
    %85 = vector.load %arg6[%c0_70, %c0_71, %c1_72, %c0_73, %c0_74] : memref<1x16x2x16x8xf32, #tpu.memory_space<vmem>>, vector<1x16x1x16x8xf32>
    %86 = vector.shape_cast %85 : vector<1x16x1x16x8xf32> to vector<16x1x16x8xf32>
    %87 = vector.shape_cast %84 : vector<16x1x16x8xf32> to vector<1x16x1x16x8xf32>
    tpu.vector_store %arg6[%c0_70, %c0_71, %c1_72, %c0_73, %c0_74], %87 {strides = array<i32>} : memref<1x16x2x16x8xf32, #tpu.memory_space<vmem>>, vector<1x16x1x16x8xf32>,
    return
  }
  func.func @transform_0(%arg0: i32) -> (i32, i32, i32, i32) {
    %c0_i32 = arith.constant 0 : i32
    %c0_i32_0 = arith.constant 0 : i32
    %c0_i32_1 = arith.constant 0 : i32
    %c0_i32_2 = arith.constant 0 : i32
    return %arg0, %c0_i32, %c0_i32_0, %c0_i32_1 : i32, i32, i32, i32
  }
  func.func @transform_1(%arg0: i32) -> (i32, i32) {
    %c0_i32 = arith.constant 0 : i32
    %c0_i32_0 = arith.constant 0 : i32
    %c0_i32_1 = arith.constant 0 : i32
    return %c0_i32, %c0_i32_0 : i32, i32
  }
  func.func @transform_2(%arg0: i32) -> (i32, i32) {
    %c0_i32 = arith.constant 0 : i32
    %c0_i32_0 = arith.constant 0 : i32
    %c0_i32_1 = arith.constant 0 : i32
    return %c0_i32, %c0_i32_0 : i32, i32
  }
  func.func @transform_3(%arg0: i32) -> (i32, i32, i32, i32) {
    %c0_i32 = arith.constant 0 : i32
    %c0_i32_0 = arith.constant 0 : i32
    %c0_i32_1 = arith.constant 0 : i32
    %c0_i32_2 = arith.constant 0 : i32
    %c0_i32_3 = arith.constant 0 : i32
    return %c0_i32, %c0_i32_0, %c0_i32_1, %c0_i32_2 : i32, i32, i32, i32
  }
  func.func @transform_4(%arg0: i32) -> (i32, i32) {
    %c0_i32 = arith.constant 0 : i32
    %c0_i32_0 = arith.constant 0 : i32
    %c0_i32_1 = arith.constant 0 : i32
    return %c0_i32, %c0_i32_0 : i32, i32
  }
  func.func @transform_5(%arg0: i32) -> (i32, i32, i32, i32, i32) {
    %c0_i32 = arith.constant 0 : i32
    %c0_i32_0 = arith.constant 0 : i32
    %c0_i32_1 = arith.constant 0 : i32
    %c0_i32_2 = arith.constant 0 : i32
    %c0_i32_3 = arith.constant 0 : i32
    return %arg0, %c0_i32, %c0_i32_0, %c0_i32_1, %c0_i32_2 : i32, i32, i32, i32, i32
  }
}

</mosaic_0001>

<bundles_post_ra>
// kernel: tpu_custom_call.1
= control target key start
LH: loop header
LB: loop body
LE: loop exit
PB: predicated region body
PF: predicated region fallthrough
CT: control target
= control target key end

     0   :  { %s6526_s18 = smov 0   ;;  %s10129_s0 = inlined_call_operand.vmem [shape: bf16[2,18,18,4], index: 0, kind: input, shape index: {}]   ;;  %s10130_s1 = inlined_call_operand.vmem [shape: bf16[36,8], index: 1, kind: input, shape index: {}]   ;;  %s10131_s2 = inlined_call_operand.vmem [shape: f32[1,8], index: 2, kind: input, shape index: {}]   ;;  %s10132_s3 = inlined_call_operand.vmem [shape: bf16[2,2,32,4], index: 3, kind: input, shape index: {}]   ;;  %s10133_s4 = inlined_call_operand.vmem [shape: f32[1,8], index: 4, kind: input, shape index: {}]   ;;  %s10134_s5 = inlined_call_operand.vmem [shape: f32[2,16,2,16,8], index: 5, kind: output, shape index: {}]  }
   0x1 LB: > { %s5719_s19 = sadd.s32 4294967295, %s6485_s18   ;;  %p5723_p0 = scmp.ge.s32.totalorder %s6485_s18, 1  ;;  %s6485_s18 = sphi %s6526_s18, %s15_s18  }
   0x2   : > { %p187_p1 = scmp.lt.s32.totalorder %s6485_s18, 3 }
   0x4   : > { %p188_p2 = pnand %p5723_p0, %p187_p1 }
   0x6   : > { %191 = sbr.rel (%p188_p2) target bundleno = 1295 (0x50f), region = 40 }
   0xb   : > { %p215_p3 = scmp.lt.s32.totalorder %s5719_s19, 1  ;;  %vm426_vm0 = vsmask.f32 7424  ;;  %s6487_s24 = smov 4   ;;  %vm10164_vm1 = vcmask 1046528   ;;  %vm1348_vm2 = vcmask 1041408  }
   0xc   : > { %s6488_s25 = smov 8   ;;  %s6489_s26 = smov 12   ;;  %vm1024_vm3 = vcmask 31744   ;;  %vm1057_vm4 = vcmask 64512   ;;  %vm1090_vm5 = vcmask 97280   ;;  %vm1123_vm6 = vcmask 130048  }
   0xd   : > { %s10787_s19 = smov (!%p215_p3, %s5719_s19), 1  ;;  %s6490_s6 = smov 16   ;;  %vm1156_vm7 = vcmask 162816   ;;  %vm1189_vm8 = vcmask 195584   ;;  %vm1222_vm9 = vcmask 228352   ;;  %vm1255_vm10 = vcmask 261120  }
   0xe   : > { %s6318_s20 = smul.u32 216, %s10787_s19  ;;  %s6491_s9 = smov 20   ;;  %vm1315_vm11 = vcmask 293888   ;;  %vm1561_vm12 = vcmask 60416   ;;  %vm1564_vm13 = vcmask 57344  }
   0xf   : > { %s6492_s10 = smov 24   ;;  %s6493_s11 = smov 28   ;;  %vm1572_vm14 = vsmask.f32 256 }
  0x10   : > { %s6540_s23 = scalar_lea.vmem %s10129_s0, %s6318_s20  ;;  %s6494_s12 = smov 32   ;;  %vm7345_vm15 = vmand %vm1564_vm13, %vm1572_vm14 }
  0x11   : > { %v230_v0 = vld [vmem:[%s6540_s23 + $0x18] sm:$0xf]  ;;  %v6544_v1 = vld [vmem:[%s6540_s23 + $0x1c] sm:$0xf]  ;;  %v226_v4 = vld [vmem:[%s6540_s23] sm:$0xf] }
  0x12   : > { %v6547_v2 = vcombine.low %v230_v0, %v6544_v1  ;;  %v6550_v3 = vld [vmem:[%s6540_s23 + $0x20] ss:$0 sps:$4 sm:$0x11]   ;;  %v6554_v5 = vld [vmem:[%s6540_s23 + $0x4] sm:$0xf] }
  0x13   : > { %v232_v6 = vld [vmem:[%s6540_s23 + $0x24] sm:$0xf]  ;;  %v459_v9 = vshll.u32 %v6550_v3, 16  ;;  %v6561_v10 = vcombine.low %v226_v4, %v6554_v5  ;;  %v6564_v11 = vld [vmem:[%s6540_s23 + $0x8] ss:$0 sps:$4 sm:$0x11]  }
  0x14   : > { %v452_v7 = vshrl.u32 %v6547_v2, 16  ;;  %v454_v8 = vshll.u32 %v6547_v2, 16  ;;  %v6567_v12 = vld [vmem:[%s6540_s23 + $0x28] sm:$0xf]  ;;  %v228_v13 = vld [vmem:[%s6540_s23 + $0xc] sm:$0xf] }
  0x15   : > { %10388 = vst [vmem:[#allocation3_spill] sm:$0xff] %v6561_v10  ;;  %v461_v15 = vrot.slane %v459_v9, 1  ;;  %v428_v16 = vshrl.u32 %v6561_v10, 16  ;;  %v430_v17 = vshll.u32 %v6561_v10, 16  ;;  %v6573_v18 = vld [vmem:[%s6540_s23 + $0x10] sm:$0xf]  ;;  %v6577_v20 = vcombine.low %v232_v6, %v6567_v12 }
  0x16   : > { %v456_v14 = vrot.slane %v454_v8, 1  ;;  %v435_v19 = vshll.u32 %v6564_v11, 16  ;;  %v6580_v21 = vld [vmem:[%s6540_s23 + $0x2c] ss:$0 sps:$4 sm:$0x11]   ;;  %v6583_v22 = vcombine.low %v228_v13, %v6573_v18 }
  0x17   : > { %v432_v24 = vrot.slane %v430_v17, 1  ;;  %v6586_v25 = vld [vmem:[%s6540_s23 + $0x14] ss:$0 sps:$4 sm:$0x11]   ;;  %v236_v26 = vld [vmem:[%s6540_s23 + $0x3c] sm:$0xf] }
  0x18   : > { %v457_v23 = vor.u32 %v456_v14, %v452_v7  ;;  %v437_v27 = vrot.slane %v435_v19, 1  ;;  %v464_v28 = vshrl.u32 %v6577_v20, 16  ;;  %v466_v29 = vshll.u32 %v6577_v20, 16  ;;  %v6593_v31 = vld [vmem:[%s6540_s23 + $0x40] sm:$0xf] }
  0x19   : > { %v471_v30 = vshll.u32 %v6580_v21, 16  ;;  %v433_v33 = vor.u32 %v432_v24, %v428_v16  ;;  %v440_v34 = vshrl.u32 %v6583_v22, 16  ;;  %v442_v35 = vshll.u32 %v6583_v22, 16  ;;  %v234_v36 = vld [vmem:[%s6540_s23 + $0x30] sm:$0xf] }
  0x1a   : > { %v6596_v32 = vsel %vm426_vm0, %v457_v23, %v461_v15  ;;  %v468_v37 = vrot.slane %v466_v29, 1  ;;  %v447_v39 = vshll.u32 %v6586_v25, 16  ;;  %v6605_v40 = vcombine.low %v236_v26, %v6593_v31  ;;  %v6608_v41 = vld [vmem:[%s6540_s23 + $0x44] ss:$0 sps:$4 sm:$0x11]  }
  0x1b   : > { %623 = vrot.lane.b32.xlu1 %v6596_v32, %s6487_s24  ;;  %v473_v38 = vrot.slane %v471_v30, 1  ;;  %v438_v42 = vsel %vm426_vm0, %v433_v33, %v437_v27  ;;  %v444_v43 = vrot.slane %v442_v35, 1  ;;  %v6612_v44 = vld [vmem:[%s6540_s23 + $0x34] sm:$0xf]  ;;  %v495_v51 = vshll.u32 %v6608_v41, 16 }
  0x1c   : > { %619 = vrot.lane.b32.xlu0 %v438_v42, %s6487_s24  ;;  %v469_v45 = vor.u32 %v468_v37, %v464_v28  ;;  %v449_v46 = vrot.slane %v447_v39, 1  ;;  %v488_v47 = vshrl.u32 %v6605_v40, 16  ;;  %v490_v48 = vshll.u32 %v6605_v40, 16  ;;  %v6618_v49 = vld [vmem:[%s6540_s23 + $0x38] ss:$0 sps:$4 sm:$0x11]  }
  0x1d   : > { %v445_v50 = vor.u32 %v444_v43, %v440_v34  ;;  %v6622_v52 = vcombine.low %v234_v36, %v6612_v44  ;;  %v240_v53 = vld [vmem:[%s6540_s23 + $0x54] sm:$0xf]  ;;  %v6626_v54 = vld [vmem:[%s6540_s23 + $0x58] sm:$0xf]  ;;  %v483_v57 = vshll.u32 %v6618_v49, 16  ;;  %v497_v61 = vrot.slane %v495_v51, 1 }
  0x1e   : > { %v6629_v55 = vsel %vm426_vm0, %v469_v45, %v473_v38  ;;  %v492_v56 = vrot.slane %v490_v48, 1  ;;  %v6633_v58 = vcombine.low %v240_v53, %v6626_v54  ;;  %v238_v59 = vld [vmem:[%s6540_s23 + $0x48] sm:$0xf]  ;;  %v6644_v0 = vld [vmem:[%s6540_s23 + $0x5c] ss:$0 sps:$4 sm:$0x11]  }
  0x1f   : > { %625 = vrot.lane.b32.xlu1 %v6629_v55, %s6487_s24  ;;  %v6639_v60 = vsel %vm426_vm0, %v445_v50, %v449_v46  ;;  %v476_v62 = vshrl.u32 %v6622_v52, 16  ;;  %v478_v63 = vshll.u32 %v6622_v52, 16  ;;  %v485_v6 = vrot.slane %v483_v57, 1  ;;  %v6651_v9 = vld [vmem:[%s6540_s23 + $0x4c] sm:$0xf] }
  0x20   : > { %10389 = vst [vmem:[#allocation4_spill] sm:$0xff] %v6633_v58  ;;  %621 = vrot.lane.b32.xlu0 %v6639_v60, %s6487_s24  ;;  %v493_v4 = vor.u32 %v492_v56, %v488_v47  ;;  %v512_v7 = vshrl.u32 %v6633_v58, 16  ;;  %v514_v8 = vshll.u32 %v6633_v58, 16  ;;  %v519_v14 = vshll.u32 %v6644_v0, 16  ;;  %v244_v16 = vld [vmem:[%s6540_s23 + $0x6c] sm:$0xf] }
  0x21   : > { %v480_v13 = vrot.slane %v478_v63, 1  ;;  %v6655_v15 = vcombine.low %v238_v59, %v6651_v9  ;;  %v6662_v23 = vld [vmem:[%s6540_s23 + $0x50] ss:$0 sps:$4 sm:$0x11]   ;;  %v242_v36 = vld [vmem:[%s6540_s23 + $0x60] sm:$0xf] }
  0x22   : > { %v6659_v17 = vsel %vm426_vm0, %v493_v4, %v497_v61  ;;  %v516_v19 = vrot.slane %v514_v8, 1  ;;  %v6665_v24 = vld [vmem:[%s6540_s23 + $0x70] sm:$0xf]  ;;  %v521_v27 = vrot.slane %v519_v14, 1  ;;  %v507_v33 = vshll.u32 %v6662_v23, 16 }
  0x23   : > { %629 = vrot.lane.b32.xlu1 %v6659_v17, %s6487_s24  ;;  %v481_v26 = vor.u32 %v480_v13, %v476_v62  ;;  %v500_v28 = vshrl.u32 %v6655_v15, 16  ;;  %v502_v29 = vshll.u32 %v6655_v15, 16  ;;  %v6673_v34 = vcombine.low %v244_v16, %v6665_v24  ;;  %v6676_v35 = vld [vmem:[%s6540_s23 + $0x74] ss:$0 sps:$4 sm:$0x11]  }
  0x24   : > { %v517_v30 = vor.u32 %v516_v19, %v512_v7  ;;  %v6683_v39 = vld [vmem:[%s6540_s23 + $0x64] sm:$0xf]  ;;  %v509_v43 = vrot.slane %v507_v33, 1  ;;  %v6693_v47 = vld [vmem:[%s6540_s23 + $0x68] ss:$0 sps:$4 sm:$0x11]  }
  0x25   : > { %10390 = vst [vmem:[#allocation5_spill] sm:$0xff] %v6673_v34  ;;  %v6680_v37 = vsel %vm426_vm0, %v481_v26, %v485_v6  ;;  %v504_v38 = vrot.slane %v502_v29, 1  ;;  %v536_v45 = vshrl.u32 %v6673_v34, 16  ;;  %v538_v46 = vshll.u32 %v6673_v34, 16  ;;  %v248_v53 = vld [vmem:[%s6540_s23 + $0x84] sm:$0xf] }
  0x26   : > { %627 = vrot.lane.b32.xlu0 %v6680_v37, %s6487_s24  ;;  %v6688_v42 = vsel %vm426_vm0, %v517_v30, %v521_v27  ;;  %v543_v50 = vshll.u32 %v6676_v35, 16  ;;  %v6699_v51 = vcombine.low %v242_v36, %v6683_v39  ;;  %v6703_v56 = vld [vmem:[%s6540_s23 + $0x88] sm:$0xf]  ;;  %v531_v59 = vshll.u32 %v6693_v47, 16  ;;  %v246_v62 = vld [vmem:[%s6540_s23 + $0x78] sm:$0xf] }
  0x27   : > { %10391 = vst [vmem:[#allocation6_spill] sm:$0xff] %v6688_v42  ;;  %633 = vrot.lane.b32.xlu1 %v6688_v42, %s6487_s24  ;;  %v505_v48 = vor.u32 %v504_v38, %v500_v28  ;;  %v540_v57 = vrot.slane %v538_v46, 1  ;;  %v6707_v61 = vcombine.low %v248_v53, %v6703_v56  ;;  %v6716_v8 = vld [vmem:[%s6540_s23 + $0x8c] ss:$0 sps:$4 sm:$0x11]  }
  0x28   : > { %10392 = vst [vmem:[#allocation7_spill] sm:$0xff] %v6699_v51  ;;  %v545_v4 = vrot.slane %v543_v50, 1  ;;  %v524_v6 = vshrl.u32 %v6699_v51, 16  ;;  %v526_v7 = vshll.u32 %v6699_v51, 16  ;;  %v533_v14 = vrot.slane %v531_v59, 1 }
  0x29   : > { %10393 = vst [vmem:[#allocation8_spill] sm:$0xff] %v6707_v61  ;;  %v6711_v63 = vsel %vm426_vm0, %v505_v48, %v509_v43  ;;  %v541_v13 = vor.u32 %v540_v57, %v536_v45  ;;  %v560_v16 = vshrl.u32 %v6707_v61, 16  ;;  %v562_v19 = vshll.u32 %v6707_v61, 16  ;;  %v6723_v26 = vld [vmem:[%s6540_s23 + $0x7c] sm:$0xf] }
  0x2a   : > { %10394 = vst [vmem:[#allocation9_spill] sm:$0xff] %v6711_v63  ;;  %631 = vrot.lane.b32.xlu0 %v6711_v63, %s6487_s24  ;;  %v528_v27 = vrot.slane %v526_v7, 1  ;;  %v567_v28 = vshll.u32 %v6716_v8, 16  ;;  %v6727_v29 = vcombine.low %v246_v62, %v6723_v26  ;;  %v252_v30 = vld [vmem:[%s6540_s23 + $0x9c] sm:$0xf] }
  0x2b   : > { %v6731_v33 = vsel %vm426_vm0, %v541_v13, %v545_v4  ;;  %v564_v36 = vrot.slane %v562_v19, 1  ;;  %v6734_v38 = vld [vmem:[%s6540_s23 + $0x80] ss:$0 sps:$4 sm:$0x11]   ;;  %v250_v4 = vld [vmem:[%s6540_s23 + $0x90] sm:$0xf] }
  0x2c   : > { %10395 = vst [vmem:[#allocation10_spill] sm:$0xff] %v6727_v29  ;;  %10396 = vst [vmem:[#allocation11_spill] sm:$0xff] %v6731_v33  ;;  %v6737_v43 = vld [vmem:[%s6540_s23 + $0xa0] sm:$0xf]  ;;  %637 = vrot.lane.b32.xlu1 %v6731_v33, %s6487_s24  ;;  %v529_v45 = vor.u32 %v528_v27, %v524_v6  ;;  %v569_v46 = vrot.slane %v567_v28, 1  ;;  %v548_v48 = vshrl.u32 %v6727_v29, 16 }
  0x2d   : > { %v550_v50 = vshll.u32 %v6727_v29, 16  ;;  %v565_v53 = vor.u32 %v564_v36, %v560_v16  ;;  %v555_v57 = vshll.u32 %v6734_v38, 16  ;;  %v6745_v59 = vcombine.low %v252_v30, %v6737_v43  ;;  %v6748_v62 = vld [vmem:[%s6540_s23 + $0xa4] ss:$0 sps:$4 sm:$0x11]  }
  0x2e   : > { %v6752_v7 = vsel %vm426_vm0, %v529_v45, %v533_v14  ;;  %v6755_v13 = vld [vmem:[%s6540_s23 + $0x94] sm:$0xf]  ;;  %v6765_v30 = vld [vmem:[%s6540_s23 + $0x98] ss:$0 sps:$4 sm:$0x11]   ;;  %v591_v36 = vshll.u32 %v6748_v62, 16 }
  0x2f   : > { %10397 = vst [vmem:[#allocation12_spill] sm:$0xff] %v6745_v59  ;;  %10398 = vst [vmem:[#allocation13_spill] sm:$0xff] %v6752_v7  ;;  %v552_v6 = vrot.slane %v550_v50, 1  ;;  %635 = vrot.lane.b32.xlu0 %v6752_v7, %s6487_s24  ;;  %v6760_v16 = vsel %vm426_vm0, %v565_v53, %v569_v46  ;;  %v557_v19 = vrot.slane %v555_v57, 1  ;;  %v584_v27 = vshrl.u32 %v6745_v59, 16 }
  0x30   : > { %10399 = vst [vmem:[#allocation14_spill] sm:$0xff] %v6760_v16  ;;  %v586_v28 = vshll.u32 %v6745_v59, 16  ;;  %641 = vrot.lane.b32.xlu1 %v6760_v16, %s6487_s24  ;;  %v6771_v45 = vcombine.low %v250_v4, %v6755_v13  ;;  %v256_v50 = vld [vmem:[%s6540_s23 + $0xb4] sm:$0xf]  ;;  %v6775_v46 = vld [vmem:[%s6540_s23 + $0xb8] sm:$0xf] }
  0x31   : > { %v553_v14 = vor.u32 %v552_v6, %v548_v48  ;;  %v704_v53 = vrot.slane %v6586_v25, 1  ;;  %v579_v10 = vshll.u32 %v6765_v30, 16  ;;  %v6780_v59 = vcombine.low %v256_v50, %v6775_v46  ;;  %v254_v16 = vld [vmem:[%s6540_s23 + $0xa8] sm:$0xf]  ;;  %v281_v34 = vld [vmem:[%s6540_s23 + $0xc] sm:$0xe] }
  0x32   : > { %10400 = vst [vmem:[#allocation15_spill] sm:$0xff] %v6771_v45  ;;  %v588_v57 = vrot.slane %v586_v28, 1  ;;  %v593_v6 = vrot.slane %v591_v36, 1  ;;  %v572_v4 = vshrl.u32 %v6771_v45, 16  ;;  %v574_v61 = vshll.u32 %v6771_v45, 16 }
  0x33   : > { %10401 = vst [vmem:[#allocation16_spill] sm:$0xff] %v6780_v59  ;;  %v6784_v48 = vsel %vm426_vm0, %v553_v14, %v557_v19  ;;  %v6789_v29 = vld [vmem:[%s6540_s23 + $0xbc] ss:$0 sps:$4 sm:$0x11]   ;;  %v581_v28 = vrot.slane %v579_v10, 1  ;;  %v608_v50 = vshrl.u32 %v6780_v59, 16 }
  0x34   : > { %10402 = vst [vmem:[#allocation17_spill] sm:$0xff] %v6784_v48  ;;  %639 = vrot.lane.b32.xlu0 %v6784_v48, %s6487_s24  ;;  %v589_v25 = vor.u32 %v588_v57, %v584_v27  ;;  %v610_v33 = vshll.u32 %v6780_v59, 16  ;;  %v6796_v19 = vld [vmem:[%s6540_s23 + $0xac] sm:$0xf]  ;;  %v576_v14 = vrot.slane %v574_v61, 1  ;;  %v615_v36 = vshll.u32 %v6789_v29, 16 }
  0x35   : > { %v6800_v45 = vcombine.low %v254_v16, %v6796_v19  ;;  %v6807_v10 = vld [vmem:[%s6540_s23 + $0xb0] ss:$0 sps:$4 sm:$0x11]   ;;  %v5760_v57 = vcombine.low %v281_v34, %v6573_v18  ;;  %v280_v59 = vld [vmem:[%s6540_s23] sm:$0xe] }
  0x36   : > { %v6804_v7 = vsel %vm426_vm0, %v589_v25, %v593_v6  ;;  %v612_v27 = vrot.slane %v610_v33, 1  ;;  %v577_v61 = vor.u32 %v576_v14, %v572_v4  ;;  %v617_v48 = vrot.slane %v615_v36, 1  ;;  %v283_v42 = vld [vmem:[%s6540_s23 + $0x24] sm:$0xe]  ;;  %v282_v63 = vld [vmem:[%s6540_s23 + $0x18] sm:$0xe] }
  0x37   : > { %645 = vrot.lane.b32.xlu1 %v6804_v7, %s6487_s24  ;;  %v596_v16 = vshrl.u32 %v6800_v45, 16  ;;  %v598_v51 = vshll.u32 %v6800_v45, 16  ;;  %v603_v6 = vshll.u32 %v6807_v10, 16  ;;  %v703_v33 = vrot.slane %v5760_v57, 1  ;;  %v285_v14 = vld [vmem:[%s6540_s23 + $0x3c] sm:$0xe] }
  0x38   : > { %v613_v58 = vor.u32 %v612_v27, %v608_v50  ;;  %v5759_v25 = vcombine.low %v280_v59, %v6554_v5  ;;  %v6820_v18 = vsel %vm426_vm0, %v577_v61, %v581_v28  ;;  %v5762_v4 = vcombine.low %v283_v42, %v6567_v12  ;;  %v287_v61 = vld [vmem:[%s6540_s23 + $0x54] sm:$0xe] }
  0x39   : > { %v600_v34 = vrot.slane %v598_v51, 1  ;;  %643 = vrot.lane.b32.xlu0 %v6820_v18, %s6487_s24  ;;  %v605_v36 = vrot.slane %v603_v6, 1  ;;  %v701_v51 = vrot.slane %v6564_v11, 1  ;;  %v5761_v28 = vcombine.low %v282_v63, %v6544_v1  ;;  %v286_v11 = vld [vmem:[%s6540_s23 + $0x48] sm:$0xe] }
  0x3a   : > { %v6827_v50 = vsel %vm426_vm0, %v613_v58, %v617_v48  ;;  %v700_v59 = vrot.slane %v5759_v25, 1  ;;  %v6834_v12 = vsel %vm10164_vm1, %v703_v33, %v704_v53  ;;  %v709_v42 = vrot.slane %v5762_v4, 1  ;;  %v284_v58 = vld [vmem:[%s6540_s23 + $0x30] sm:$0xe]  ;;  %v289_v25 = vld [vmem:[%s6540_s23 + $0x6c] sm:$0xe] }
  0x3b   : > { %649 = vrot.lane.b32.xlu1 %v6827_v50, %s6487_s24  ;;  %v601_v5 = vor.u32 %v600_v34, %v596_v16  ;;  %v710_v27 = vrot.slane %v6580_v21, 1  ;;  %v5764_v57 = vcombine.low %v285_v14, %v6593_v31  ;;  %v706_v63 = vrot.slane %v5761_v28, 1 }
  0x3c   : > { %v702_v1 = vsel %vm10164_vm1, %v700_v59, %v701_v51  ;;  %v707_v21 = vrot.slane %v6550_v3, 1  ;;  %v5763_v31 = vcombine.low %v284_v58, %v6612_v44  ;;  %v716_v6 = vrot.slane %v6608_v41, 1  ;;  %v291_v59 = vld [vmem:[%s6540_s23 + $0x84] sm:$0xe]  ;;  %v293_v58 = vld [vmem:[%s6540_s23 + $0x9c] sm:$0xe] }
  0x3d   : > { %v6840_v48 = vsel %vm426_vm0, %v601_v5, %v605_v36  ;;  %v6852_v53 = vsel %vm10164_vm1, %v709_v42, %v710_v27  ;;  %v715_v16 = vrot.slane %v5764_v57, 1  ;;  %v5766_v33 = vcombine.low %v287_v61, %v6626_v54  ;;  %v288_v5 = vld [vmem:[%s6540_s23 + $0x60] sm:$0xe]  ;;  %v290_v57 = vld [vmem:[%s6540_s23 + $0x78] sm:$0xe] }
  0x3e   : > { %647 = vrot.lane.b32.xlu0 %v6840_v48, %s6487_s24  ;;  %v6861_v3 = vsel %vm10164_vm1, %v706_v63, %v707_v21  ;;  %v712_v44 = vrot.slane %v5763_v31, 1  ;;  %v713_v34 = vrot.slane %v6618_v49, 1  ;;  %v5765_v4 = vcombine.low %v286_v11, %v6651_v9  ;;  %v292_v21 = vld [vmem:[%s6540_s23 + $0x90] sm:$0xe]  ;;  %v295_v31 = vld [vmem:[%s6540_s23 + $0xb4] sm:$0xe] }
  0x3f   : > { %750 = vrot.lane.b32.xlu1 %v6834_v12, %s6488_s25  ;;  %v6866_v14 = vsel %vm10164_vm1, %v715_v16, %v716_v6  ;;  %v721_v41 = vrot.slane %v5766_v33, 1  ;;  %v722_v54 = vrot.slane %v6644_v0, 1  ;;  %v5768_v36 = vcombine.low %v289_v25, %v6665_v24 }
  0x40   : > { %v6877_v49 = vsel %vm10164_vm1, %v712_v44, %v713_v34  ;;  %v718_v9 = vrot.slane %v5765_v4, 1  ;;  %v719_v51 = vrot.slane %v6662_v23, 1  ;;  %v5767_v28 = vcombine.low %v288_v5, %v6683_v39  ;;  %v294_v44 = vld [vmem:[%s6540_s23 + $0xa8] sm:$0xe] }
  0x41   : > { %v6882_v0 = vsel %vm10164_vm1, %v721_v41, %v722_v54  ;;  %v727_v24 = vrot.slane %v5768_v36, 1  ;;  %v728_v42 = vrot.slane %v6676_v35, 1  ;;  %v5770_v27 = vcombine.low %v291_v59, %v6703_v56  ;;  %v6385_v59 = vld [vmem:[%s10130_s1 + $0x8] sm:$0xff]  }
  0x42   : > { %748 = vrot.lane.b32.xlu0 %v702_v1, %s6488_s25  ;;  %v6893_v23 = vsel %vm10164_vm1, %v718_v9, %v719_v51  ;;  %v724_v39 = vrot.slane %v5767_v28, 1  ;;  %v725_v61 = vrot.slane %v6693_v47, 1  ;;  %v5769_v11 = vcombine.low %v290_v57, %v6723_v26  ;;  %v6386_v9 = vld [vmem:[%s10130_s1] sm:$0xff]   ;;  %v10406_v57 = vld [vmem:[#allocation7_spill] sm:$0xff] }
  0x43   : > { %754 = vrot.lane.b32.xlu1 %v6852_v53, %s6488_s25  ;;  %v6898_v35 = vsel %vm10164_vm1, %v727_v24, %v728_v42  ;;  %v733_v56 = vrot.slane %v5770_v27, 1  ;;  %v734_v1 = vrot.slane %v6716_v8, 1  ;;  %v5772_v63 = vcombine.low %v293_v58, %v6737_v43  ;;  %v10404_v51 = vld [vmem:[#allocation4_spill] sm:$0xff] }
  0x44   : > { %v6909_v47 = vsel %vm10164_vm1, %v724_v39, %v725_v61  ;;  %v730_v26 = vrot.slane %v5769_v11, 1  ;;  %v731_v16 = vrot.slane %v6734_v38, 1  ;;  %v5771_v6 = vcombine.low %v292_v21, %v6755_v13  ;;  %v10407_v39 = vld [vmem:[#allocation13_spill] sm:$0xff] }
  0x45   : > { %v6914_v8 = vsel %vm10164_vm1, %v733_v56, %v734_v1  ;;  %v739_v43 = vrot.slane %v5772_v63, 1  ;;  %v740_v33 = vrot.slane %v6748_v62, 1  ;;  %v5774_v25 = vcombine.low %v295_v31, %v6775_v46  ;;  %v10411_v1 = vld [vmem:[#allocation5_spill] sm:$0xff]  ;;  %v10412_v31 = vld [vmem:[#allocation11_spill] sm:$0xff] }
  0x46   : > { %752 = vrot.lane.b32.xlu0 %v6861_v3, %s6488_s25  ;;  %v6924_v34 = vsel %vm10164_vm1, %v730_v26, %v731_v16  ;;  %v736_v38 = vrot.slane %v5771_v6, 1  ;;  %v737_v13 = vrot.slane %v6765_v30, 1  ;;  %v5773_v4 = vcombine.low %v294_v44, %v6796_v19  ;;  %v10414_v44 = vld [vmem:[#allocation17_spill] sm:$0xff] }
  0x47   : > { %758 = vrot.lane.b32.xlu1 %v6866_v14, %s6488_s25  ;;  %v6929_v41 = vsel %vm10164_vm1, %v739_v43, %v740_v33  ;;  %v745_v62 = vrot.slane %v5774_v25, 1  ;;  %v746_v46 = vrot.slane %v6789_v29, 1  ;;  %v743_v30 = vrot.slane %v6807_v10, 1  ;;  %v6384_v10 = vld [vmem:[%s10130_s1 + $0x10] ss:$0 sps:$4 sm:$0x33]  }
  0x48   : > { %v6937_v54 = vsel %vm10164_vm1, %v736_v38, %v737_v13  ;;  %v742_v36 = vrot.slane %v5773_v4, 1  ;;  %6317 = vmatprep.subr.msk.bf16.mxu0 %vm1348_vm2, %v6384_v10  ;;  %v1350_v5 = vsel %vm1348_vm2, %v6384_v10, 0  ;;  %v10413_v43 = vld [vmem:[#allocation10_spill] sm:$0xff]  ;;  %vm1622_vm2 = vsmask.f32 7938 }
  0x49   : > { %v6941_v19 = vsel %vm10164_vm1, %v745_v62, %v746_v46  ;;  %6132 = vmatpush3.bf16.msra.mxu0 %v1350_v5  ;;  %v10416_v62 = vld [vmem:[#allocation8_spill] sm:$0xff] }
  0x4a   : > { %756 = vrot.lane.b32.xlu0 %v6877_v49, %s6488_s25  ;;  %v6948_v29 = vsel %vm10164_vm1, %v742_v36, %v743_v30  ;;  %6133 = vmatprep.subr.bf16.mxu0 %v6385_v59  ;;  %v10419_v30 = vld [vmem:[#allocation14_spill] sm:$0xff] }
  0x4b   : > { %762 = vrot.lane.b32.xlu1 %v6882_v0, %s6488_s25 }
  0x4d   : > { %6134 = vmatpush3.bf16.msra.mxu0 %v6385_v59 }
  0x4e   : > { %760 = vrot.lane.b32.xlu0 %v6893_v23, %s6488_s25  ;;  %6135 = vmatprep.subr.bf16.mxu0 %v6386_v9 }
  0x4f   : > { %766 = vrot.lane.b32.xlu1 %v6898_v35, %s6488_s25 }
  0x51   : > { %6136 = vmatpush3.bf16.msra.mxu0 %v6386_v9  ;;  %v10421_v9 = vld [vmem:[#allocation15_spill] sm:$0xff] }
  0x52   : > { %764 = vrot.lane.b32.xlu0 %v6909_v47, %s6488_s25 }
  0x53   : > { %770 = vrot.lane.b32.xlu1 %v6914_v8, %s6488_s25 }
  0x56   : > { %768 = vrot.lane.b32.xlu0 %v6924_v34, %s6488_s25 }
  0x57   : > { %774 = vrot.lane.b32.xlu1 %v6929_v41, %s6488_s25 }
  0x5a   : > { %772 = vrot.lane.b32.xlu0 %v6937_v54, %s6488_s25 }
  0x5b   : > { %778 = vrot.lane.b32.xlu1 %v6941_v19, %s6488_s25 }
  0x5e   : > { %776 = vrot.lane.b32.xlu0 %v6948_v29, %s6488_s25 }
  0x5f   : > { %787 = vrot.lane.b32.xlu1 %v6547_v2, %s6489_s26 }
  0x62   : > { %785 = vrot.lane.b32.xlu0 %v6583_v22, %s6489_s26 }
  0x63   : > { %791 = vrot.lane.b32.xlu1 %v6622_v52, %s6489_s26 }
  0x66   : > { %789 = vrot.lane.b32.xlu0 %v6577_v20, %s6489_s26 }
  0x67   : > { %834 = vrot.lane.b32.xlu1 %v6596_v32, %s6490_s6 }
  0x6a   : > { %832 = vrot.lane.b32.xlu0 %v6639_v60, %s6490_s6 }
  0x6b   : > { %872 = vrot.lane.b32.xlu1 %v6861_v3, %s6491_s9 }
  0x6e   : > { %870 = vrot.lane.b32.xlu0 %v6834_v12, %s6491_s9 }
  0x6f   : > { %909 = vrot.lane.b32.xlu1 %v6577_v20, %s6492_s10 }
  0x72   : > { %907 = vrot.lane.b32.xlu0 %v6547_v2, %s6492_s10 }
  0x73   : > { %956 = vrot.lane.b32.xlu1 %v6629_v55, %s6493_s11 }
  0x76   : > { %954 = vrot.lane.b32.xlu0 %v6596_v32, %s6493_s11 }
  0x77   : > { %994 = vrot.lane.b32.xlu1 %v6852_v53, %s6494_s12 }
  0x7a   : > { %992 = vrot.lane.b32.xlu0 %v6861_v3, %s6494_s12 }
  0x7b   : > { %838 = vrot.lane.b32.xlu1 %v6680_v37, %s6490_s6 }
  0x7e   : > { %836 = vrot.lane.b32.xlu0 %v6629_v55, %s6490_s6 }
  0x7f   : > { %876 = vrot.lane.b32.xlu1 %v6877_v49, %s6491_s9 }
  0x82   : > { %874 = vrot.lane.b32.xlu0 %v6852_v53, %s6491_s9 }
  0x83   : > { %913 = vrot.lane.b32.xlu1 %v6605_v40, %s6492_s10 }
  0x86   : > { %911 = vrot.lane.b32.xlu0 %v6622_v52, %s6492_s10 }
  0x87   : > { %960 = vrot.lane.b32.xlu1 %v6659_v17, %s6493_s11 }
  0x8a   : > { %958 = vrot.lane.b32.xlu0 %v6680_v37, %s6493_s11  ;;  %v10403_v37 = vld [vmem:[#allocation9_spill] sm:$0xff] }
  0x8b   : > { %998 = vrot.lane.b32.xlu1 %v6866_v14, %s6494_s12 }
  0x8d   : > { %v7007_v32 = vpop.permute.xlu1 %623 }
  0x8e   : > { %996 = vrot.lane.b32.xlu0 %v6877_v49, %s6494_s12  ;;  %v7011_v55 = vpop.permute.xlu0 %619 }
  0x8f   : > { %795 = vrot.lane.b32.xlu1 %v6655_v15, %s6489_s26 }
  0x91   : > { %v7015_v60 = vpop.permute.xlu1 %625 }
  0x92   : > { %793 = vrot.lane.b32.xlu0 %v6605_v40, %s6489_s26  ;;  %v7019_v12 = vpop.permute.xlu0 %621 }
  0x93   : > { %842 = vrot.lane.b32.xlu1 %v10403_v37, %s6490_s6 }
  0x95   : > { %v7023_v53 = vpop.permute.xlu1 %629 }
  0x96   : > { %840 = vrot.lane.b32.xlu0 %v6659_v17, %s6490_s6  ;;  %v10405_v17 = vld [vmem:[#allocation6_spill] sm:$0xff] }
  0x97   : > { %880 = vrot.lane.b32.xlu1 %v6893_v23, %s6491_s9 }
  0x98   : > { %v7029_v3 = vpop.permute.xlu0 %627 }
  0x99   : > { %v7031_v49 = vpop.permute.xlu1 %633 }
  0x9a   : > { %878 = vrot.lane.b32.xlu0 %v6866_v14, %s6491_s9 }
  0x9b   : > { %917 = vrot.lane.b32.xlu1 %v10404_v51, %s6492_s10 }
  0x9c   : > { %v7037_v28 = vpop.permute.xlu0 %631 }
  0x9e   : > { %915 = vrot.lane.b32.xlu0 %v6655_v15, %s6492_s10  ;;  %v7043_v24 = vpop.permute.xlu1 %637 }
  0x9f   : > { %964 = vrot.lane.b32.xlu1 %v10405_v17, %s6493_s11 }
  0xa1   : > { %v7047_v42 = vpop.permute.xlu0 %635 }
  0xa2   : > { %962 = vrot.lane.b32.xlu0 %v10403_v37, %s6493_s11  ;;  %v7051_v14 = vpop.permute.xlu1 %641 }
  0xa3   : > { %1002 = vrot.lane.b32.xlu1 %v6882_v0, %s6494_s12 }
  0xa6   : > { %1000 = vrot.lane.b32.xlu0 %v6893_v23, %s6494_s12  ;;  %v7055_v27 = vpop.permute.xlu0 %639 }
  0xa7   : > { %799 = vrot.lane.b32.xlu1 %v10406_v57, %s6489_s26 }
  0xa9   : > { %v7059_v58 = vpop.permute.xlu1 %645 }
  0xaa   : > { %797 = vrot.lane.b32.xlu0 %v10404_v51, %s6489_s26 }
  0xab   : > { %846 = vrot.lane.b32.xlu1 %v10407_v39, %s6490_s6  ;;  %v7065_v61 = vpop.permute.xlu0 %643 }
  0xac   : > { %10408 = vst [vmem:[#allocation9_spill] sm:$0xff] %v7065_v61 }
  0xad   : > { %v7067_v11 = vpop.permute.xlu1 %649 }
  0xae   : > { %10409 = vst [vmem:[#allocation4_spill] sm:$0xff] %v7067_v11  ;;  %844 = vrot.lane.b32.xlu0 %v10405_v17, %s6490_s6  ;;  %v10423_v11 = vld [vmem:[#allocation3_spill] sm:$0xff] }
  0xaf   : > { %884 = vrot.lane.b32.xlu1 %v6909_v47, %s6491_s9 }
  0xb0   : > { %v7073_v23 = vpop.permute.xlu0 %647 }
  0xb1   : > { %10410 = vst [vmem:[#allocation6_spill] sm:$0xff] %v7073_v23  ;;  %v751_v56 = vpop.permute.xlu1 %750  ;;  %v1028_v23 = vsel %vm1024_vm3, %v6583_v22, %v7019_v12 }
  0xb2   : > { %882 = vrot.lane.b32.xlu0 %v6882_v0, %s6491_s9 }
  0xb3   : > { %921 = vrot.lane.b32.xlu1 %v10411_v1, %s6492_s10 }
  0xb4   : > { %v749_v63 = vpop.permute.xlu0 %748 }
  0xb5   : > { %v7079_v21 = vpop.permute.xlu1 %754 }
  0xb6   : > { %919 = vrot.lane.b32.xlu0 %v10406_v57, %s6492_s10 }
  0xb7   : > { %968 = vrot.lane.b32.xlu1 %v10412_v31, %s6493_s11 }
  0xb8   : > { %v7085_v26 = vpop.permute.xlu0 %752 }
  0xb9   : > { %v7087_v16 = vpop.permute.xlu1 %758 }
  0xba   : > { %966 = vrot.lane.b32.xlu0 %v10407_v39, %s6493_s11 }
  0xbb   : > { %1006 = vrot.lane.b32.xlu1 %v6898_v35, %s6494_s12 }
  0xbc   : > { %v7093_v0 = vpop.permute.xlu0 %756 }
  0xbd   : > { %v7095_v6 = vpop.permute.xlu1 %762 }
  0xbe   : > { %1004 = vrot.lane.b32.xlu0 %v6909_v47, %s6494_s12 }
  0xbf   : > { %803 = vrot.lane.b32.xlu1 %v10413_v43, %s6489_s26 }
  0xc0   : > { %v7101_v33 = vpop.permute.xlu0 %760 }
  0xc1   : > { %v7103_v25 = vpop.permute.xlu1 %766 }
  0xc2   : > { %801 = vrot.lane.b32.xlu0 %v10411_v1, %s6489_s26 }
  0xc3   : > { %850 = vrot.lane.b32.xlu1 %v10414_v44, %s6490_s6 }
  0xc4   : > { %v7109_v38 = vpop.permute.xlu0 %764 }
  0xc5   : > { %v7111_v13 = vpop.permute.xlu1 %770 }
  0xc6   : > { %848 = vrot.lane.b32.xlu0 %v10412_v31, %s6490_s6 }
  0xc7   : > { %888 = vrot.lane.b32.xlu1 %v6924_v34, %s6491_s9 }
  0xc8   : > { %v7117_v47 = vpop.permute.xlu0 %768 }
  0xc9   : > { %v7119_v4 = vpop.permute.xlu1 %774 }
  0xca   : > { %10415 = vst [vmem:[#allocation7_spill] sm:$0xff] %v7119_v4  ;;  %886 = vrot.lane.b32.xlu0 %v6898_v35, %s6491_s9  ;;  %v1061_v4 = vsel %vm1057_vm4, %v1028_v23, %v751_v56 }
  0xcb   : > { %925 = vrot.lane.b32.xlu1 %v10416_v62, %s6492_s10 }
  0xcc   : > { %v7125_v46 = vpop.permute.xlu0 %772 }
  0xcd   : > { %10417 = vst [vmem:[#allocation13_spill] sm:$0xff] %v7125_v46  ;;  %v7127_v36 = vpop.permute.xlu1 %778  ;;  %v1026_v46 = vsel %vm1024_vm3, %v10423_v11, %v7011_v55 }
  0xce   : > { %10418 = vst [vmem:[#allocation5_spill] sm:$0xff] %v7127_v36  ;;  %923 = vrot.lane.b32.xlu0 %v10413_v43, %s6492_s10 }
  0xcf   : > { %972 = vrot.lane.b32.xlu1 %v10419_v30, %s6493_s11 }
  0xd0   : > { %v7133_v10 = vpop.permute.xlu0 %776 }
  0xd1   : > { %10420 = vst [vmem:[#allocation11_spill] sm:$0xff] %v7133_v10  ;;  %v788_v5 = vpop.permute.xlu1 %787  ;;  %v10422_v10 = vld [vmem:[#allocation12_spill] sm:$0xff] }
  0xd2   : > { %970 = vrot.lane.b32.xlu0 %v10414_v44, %s6493_s11  ;;  %v1094_v61 = vsel %vm1090_vm5, %v1061_v4, %v788_v5 }
  0xd3   : > { %1010 = vrot.lane.b32.xlu1 %v6914_v8, %s6494_s12 }
  0xd4   : > { %v786_v35 = vpop.permute.xlu0 %785 }
  0xd5   : > { %v7139_v59 = vpop.permute.xlu1 %791 }
  0xd6   : > { %1008 = vrot.lane.b32.xlu0 %v6924_v34, %s6494_s12 }
  0xd7   : > { %807 = vrot.lane.b32.xlu1 %v10421_v9, %s6489_s26 }
  0xd8   : > { %v7145_v37 = vpop.permute.xlu0 %789 }
  0xd9   : > { %v835_v17 = vpop.permute.xlu1 %834 }
  0xda   : > { %805 = vrot.lane.b32.xlu0 %v10416_v62, %s6489_s26  ;;  %v1127_v12 = vsel %vm1123_vm6, %v1094_v61, %v835_v17 }
  0xdb   : > { %854 = vrot.lane.b32.xlu1 %v6820_v18, %s6490_s6 }
  0xdc   : > { %v833_v39 = vpop.permute.xlu0 %832 }
  0xdd   : > { %v873_v31 = vpop.permute.xlu1 %872 }
  0xde   : > { %852 = vrot.lane.b32.xlu0 %v10419_v30, %s6490_s6  ;;  %v1160_v23 = vsel %vm1156_vm7, %v1127_v12, %v873_v31  ;;  %v1032_v12 = vsel %vm1024_vm3, %v6577_v20, %v7015_v60  ;;  %v6388_v60 = vld [vmem:[%s6540_s23 + $0xc8] ss:$0 sps:$4 sm:$0x11]  }
  0xdf   : > { %892 = vrot.lane.b32.xlu1 %v6937_v54, %s6491_s9 }
  0xe0   : > { %v871_v34 = vpop.permute.xlu0 %870 }
  0xe1   : > { %v910_v44 = vpop.permute.xlu1 %909 }
  0xe2   : > { %890 = vrot.lane.b32.xlu0 %v6914_v8, %s6491_s9  ;;  %v1059_v8 = vsel %vm1057_vm4, %v1026_v46, %v749_v63  ;;  %v1193_v4 = vsel %vm1189_vm8, %v1160_v23, %v910_v44  ;;  %v1065_v23 = vsel %vm1057_vm4, %v1032_v12, %v7079_v21 }
  0xe3   : > { %929 = vrot.lane.b32.xlu1 %v10422_v10, %s6492_s10  ;;  %v1092_v22 = vsel %vm1090_vm5, %v1059_v8, %v786_v35  ;;  %v259_v8 = vld [vmem:[%s6540_s23 + $0xc4] sm:$0xf] }
  0xe4   : > { %v908_v36 = vpop.permute.xlu0 %907  ;;  %v1125_v11 = vsel %vm1123_vm6, %v1092_v22, %v833_v39 }
  0xe5   : > { %v957_v30 = vpop.permute.xlu1 %956  ;;  %v1158_v63 = vsel %vm1156_vm7, %v1125_v11, %v871_v34  ;;  %v1030_v11 = vsel %vm1024_vm3, %v6547_v2, %v7007_v32 }
  0xe6   : > { %927 = vrot.lane.b32.xlu0 %v10421_v9, %s6492_s10  ;;  %v1191_v46 = vsel %vm1189_vm8, %v1158_v63, %v908_v36  ;;  %v1226_v5 = vsel %vm1222_vm9, %v1193_v4, %v957_v30  ;;  %v258_v30 = vld [vmem:[%s6540_s23 + $0xc0] sm:$0xf] }
  0xe7   : > { %976 = vrot.lane.b32.xlu1 %v6804_v7, %s6493_s11  ;;  %v7203_v22 = vcombine.low %v258_v30, %v259_v8  ;;  %v10424_v63 = vld [vmem:[#allocation16_spill] sm:$0xff] }
  0xe8   : > { %v955_v55 = vpop.permute.xlu0 %954 }
  0xe9   : > { %v995_v56 = vpop.permute.xlu1 %994  ;;  %v1224_v61 = vsel %vm1222_vm9, %v1191_v46, %v955_v55  ;;  %v823_v21 = vshll.u32 %v7203_v22, 16 }
  0xea   : > { %974 = vrot.lane.b32.xlu0 %v6820_v18, %s6493_s11  ;;  %v1259_v35 = vsel %vm1255_vm10, %v1226_v5, %v995_v56  ;;  %v1098_v56 = vsel %vm1090_vm5, %v1065_v23, %v7139_v59 }
  0xeb   : > { %1014 = vrot.lane.b32.xlu1 %v6929_v41, %s6494_s12 }
  0xec   : > { %v993_v17 = vpop.permute.xlu0 %992 }
  0xed   : > { %v1257_v39 = vsel %vm1255_vm10, %v1224_v61, %v993_v17  ;;  %v839_v31 = vpop.permute.xlu1 %838  ;;  %v821_v61 = vshrl.u32 %v7203_v22, 16 }
  0xee   : > { %1012 = vrot.lane.b32.xlu0 %v6937_v54, %s6494_s12  ;;  %6137 = vmatprep.mubr.msk.bf16.mxu0 %vm1315_vm11, %v1257_v39  ;;  %v1131_v2 = vsel %vm1123_vm6, %v1098_v56, %v839_v31  ;;  %v825_v31 = vrot.slane %v823_v21, 1 }
  0xef   : > { %6138 = vmatmul.mubr.msk.bf16.vlgmr.msra.gmra.mxu0 %vm1315_vm11, %v1259_v35  ;;  %811 = vrot.lane.b32.xlu1 %v6800_v45, %s6489_s26 }
  0xf0   : > { %v837_v18 = vpop.permute.xlu0 %836 }
  0xf1   : > { %v877_v36 = vpop.permute.xlu1 %876 }
  0xf2   : > { %809 = vrot.lane.b32.xlu0 %v10422_v10, %s6489_s26 }
  0xf3   : > { %858 = vrot.lane.b32.xlu1 %v6840_v48, %s6490_s6 }
  0xf4   : > { %v875_v34 = vpop.permute.xlu0 %874 }
  0xf5   : > { %v914_v44 = vpop.permute.xlu1 %913 }
  0xf6   : > { %856 = vrot.lane.b32.xlu0 %v6804_v7, %s6490_s6  ;;  %v1063_v7 = vsel %vm1057_vm4, %v1030_v11, %v7085_v26  ;;  %v1164_v26 = vsel %vm1156_vm7, %v1131_v2, %v877_v36  ;;  %v260_v36 = vld [vmem:[%s6540_s23 + $0xcc] sm:$0xf]  ;;  %v826_v11 = vor.u32 %v825_v31, %v821_v61 }
  0xf7   : > { %896 = vrot.lane.b32.xlu1 %v6948_v29, %s6491_s9  ;;  %v1096_v20 = vsel %vm1090_vm5, %v1063_v7, %v7145_v37  ;;  %v1197_v46 = vsel %vm1189_vm8, %v1164_v26, %v914_v44 }
  0xf8   : > { %v912_v54 = vpop.permute.xlu0 %911 }
  0xf9   : > { %v961_v55 = vpop.permute.xlu1 %960 }
  0xfa   : > { %894 = vrot.lane.b32.xlu0 %v6929_v41, %s6491_s9  ;;  %v1129_v41 = vsel %vm1123_vm6, %v1096_v20, %v837_v18  ;;  %v1230_v5 = vsel %vm1222_vm9, %v1197_v46, %v961_v55  ;;  %v828_v18 = vshll.u32 %v6388_v60, 16 }
  0xfb   : > { %933 = vrot.lane.b32.xlu1 %v10424_v63, %s6492_s10  ;;  %v1162_v59 = vsel %vm1156_vm7, %v1129_v41, %v875_v34  ;;  %v261_v34 = vld [vmem:[%s6540_s23 + $0xd0] sm:$0xf]  ;;  %v868_v41 = vrot.slane %v6388_v60, 1 }
  0xfc   : > { %v959_v32 = vpop.permute.xlu0 %958  ;;  %v1195_v37 = vsel %vm1189_vm8, %v1162_v59, %v912_v54  ;;  %v296_v54 = vld [vmem:[%s6540_s23 + $0xc0] sm:$0xe]  ;;  %v5778_v12 = vcombine.low %v260_v36, %v261_v34  ;;  %v830_v23 = vrot.slane %v828_v18, 1  ;;  %v1034_v18 = vsel %vm1024_vm3, %v6622_v52, %v7029_v3 }
  0xfd   : > { %v999_v4 = vpop.permute.xlu1 %998  ;;  %v1228_v35 = vsel %vm1222_vm9, %v1195_v37, %v959_v32  ;;  %v5777_v7 = vcombine.low %v296_v54, %v259_v8 }
  0xfe   : > { %931 = vrot.lane.b32.xlu0 %v6800_v45, %s6492_s10  ;;  %v1263_v17 = vsel %vm1255_vm10, %v1230_v5, %v999_v4  ;;  %v945_v20 = vshll.u32 %v5778_v12, 16  ;;  %v831_v32 = vsel %vm426_vm0, %v826_v11, %v830_v23  ;;  %v943_v8 = vshrl.u32 %v5778_v12, 16  ;;  %v297_v5 = vld [vmem:[%s6540_s23 + $0xcc] sm:$0xe] }
  0xff   : > { %980 = vrot.lane.b32.xlu1 %v6827_v50, %s6493_s11  ;;  %v867_v21 = vrot.slane %v5777_v7, 1 }
 0x100   : > { %v997_v39 = vpop.permute.xlu0 %996  ;;  %v947_v4 = vrot.slane %v945_v20, 1 }
 0x101   : > { %v1261_v44 = vsel %vm1255_vm10, %v1228_v35, %v997_v39  ;;  %v796_v30 = vpop.permute.xlu1 %795  ;;  %v869_v46 = vsel %vm10164_vm1, %v867_v21, %v868_v41  ;;  %v1036_v39 = vsel %vm1024_vm3, %v6605_v40, %v7023_v53 }
 0x102   : > { %978 = vrot.lane.b32.xlu0 %v6840_v48, %s6493_s11  ;;  %6141 = vmatprep.mubr.msk.bf16.mxu0 %vm1315_vm11, %v1261_v44  ;;  %v6391_v48 = vld [vmem:[%s6540_s23 + $0xd4] ss:$0 sps:$4 sm:$0x11]   ;;  %v948_v60 = vor.u32 %v947_v4, %v943_v8  ;;  %v1069_v36 = vsel %vm1057_vm4, %v1036_v39, %v7087_v16  ;;  %v6495_v8 = vmov 0  }
 0x103   : > { %6142 = vmatmul.mubr.msk.bf16.gmra.mxu0 %vm1315_vm11, %v1263_v17  ;;  %1018 = vrot.lane.b32.xlu1 %v6941_v19, %s6494_s12  ;;  %v5780_v17 = vcombine.low %v297_v5, %v261_v34  ;;  %v1102_v34 = vsel %vm1090_vm5, %v1069_v36, %v796_v30  ;;  %v990_v54 = vrot.slane %v6391_v48, 1  ;;  %1562 = vst.msk [vmem:[#allocation2] sm:$0xf] %vm1561_vm12, %v6495_v8  ;;  %1563 = vst.msk [vmem:[#allocation2 + $0x4] sm:$0xf] %vm1561_vm12, %v6495_v8 }
 0x104   : > { %v794_v55 = vpop.permute.xlu0 %793  ;;  %1567 = vst.msk [vmem:[#allocation2 + $0xcc] sm:$0xf] %vm1561_vm12, %v6495_v8  ;;  %1568 = vst.msk [vmem:[#allocation2 + $0xd0] sm:$0xf] %vm1561_vm12, %v6495_v8  ;;  %v1038_v5 = vsel %vm1024_vm3, %v6655_v15, %v7037_v28 }
 0x105   : > { %v843_v56 = vpop.permute.xlu1 %842  ;;  %v989_v3 = vrot.slane %v5780_v17, 1  ;;  %1565 = vst.msk [vmem:[#allocation2 + $0x8] sm:$0x1] %vm1564_vm13, %v6495_v8  ;;  %1569 = vst.msk [vmem:[#allocation2 + $0xd4] sm:$0x1] %vm1564_vm13, %v6495_v8  ;;  %v1071_v17 = vsel %vm1057_vm4, %v1038_v5, %v7101_v33 }
 0x106   : > { %1016 = vrot.lane.b32.xlu0 %v6948_v29, %s6494_s12  ;;  %v950_v29 = vshll.u32 %v6391_v48, 16  ;;  %v1135_v44 = vsel %vm1123_vm6, %v1102_v34, %v843_v56 }
 0x107   : > { %815 = vrot.lane.b32.xlu1 %v7203_v22, %s6489_s26  ;;  %v991_v48 = vsel %vm10164_vm1, %v989_v3, %v990_v54  ;;  %vm7357_vm1 = vmand %vm1564_vm13, %vm1622_vm2 }
 0x108   : > { %v841_v2 = vpop.permute.xlu0 %840  ;;  %v952_v61 = vrot.slane %v950_v29, 1 }
 0x109   : > { %v881_v26 = vpop.permute.xlu1 %880 }
 0x10a   : > { %813 = vrot.lane.b32.xlu0 %v10424_v63, %s6489_s26  ;;  %v953_v40 = vsel %vm426_vm0, %v948_v60, %v952_v61  ;;  %v2242_v8 = vld [vmem:[#allocation2] sm:$0xe] }
 0x10b   : > { %862 = vrot.lane.b32.xlu1 %v831_v32, %s6490_s6 }
 0x10c   : > { %v879_v59 = vpop.permute.xlu0 %878 }
 0x10d   : > { %v918_v37 = vpop.permute.xlu1 %917 }
 0x10e   : > { %860 = vrot.lane.b32.xlu0 %v6827_v50, %s6490_s6  ;;  %v1067_v50 = vsel %vm1057_vm4, %v1034_v18, %v7093_v0  ;;  %v7318_v18 = vld [vmem:[#allocation2 + $0x8] ss:$0 sps:$4 sm:$0x11]  }
 0x10f   : > { %900 = vrot.lane.b32.xlu1 %v869_v46, %s6491_s9  ;;  %v1100_v53 = vsel %vm1090_vm5, %v1067_v50, %v794_v55  ;;  %v10195_v34 = vshll.u32 %v7318_v18, 16 }
 0x110   : > { %v916_v35 = vpop.permute.xlu0 %915  ;;  %v1133_v16 = vsel %vm1123_vm6, %v1100_v53, %v841_v2 }
 0x111   : > { %v965_v31 = vpop.permute.xlu1 %964  ;;  %v1166_v0 = vsel %vm1156_vm7, %v1133_v16, %v879_v59  ;;  %v2188_v59 = vld [vmem:[#allocation2] sm:$0xf]  ;;  %v2435_v54 = vrot.slane %v10195_v34, 1 }
 0x112   : > { %898 = vrot.lane.b32.xlu0 %v6941_v19, %s6491_s9  ;;  %v1168_v19 = vsel %vm1156_vm7, %v1135_v44, %v881_v26 }
 0x113   : > { %937 = vrot.lane.b32.xlu1 %v5778_v12, %s6492_s10  ;;  %v1201_v30 = vsel %vm1189_vm8, %v1168_v19, %v918_v37  ;;  %v1199_v12 = vsel %vm1189_vm8, %v1166_v0, %v916_v35  ;;  %v1040_v37 = vsel %vm1024_vm3, %v10404_v51, %v7031_v49 }
 0x114   : > { %v963_v52 = vpop.permute.xlu0 %962  ;;  %v1234_v55 = vsel %vm1222_vm9, %v1201_v30, %v965_v31  ;;  %v1073_v35 = vsel %vm1057_vm4, %v1040_v37, %v7095_v6 }
 0x115   : > { %v1003_v11 = vpop.permute.xlu1 %1002  ;;  %v1232_v23 = vsel %vm1222_vm9, %v1199_v12, %v963_v52 }
 0x116   : > { %935 = vrot.lane.b32.xlu0 %v7203_v22, %s6492_s10  ;;  %v1267_v7 = vsel %vm1255_vm10, %v1234_v55, %v1003_v11 }
 0x117   : > { %984 = vrot.lane.b32.xlu1 %v953_v40, %s6493_s11 }
 0x118   : > { %v1001_v56 = vpop.permute.xlu0 %1000 }
 0x119   : > { %v1265_v20 = vsel %vm1255_vm10, %v1232_v23, %v1001_v56  ;;  %v800_v2 = vpop.permute.xlu1 %799  ;;  %v1577_v23 = vld [vmem:[#allocation2 + $0x18] sm:$0x1] }
 0x11a   : > { %982 = vrot.lane.b32.xlu0 %v831_v32, %s6493_s11  ;;  %6145 = vmatprep.mubr.msk.bf16.mxu0 %vm1315_vm11, %v1265_v20  ;;  %v1106_v39 = vsel %vm1090_vm5, %v1073_v35, %v800_v2  ;;  %v1044_v35 = vsel %vm1024_vm3, %v10411_v1, %v7043_v24 }
 0x11b   : > { %6146 = vmatmul.mubr.msk.bf16.gmra.mxu0 %vm1315_vm11, %v1267_v7  ;;  %1022 = vrot.lane.b32.xlu1 %v991_v48, %s6494_s12  ;;  %v1578_v7 = vsel %vm7345_vm15, 0, %v1577_v23  ;;  %v1574_v48 = vld [vmem:[#allocation2 + $0xc] sm:$0x1] }
 0x11c   : > { %v798_v22 = vpop.permute.xlu0 %797  ;;  %1579 = vst [vmem:[#allocation2 + $0x18] sm:$0x1] %v1578_v7  ;;  %v1575_v2 = vsel %vm7345_vm15, 0, %v1574_v48  ;;  %v1630_v23 = vld [vmem:[#allocation2 + $0x2c] sm:$0x1] }
 0x11d   : > { %v847_v21 = vpop.permute.xlu1 %846  ;;  %v1104_v31 = vsel %vm1090_vm5, %v1071_v17, %v798_v22  ;;  %1576 = vst [vmem:[#allocation2 + $0xc] sm:$0x1] %v1575_v2  ;;  %v1631_v7 = vsel %vm7357_vm1, 0, %v1630_v23 }
 0x11e   : > { %1020 = vrot.lane.b32.xlu0 %v869_v46, %s6494_s12  ;;  %v2189_v46 = vld [vmem:[#allocation2 + $0x4] sm:$0xf]  ;;  %v1139_v51 = vsel %vm1123_vm6, %v1106_v39, %v847_v21  ;;  %v1627_v21 = vld [vmem:[#allocation2 + $0x20] sm:$0x1]  ;;  %v1042_v39 = vsel %vm1024_vm3, %v10406_v57, %v7047_v42  ;;  %1632 = vst [vmem:[#allocation2 + $0x2c] sm:$0x1] %v1631_v7 }
 0x11f   : > { %v7310_v61 = vcombine.low %v2188_v59, %v2189_v46  ;;  %3106 = vrot.lane.b32.xlu1 %v7318_v18, %s6490_s6 }
 0x120   : > { %v845_v41 = vpop.permute.xlu0 %844 }
 0x121   : > { %v885_v26 = vpop.permute.xlu1 %884  ;;  %v10193_v49 = vshll.u32 %v7310_v61, 16  ;;  %v1137_v15 = vsel %vm1123_vm6, %v1104_v31, %v845_v41  ;;  %v10197_v6 = vshrl.u32 %v7310_v61, 16  ;;  %v1628_v41 = vsel %vm7357_vm1, 0, %v1627_v21 }
 0x122   : > { %v1172_v36 = vsel %vm1156_vm7, %v1139_v51, %v885_v26  ;;  %1629 = vst [vmem:[#allocation2 + $0x20] sm:$0x1] %v1628_v41  ;;  %v1075_v31 = vsel %vm1057_vm4, %v1042_v39, %v7109_v38  ;;  %v1048_v41 = vsel %vm1024_vm3, %v10416_v62, %v7051_v14 }
 0x123   : > { %v2430_v33 = vrot.slane %v10193_v49, 1 }
 0x124   : > { %v883_v32 = vpop.permute.xlu0 %882 }
 0x125   : > { %v922_v4 = vpop.permute.xlu1 %921  ;;  %v1170_v40 = vsel %vm1156_vm7, %v1137_v15, %v883_v32  ;;  %v2431_v3 = vor.u32 %v2430_v33, %v10197_v6 }
 0x126   : > { %v1205_v53 = vsel %vm1189_vm8, %v1172_v36, %v922_v4  ;;  %v1624_v4 = vld [vmem:[#allocation2 + $0x14] sm:$0x1] }
 0x127   : > { %v2436_v12 = vsel %vm426_vm0, %v2431_v3, %v2435_v54  ;;  %v1625_v59 = vsel %vm7357_vm1, 0, %v1624_v4 }
 0x128   : > { %v920_v29 = vpop.permute.xlu0 %919  ;;  %2617 = vrot.lane.b32.xlu0 %v2436_v12, %s6490_s6  ;;  %1626 = vst [vmem:[#allocation2 + $0x14] sm:$0x1] %v1625_v59 }
 0x129   : > { %v969_v60 = vpop.permute.xlu1 %968  ;;  %v1203_v44 = vsel %vm1189_vm8, %v1170_v40, %v920_v29  ;;  %v5901_v29 = vcombine.low %v2242_v8, %v2189_v46  ;;  %v1077_v46 = vsel %vm1057_vm4, %v1044_v35, %v7103_v25  ;;  %v1583_v25 = vld [vmem:[#allocation2 + $0x30] sm:$0x1]  ;;  %v1046_v8 = vsel %vm1024_vm3, %v10413_v43, %v7055_v27 }
 0x12a   : > { %v1238_v52 = vsel %vm1222_vm9, %v1205_v53, %v969_v60  ;;  %v1584_v40 = vsel %vm7345_vm15, 0, %v1583_v25  ;;  %v1079_v4 = vsel %vm1057_vm4, %v1046_v8, %v7117_v47 }
 0x12b   : > { %1585 = vst [vmem:[#allocation2 + $0x30] sm:$0x1] %v1584_v40 }
 0x12c   : > { %v967_v28 = vpop.permute.xlu0 %966  ;;  %2649 = vrot.lane.b32.xlu0 %v7310_v61, %s6492_s10 }
 0x12d   : > { %v1007_v50 = vpop.permute.xlu1 %1006  ;;  %v1236_v16 = vsel %vm1222_vm9, %v1203_v44, %v967_v28 }
 0x12e   : > { %v1271_v19 = vsel %vm1255_vm10, %v1238_v52, %v1007_v50 }
 0x130   : > { %v1005_v11 = vpop.permute.xlu0 %1004  ;;  %3104 = vrot.lane.b32.xlu0 %v5901_v29, %s6490_s6 }
 0x131   : > { %v1269_v0 = vsel %vm1255_vm10, %v1236_v16, %v1005_v11  ;;  %v804_v30 = vpop.permute.xlu1 %803  ;;  %v1580_v16 = vld [vmem:[#allocation2 + $0x24] sm:$0x1]  ;;  %v1633_v11 = vld [vmem:[#allocation2 + $0x38] sm:$0x1] }
 0x132   : > { %6149 = vmatprep.mubr.msk.bf16.mxu0 %vm1315_vm11, %v1269_v0  ;;  %v1110_v51 = vsel %vm1090_vm5, %v1077_v46, %v804_v30  ;;  %v1634_v30 = vsel %vm7357_vm1, 0, %v1633_v11 }
 0x133   : > { %6150 = vmatmul.mubr.msk.bf16.gmra.mxu0 %vm1315_vm11, %v1271_v19  ;;  %v1581_v19 = vsel %vm7345_vm15, 0, %v1580_v16  ;;  %1635 = vst [vmem:[#allocation2 + $0x38] sm:$0x1] %v1634_v30 }
 0x134   : > { %v802_v56 = vpop.permute.xlu0 %801  ;;  %1582 = vst [vmem:[#allocation2 + $0x24] sm:$0x1] %v1581_v19  ;;  %v10430_v19 = vld [vmem:[#allocation7_spill] sm:$0xff] }
 0x135   : > { %v851_v20 = vpop.permute.xlu1 %850  ;;  %v1108_v15 = vsel %vm1090_vm5, %v1075_v31, %v802_v56 }
 0x136   : > { %v1143_v28 = vsel %vm1123_vm6, %v1110_v51, %v851_v20 }
 0x138   : > { %v849_v26 = vpop.permute.xlu0 %848 }
 0x139   : > { %v889_v32 = vpop.permute.xlu1 %888  ;;  %v1141_v24 = vsel %vm1123_vm6, %v1108_v15, %v849_v26 }
 0x13a   : > { %v1176_v1 = vsel %vm1156_vm7, %v1143_v28, %v889_v32  ;;  %v1081_v32 = vsel %vm1057_vm4, %v1048_v41, %v7111_v13  ;;  %v1589_v13 = vld [vmem:[#allocation2 + $0x48] sm:$0x1]  ;;  %v1586_v28 = vld [vmem:[#allocation2 + $0x3c] sm:$0x1] }
 0x13c   : > { %v887_v37 = vpop.permute.xlu0 %886 }
 0x13d   : > { %v926_v5 = vpop.permute.xlu1 %925  ;;  %v1174_v42 = vsel %vm1156_vm7, %v1141_v24, %v887_v37 }
 0x13e   : > { %v1209_v57 = vsel %vm1189_vm8, %v1176_v1, %v926_v5  ;;  %v1639_v1 = vld [vmem:[#allocation2 + $0x50] sm:$0x1] }
 0x140   : > { %v924_v60 = vpop.permute.xlu0 %923 }
 0x141   : > { %v973_v17 = vpop.permute.xlu1 %972  ;;  %v1207_v33 = vsel %vm1189_vm8, %v1174_v42, %v924_v60  ;;  %v1640_v42 = vsel %vm7357_vm1, 0, %v1639_v1 }
 0x142   : > { %v1242_v38 = vsel %vm1222_vm9, %v1209_v57, %v973_v17  ;;  %v1590_v17 = vsel %vm7345_vm15, 0, %v1589_v13  ;;  %1641 = vst [vmem:[#allocation2 + $0x50] sm:$0x1] %v1640_v42  ;;  %v1636_v57 = vld [vmem:[#allocation2 + $0x44] sm:$0x1] }
 0x143   : > { %1591 = vst [vmem:[#allocation2 + $0x48] sm:$0x1] %v1590_v17  ;;  %v1637_v25 = vsel %vm7357_vm1, 0, %v1636_v57 }
 0x144   : > { %v971_v36 = vpop.permute.xlu0 %970  ;;  %1638 = vst [vmem:[#allocation2 + $0x44] sm:$0x1] %v1637_v25 }
 0x145   : > { %v1011_v50 = vpop.permute.xlu1 %1010  ;;  %v1240_v53 = vsel %vm1222_vm9, %v1207_v33, %v971_v36  ;;  %v1587_v36 = vsel %vm7345_vm15, 0, %v1586_v28  ;;  %v10433_v28 = vld [vmem:[#allocation6_spill] sm:$0xff] }
 0x146   : > { %v1275_v44 = vsel %vm1255_vm10, %v1242_v38, %v1011_v50  ;;  %1588 = vst [vmem:[#allocation2 + $0x3c] sm:$0x1] %v1587_v36  ;;  %v1054_v36 = vsel %vm1024_vm3, %v6800_v45, %v10433_v28  ;;  %v2083_v28 = vld [vmem:[#allocation2 + $0x18] sm:$0xf] }
 0x148   : > { %v1009_v52 = vpop.permute.xlu0 %1008 }
 0x149   : > { %v1273_v3 = vsel %vm1255_vm10, %v1240_v53, %v1009_v52  ;;  %v808_v54 = vpop.permute.xlu1 %807  ;;  %v1052_v52 = vsel %vm1024_vm3, %v10422_v10, %v7059_v58 }
 0x14a   : > { %6153 = vmatprep.mubr.msk.bf16.mxu0 %vm1315_vm11, %v1273_v3  ;;  %v1114_v29 = vsel %vm1090_vm5, %v1081_v32, %v808_v54  ;;  %v10429_v54 = vld [vmem:[#allocation9_spill] sm:$0xff]  ;;  %v1085_v11 = vsel %vm1057_vm4, %v1052_v52, %v10430_v19  ;;  %v1601_v52 = vld [vmem:[#allocation2 + $0x78] sm:$0x1] }
 0x14b   : > { %6154 = vmatmul.mubr.msk.bf16.gmra.mxu0 %vm1315_vm11, %v1275_v44  ;;  %v1050_v16 = vsel %vm1024_vm3, %v10421_v9, %v10429_v54 }
 0x14c   : > { %v806_v0 = vpop.permute.xlu0 %805 }
 0x14d   : > { %v855_v12 = vpop.permute.xlu1 %854  ;;  %v1112_v59 = vsel %vm1090_vm5, %v1079_v4, %v806_v0  ;;  %v10431_v0 = vld [vmem:[#allocation13_spill] sm:$0xff] }
 0x14e   : > { %v1147_v37 = vsel %vm1123_vm6, %v1114_v29, %v855_v12  ;;  %v1083_v30 = vsel %vm1057_vm4, %v1050_v16, %v10431_v0  ;;  %v1602_v16 = vsel %vm7345_vm15, 0, %v1601_v52 }
 0x14f   : > { %1603 = vst [vmem:[#allocation2 + $0x78] sm:$0x1] %v1602_v16 }
 0x150   : > { %v853_v56 = vpop.permute.xlu0 %852 }
 0x151   : > { %v893_v48 = vpop.permute.xlu1 %892  ;;  %v1145_v14 = vsel %vm1123_vm6, %v1112_v59, %v853_v56 }
 0x152   : > { %v1180_v62 = vsel %vm1156_vm7, %v1147_v37, %v893_v48 }
 0x154   : > { %v891_v20 = vpop.permute.xlu0 %890 }
 0x155   : > { %v930_v2 = vpop.permute.xlu1 %929  ;;  %v1178_v27 = vsel %vm1156_vm7, %v1145_v14, %v891_v20 }
 0x156   : > { %v1213_v43 = vsel %vm1189_vm8, %v1180_v62, %v930_v2  ;;  %v1595_v2 = vld [vmem:[#allocation2 + $0x60] sm:$0x1]  ;;  %v1592_v62 = vld [vmem:[#allocation2 + $0x54] sm:$0x1] }
 0x158   : > { %v928_v21 = vpop.permute.xlu0 %927 }
 0x159   : > { %v977_v26 = vpop.permute.xlu1 %976  ;;  %v1211_v35 = vsel %vm1189_vm8, %v1178_v27, %v928_v21  ;;  %v1593_v27 = vsel %vm7345_vm15, 0, %v1592_v62 }
 0x15a   : > { %v1246_v47 = vsel %vm1222_vm9, %v1213_v43, %v977_v26  ;;  %v1596_v26 = vsel %vm7345_vm15, 0, %v1595_v2  ;;  %1594 = vst [vmem:[#allocation2 + $0x54] sm:$0x1] %v1593_v27  ;;  %v1645_v43 = vld [vmem:[#allocation2 + $0x68] sm:$0x1] }
 0x15b   : > { %1597 = vst [vmem:[#allocation2 + $0x60] sm:$0x1] %v1596_v26  ;;  %v1646_v13 = vsel %vm7357_vm1, 0, %v1645_v43  ;;  %v1604_v26 = vld [vmem:[#allocation2 + $0x84] sm:$0x1] }
 0x15c   : > { %v975_v5 = vpop.permute.xlu0 %974  ;;  %1647 = vst [vmem:[#allocation2 + $0x68] sm:$0x1] %v1646_v13 }
 0x15d   : > { %v1015_v60 = vpop.permute.xlu1 %1014  ;;  %v1244_v39 = vsel %vm1222_vm9, %v1211_v35, %v975_v5 }
 0x15e   : > { %v1279_v46 = vsel %vm1255_vm10, %v1246_v47, %v1015_v60  ;;  %v1642_v47 = vld [vmem:[#allocation2 + $0x5c] sm:$0x1] }
 0x160   : > { %v1013_v31 = vpop.permute.xlu0 %1012 }
 0x161   : > { %v1277_v51 = vsel %vm1255_vm10, %v1244_v39, %v1013_v31  ;;  %v812_v15 = vpop.permute.xlu1 %811  ;;  %v1643_v39 = vsel %vm7357_vm1, 0, %v1642_v47  ;;  %v10432_v31 = vld [vmem:[#allocation4_spill] sm:$0xff] }
 0x162   : > { %6157 = vmatprep.mubr.msk.bf16.mxu0 %vm1315_vm11, %v1277_v51  ;;  %v1118_v12 = vsel %vm1090_vm5, %v1085_v11, %v812_v15  ;;  %1644 = vst [vmem:[#allocation2 + $0x5c] sm:$0x1] %v1643_v39  ;;  %v1056_v51 = vsel %vm1024_vm3, %v10424_v63, %v10432_v31 }
 0x163   : > { %6158 = vmatmul.mubr.msk.bf16.gmra.mxu0 %vm1315_vm11, %v1279_v46 }
 0x164   : > { %v810_v24 = vpop.permute.xlu0 %809 }
 0x165   : > { %v859_v50 = vpop.permute.xlu1 %858  ;;  %v1116_v23 = vsel %vm1090_vm5, %v1083_v30, %v810_v24  ;;  %v10434_v24 = vld [vmem:[#allocation5_spill] sm:$0xff] }
 0x166   : > { %v1151_v7 = vsel %vm1123_vm6, %v1118_v12, %v859_v50  ;;  %v1089_v1 = vsel %vm1057_vm4, %v1056_v51, %v10434_v24  ;;  %v10435_v50 = vld [vmem:[#allocation11_spill] sm:$0xff]  ;;  %v1598_v12 = vld [vmem:[#allocation2 + $0x6c] sm:$0x1] }
 0x167   : > { %v1087_v42 = vsel %vm1057_vm4, %v1054_v36, %v10435_v50 }
 0x168   : > { %v857_v33 = vpop.permute.xlu0 %856 }
 0x169   : > { %v897_v38 = vpop.permute.xlu1 %896  ;;  %v1149_v58 = vsel %vm1123_vm6, %v1116_v23, %v857_v33  ;;  %v1599_v23 = vsel %vm7345_vm15, 0, %v1598_v12 }
 0x16a   : > { %v1184_v10 = vsel %vm1156_vm7, %v1151_v7, %v897_v38  ;;  %1600 = vst [vmem:[#allocation2 + $0x6c] sm:$0x1] %v1599_v23  ;;  %v1651_v7 = vld [vmem:[#allocation2 + $0x80] sm:$0x1] }
 0x16c   : > { %v895_v40 = vpop.permute.xlu0 %894 }
 0x16d   : > { %v934_v53 = vpop.permute.xlu1 %933  ;;  %v1182_v9 = vsel %vm1156_vm7, %v1149_v58, %v895_v40  ;;  %v1648_v58 = vld [vmem:[#allocation2 + $0x74] sm:$0x1] }
 0x16e   : > { %v1217_v20 = vsel %vm1189_vm8, %v1184_v10, %v934_v53  ;;  %v1649_v10 = vsel %vm7357_vm1, 0, %v1648_v58 }
 0x16f   : > { %1650 = vst [vmem:[#allocation2 + $0x74] sm:$0x1] %v1649_v10  ;;  %v2080_v10 = vld [vmem:[#allocation2 + $0x14] sm:$0x1] }
 0x170   : > { %v932_v44 = vpop.permute.xlu0 %931 }
 0x171   : > { %v981_v3 = vpop.permute.xlu1 %980  ;;  %v1215_v21 = vsel %vm1189_vm8, %v1182_v9, %v932_v44 }
 0x172   : > { %v1250_v41 = vsel %vm1222_vm9, %v1217_v20, %v981_v3  ;;  %v7501_v20 = vld [vmem:[%s10131_s2] ss:$0 sm:$0xff] }
 0x174   : > { %v979_v56 = vpop.permute.xlu0 %978 }
 0x175   : > { %v1019_v48 = vpop.permute.xlu1 %1018  ;;  %v1248_v8 = vsel %vm1222_vm9, %v1215_v21, %v979_v56  ;;  %v1652_v56 = vsel %vm7357_vm1, 0, %v1651_v7 }
 0x176   : > { %v1283_v32 = vsel %vm1255_vm10, %v1250_v41, %v1019_v48  ;;  %1653 = vst [vmem:[#allocation2 + $0x80] sm:$0x1] %v1652_v56  ;;  %v1607_v48 = vld [vmem:[#allocation2 + $0x90] sm:$0x1] }
 0x177   : > { %v1608_v9 = vsel %vm7345_vm15, 0, %v1607_v48 }
 0x178   : > { %v1017_v4 = vpop.permute.xlu0 %1016  ;;  %1609 = vst [vmem:[#allocation2 + $0x90] sm:$0x1] %v1608_v9 }
 0x179   : > { %v1281_v29 = vsel %vm1255_vm10, %v1248_v8, %v1017_v4  ;;  %v816_v59 = vpop.permute.xlu1 %815  ;;  %v1605_v4 = vsel %vm7345_vm15, 0, %v1604_v26 }
 0x17a   : > { %6161 = vmatprep.mubr.msk.bf16.mxu0 %vm1315_vm11, %v1281_v29  ;;  %v1122_v57 = vsel %vm1090_vm5, %v1089_v1, %v816_v59  ;;  %1606 = vst [vmem:[#allocation2 + $0x84] sm:$0x1] %v1605_v4  ;;  %v1657_v59 = vld [vmem:[#allocation2 + $0x98] sm:$0x1] }
 0x17b   : > { %6162 = vmatmul.mubr.msk.bf16.gmra.mxu0 %vm1315_vm11, %v1283_v32  ;;  %v1658_v62 = vsel %vm7357_vm1, 0, %v1657_v59 }
 0x17c   : > { %v814_v37 = vpop.permute.xlu0 %813  ;;  %1659 = vst [vmem:[#allocation2 + $0x98] sm:$0x1] %v1658_v62 }
 0x17d   : > { %v863_v5 = vpop.permute.xlu1 %862  ;;  %v1120_v25 = vsel %vm1090_vm5, %v1087_v42, %v814_v37  ;;  %vm7517_vm5 = vmand %vm1561_vm12, %vm1622_vm2 }
 0x17e   : > { %v1155_v33 = vsel %vm1123_vm6, %v1122_v57, %v863_v5 }
 0x180   : > { %v861_v14 = vpop.permute.xlu0 %860 }
 0x181   : > { %v901_v60 = vpop.permute.xlu1 %900  ;;  %v1153_v63 = vsel %vm1123_vm6, %v1120_v25, %v861_v14  ;;  %v2076_v25 = vld [vmem:[#allocation2 + $0xc] sm:$0xf] }
 0x182   : > { %v1188_v40 = vsel %vm1156_vm7, %v1155_v33, %v901_v60 }
 0x183   : > { %v2157_v34 = vld [vmem:[#allocation2 + $0x98] sm:$0x1] }
 0x184   : > { %v899_v35 = vpop.permute.xlu0 %898 }
 0x185   : > { %v938_v17 = vpop.permute.xlu1 %937  ;;  %v1186_v45 = vsel %vm1156_vm7, %v1153_v63, %v899_v35  ;;  %v1654_v35 = vld [vmem:[#allocation2 + $0x8c] sm:$0x1]  ;;  %vm1752_vm7 = vsmask.f32 4368 }
 0x186   : > { %v1221_v44 = vsel %vm1189_vm8, %v1188_v40, %v938_v17  ;;  %v1655_v17 = vsel %vm7357_vm1, 0, %v1654_v35 }
 0x187   : > { %1656 = vst [vmem:[#allocation2 + $0x8c] sm:$0x1] %v1655_v17 }
 0x188   : > { %v936_v46 = vpop.permute.xlu0 %935 }
 0x189   : > { %v985_v15 = vpop.permute.xlu1 %984  ;;  %v1219_v3 = vsel %vm1189_vm8, %v1186_v45, %v936_v46 }
 0x18a   : > { %v1254_v54 = vsel %vm1222_vm9, %v1221_v44, %v985_v15 }
 0x18c   : > { %v983_v38 = vpop.permute.xlu0 %982 }
 0x18d   : > { %v1023_v53 = vpop.permute.xlu1 %1022  ;;  %v1252_v19 = vsel %vm1222_vm9, %v1219_v3, %v983_v38  ;;  %vm7533_vm9 = vmor %vm1572_vm14, %vm1752_vm7 }
 0x18e   : > { %v1287_v11 = vsel %vm1255_vm10, %v1254_v54, %v1023_v53 }
 0x190   : > { %v1021_v0 = vpop.permute.xlu0 %1020 }
 0x191   : > { %v1285_v30 = vsel %vm1255_vm10, %v1252_v19, %v1021_v0 }
 0x192   : > { %6165 = vmatprep.mubr.msk.bf16.mxu0 %vm1315_vm11, %v1285_v30  ;;  %v1613_v30 = vld [vmem:[#allocation2 + $0xa8] sm:$0x1] }
 0x193   : > { %6166 = vmatmul.mubr.msk.bf16.gmra.mxu0 %vm1315_vm11, %v1287_v11  ;;  %v2087_v11 = vld [vmem:[#allocation2 + $0x20] sm:$0x1]  ;;  %v1614_v56 = vsel %vm7345_vm15, 0, %v1613_v30 }
 0x194   : > { %1615 = vst [vmem:[#allocation2 + $0xa8] sm:$0x1] %v1614_v56 }
 0x1af   : > { %v6139_v2 = vpop.f32.mrf.mxu0 }
 0x1b0   : > { %v1395_v21 = vadd.f32 %v6139_v2, %v7501_v20 }
 0x1b1   : > { %v1386_v41 = vpop.f32.mrf.mxu0 }
 0x1b2   : > { %v1515_v8 = vmax.f32 %v1395_v21, 0.0  ;;  %v1387_v32 = vadd.f32 %v7501_v20, %v1386_v41 }
 0x1b3   : > { %v6140_v29 = vpop.f32.mrf.mxu0 }
 0x1b4   : > { %v6010_v37 = vpack.c.bf16 %v1515_v8, %v1515_v8  ;;  %v1513_v5 = vmax.f32 %v1387_v32, 0.0  ;;  %v1398_v14 = vadd.f32 %v6140_v29, %v7501_v20 }
 0x1b5   : > { %v1389_v60 = vpop.f32.mrf.mxu0 }
 0x1b6   : > { %v1772_v27 = vshrl.u32 %v6010_v37, 16  ;;  %v6008_v43 = vpack.c.bf16 %v1513_v5, %v1513_v5  ;;  %v1516_v13 = vmax.f32 %v1398_v14, 0.0  ;;  %v1390_v47 = vadd.f32 %v7501_v20, %v1389_v60 }
 0x1b7   : > { %v1775_v46 = vshll.u32 %v6010_v37, 16 }
 0x1b8   : > { %v1774_v39 = vrot.slane %v1772_v27, 7  ;;  %v1755_v31 = vshrl.u32 %v6008_v43, 16  ;;  %v7513_v51 = vpack.c.bf16 %v1516_v13, %v1515_v8  ;;  %v6011_v36 = vpack.c.bf16 %v1516_v13, %v1516_v13  ;;  %v1610_v27 = vld [vmem:[#allocation2 + $0x9c] sm:$0x1] }
 0x1b9   : > { %v1514_v24 = vmax.f32 %v1390_v47, 0.0  ;;  %v1758_v42 = vshll.u32 %v6008_v43, 16  ;;  %v1611_v17 = vsel %vm7345_vm15, 0, %v1610_v27 }
 0x1ba   : > { %v1777_v1 = vor.u32 %v1775_v46, %v1774_v39  ;;  %v1757_v50 = vrot.slane %v1755_v31, 7  ;;  %v10171_v57 = vrot.slane %v7513_v51, 7  ;;  %v1780_v33 = vshrl.u32 %v6011_v36, 16  ;;  %1612 = vst [vmem:[#allocation2 + $0x9c] sm:$0x1] %v1611_v17 }
 0x1bb   : > { %v7522_v38 = vpack.c.bf16 %v1514_v24, %v1513_v5  ;;  %v6009_v63 = vpack.c.bf16 %v1514_v24, %v1514_v24  ;;  %v1783_v44 = vshll.u32 %v6011_v36, 16  ;;  %v1778_v54 = vrot.slane %v1774_v39, 4  ;;  %v2097_v36 = vld [vmem:[#allocation2 + $0x30] sm:$0xf] }
 0x1bc   : > { %v2084_v40 = vsel %vm7517_vm5, %v1777_v1, %v2083_v28  ;;  %v1760_v53 = vor.u32 %v1758_v42, %v1757_v50  ;;  %3071 = vrot.lane.b32.xlu1 %v10171_v57, %s6488_s25  ;;  %v1782_v45 = vrot.slane %v1780_v33, 7  ;;  %v1761_v58 = vrot.slane %v1757_v50, 4 }
 0x1bd   : > { %10438 = vst [vmem:[#allocation10_spill] sm:$0xff] %v7522_v38  ;;  %2085 = vst [vmem:[#allocation2 + $0x18] sm:$0xf] %v2084_v40  ;;  %v1763_v52 = vshrl.u32 %v6009_v63, 16  ;;  %v10172_v3 = vrot.slane %v7522_v38, 7  ;;  %v1766_v0 = vshll.u32 %v6009_v63, 16 }
 0x1be   : > { %v2077_v16 = vsel %vm7517_vm5, %v1760_v53, %v2076_v25  ;;  %v1785_v12 = vor.u32 %v1783_v44, %v1782_v45  ;;  %v1787_v23 = vrot.slane %v1782_v45, 4  ;;  %v2090_v63 = vld [vmem:[#allocation2 + $0x24] sm:$0xf] }
 0x1bf   : > { %2078 = vst [vmem:[#allocation2 + $0xc] sm:$0xf] %v2077_v16  ;;  %v1765_v7 = vrot.slane %v1763_v52, 7  ;;  %3069 = vrot.lane.b32.xlu0 %v10172_v3, %s6488_s25 }
 0x1c0   : > { %v1786_v48 = vsel %vm7533_vm9, %v1778_v54, %v1785_v12  ;;  %v2088_v9 = vsel %vm7345_vm15, %v1787_v23, %v2087_v11  ;;  %v1663_v23 = vld [vmem:[#allocation2 + $0xb0] sm:$0x1] }
 0x1c1   : > { %v1768_v2 = vor.u32 %v1766_v0, %v1765_v7  ;;  %v1770_v21 = vrot.slane %v1765_v7, 4  ;;  %2086 = vst.msk [vmem:[#allocation2 + $0x1c] sm:$0xf] %vm1561_vm12, %v1786_v48  ;;  %2089 = vst [vmem:[#allocation2 + $0x20] sm:$0x1] %v2088_v9 }
 0x1c3   : > { %v1769_v41 = vsel %vm7533_vm9, %v1761_v58, %v1768_v2  ;;  %v2081_v26 = vsel %vm7345_vm15, %v1770_v21, %v2080_v10  ;;  %v6143_v8 = vpop.f32.mrf.mxu0  ;;  %v2101_v58 = vld [vmem:[#allocation2 + $0x38] sm:$0x1] }
 0x1c4   : > { %2079 = vst.msk [vmem:[#allocation2 + $0x10] sm:$0xf] %vm1561_vm12, %v1769_v41  ;;  %2082 = vst [vmem:[#allocation2 + $0x14] sm:$0x1] %v2081_v26  ;;  %v1411_v32 = vadd.f32 %v6143_v8, %v7501_v20  ;;  %v2192_v16 = vld [vmem:[#allocation2 + $0x18] sm:$0xf] }
 0x1c5   : > { %v1402_v4 = vpop.f32.mrf.mxu0  ;;  %v1660_v41 = vld [vmem:[#allocation2 + $0xa4] sm:$0x1]  ;;  %v2094_v8 = vld [vmem:[#allocation2 + $0x2c] sm:$0x1] }
 0x1c6   : > { %v1519_v29 = vmax.f32 %v1411_v32, 0.0  ;;  %v1403_v59 = vadd.f32 %v7501_v20, %v1402_v4  ;;  %v1664_v32 = vsel %vm7357_vm1, 0, %v1663_v23 }
 0x1c7   : > { %v6144_v37 = vpop.f32.mrf.mxu0  ;;  %1665 = vst [vmem:[#allocation2 + $0xb0] sm:$0x1] %v1664_v32 }
 0x1c8   : > { %v6014_v5 = vpack.c.bf16 %v1519_v29, %v1519_v29  ;;  %v1517_v14 = vmax.f32 %v1403_v59, 0.0  ;;  %v1414_v62 = vadd.f32 %v6144_v37, %v7501_v20  ;;  %v2193_v44 = vld [vmem:[#allocation2 + $0x1c] sm:$0xf] }
 0x1c9   : > { %v1405_v60 = vpop.f32.mrf.mxu0  ;;  %v7571_v10 = vcombine.low %v2192_v16, %v2193_v44 }
 0x1ca   : > { %v1806_v43 = vshrl.u32 %v6014_v5, 16  ;;  %v6012_v13 = vpack.c.bf16 %v1517_v14, %v1517_v14  ;;  %v1520_v35 = vmax.f32 %v1414_v62, 0.0  ;;  %v1406_v47 = vadd.f32 %v7501_v20, %v1405_v60  ;;  %v1619_v62 = vld [vmem:[#allocation2 + $0xc0] sm:$0x1] }
 0x1cb   : > { %v1809_v46 = vshll.u32 %v6014_v5, 16  ;;  %10441 = vst [vmem:[#allocation17_spill] sm:$0xff] %v7571_v10  ;;  %v7585_v5 = vld [vmem:[#allocation2 + $0x20] ss:$0 sps:$4 sm:$0x11]  }
 0x1cc   : > { %v1808_v39 = vrot.slane %v1806_v43, 7  ;;  %v1789_v31 = vshrl.u32 %v6012_v13, 16  ;;  %v7558_v28 = vpack.c.bf16 %v1520_v35, %v1519_v29  ;;  %v6015_v24 = vpack.c.bf16 %v1520_v35, %v1520_v35 }
 0x1cd   : > { %v1518_v1 = vmax.f32 %v1406_v47, 0.0  ;;  %v1792_v25 = vshll.u32 %v6012_v13, 16  ;;  %v1620_v43 = vsel %vm7345_vm15, 0, %v1619_v62  ;;  %v2244_v13 = vld [vmem:[#allocation2 + $0x18] sm:$0xe] }
 0x1ce   : > { %v1811_v50 = vor.u32 %v1809_v46, %v1808_v39  ;;  %v1791_v42 = vrot.slane %v1789_v31, 7  ;;  %v10169_v33 = vrot.slane %v7558_v28, 7  ;;  %v1814_v40 = vshrl.u32 %v6015_v24, 16  ;;  %1621 = vst [vmem:[#allocation2 + $0xc0] sm:$0x1] %v1620_v43 }
 0x1cf   : > { %v7561_v53 = vpack.c.bf16 %v1518_v1, %v1517_v14  ;;  %v6013_v45 = vpack.c.bf16 %v1518_v1, %v1518_v1  ;;  %v1817_v0 = vshll.u32 %v6015_v24, 16  ;;  %v1812_v7 = vrot.slane %v1808_v39, 4  ;;  %v2191_v47 = vld [vmem:[#allocation2 + $0x10] sm:$0xf]  ;;  %v2190_v46 = vld [vmem:[#allocation2 + $0xc] sm:$0xf] }
 0x1d0   : > { %v2098_v52 = vsel %vm7517_vm5, %v1811_v50, %v2097_v36  ;;  %v1794_v54 = vor.u32 %v1792_v25, %v1791_v42  ;;  %3075 = vrot.lane.b32.xlu1 %v10169_v33, %s6488_s25  ;;  %v1816_v11 = vrot.slane %v1814_v40, 7  ;;  %v1795_v26 = vrot.slane %v1791_v42, 4 }
 0x1d1   : > { %2099 = vst [vmem:[#allocation2 + $0x30] sm:$0xf] %v2098_v52  ;;  %v1797_v30 = vshrl.u32 %v6013_v45, 16  ;;  %v10170_v12 = vrot.slane %v7561_v53, 7  ;;  %v1800_v21 = vshll.u32 %v6013_v45, 16  ;;  %v1661_v14 = vsel %vm7357_vm1, 0, %v1660_v41 }
 0x1d2   : > { %v2091_v56 = vsel %vm7517_vm5, %v1794_v54, %v2090_v63  ;;  %v1819_v48 = vor.u32 %v1817_v0, %v1816_v11  ;;  %v1821_v9 = vrot.slane %v1816_v11, 4  ;;  %1662 = vst [vmem:[#allocation2 + $0xa4] sm:$0x1] %v1661_v14  ;;  %v7600_v35 = vcombine.low %v2244_v13, %v2193_v44  ;;  %v2243_v45 = vld [vmem:[#allocation2 + $0xc] sm:$0xe] }
 0x1d3   : > { %2092 = vst [vmem:[#allocation2 + $0x24] sm:$0xf] %v2091_v56  ;;  %v1799_v2 = vrot.slane %v1797_v30, 7  ;;  %3073 = vrot.lane.b32.xlu0 %v10170_v12, %s6488_s25  ;;  %v7605_v36 = vcombine.low %v2190_v46, %v2191_v47  ;;  %v10176_v42 = vshll.u32 %v7571_v10, 16  ;;  %v7612_v52 = vcombine.low %v2243_v45, %v2191_v47  ;;  %v1616_v14 = vld [vmem:[#allocation2 + $0xb4] sm:$0x1] }
 0x1d4   : > { %2342 = vrot.lane.b32.xlu1 %v7571_v10, %s6488_s25  ;;  %v1820_v4 = vsel %vm7533_vm9, %v1812_v7, %v1819_v48  ;;  %v2102_v29 = vsel %vm7345_vm15, %v1821_v9, %v2101_v58  ;;  %10442 = vst [vmem:[#allocation8_spill] sm:$0xff] %v7600_v35  ;;  %v2111_v48 = vld [vmem:[#allocation2 + $0x48] sm:$0xf]  ;;  %v10189_v43 = vshll.u32 %v7585_v5, 16 }
 0x1d5   : > { %v1802_v59 = vor.u32 %v1800_v21, %v1799_v2  ;;  %v1804_v37 = vrot.slane %v1799_v2, 4  ;;  %2100 = vst.msk [vmem:[#allocation2 + $0x34] sm:$0xf] %vm1561_vm12, %v1820_v4  ;;  %2103 = vst [vmem:[#allocation2 + $0x38] sm:$0x1] %v2102_v29  ;;  %v2454_v30 = vrot.slane %v10176_v42, 1 }
 0x1d6   : > { %10443 = vst [vmem:[#allocation14_spill] sm:$0xff] %v7612_v52  ;;  %v10190_v21 = vshrl.u32 %v7571_v10, 16  ;;  %v2104_v4 = vld [vmem:[#allocation2 + $0x3c] sm:$0xf]  ;;  %v1669_v13 = vld [vmem:[#allocation2 + $0xc8] sm:$0x1] }
 0x1d7   : > { %v1803_v60 = vsel %vm7533_vm9, %v1795_v26, %v1802_v59  ;;  %v2095_v27 = vsel %vm7345_vm15, %v1804_v37, %v2094_v8  ;;  %2653 = vrot.lane.b32.xlu0 %v7571_v10, %s6492_s10 }
 0x1d8   : > { %2093 = vst.msk [vmem:[#allocation2 + $0x28] sm:$0xf] %vm1561_vm12, %v1803_v60  ;;  %2096 = vst [vmem:[#allocation2 + $0x2c] sm:$0x1] %v2095_v27  ;;  %3114 = vrot.lane.b32.xlu1 %v7585_v5, %s6490_s6  ;;  %v2455_v27 = vor.u32 %v2454_v30, %v10190_v21  ;;  %v2459_v30 = vrot.slane %v10189_v43, 1 }
 0x1d9   : > { %v2153_v43 = vld [vmem:[#allocation2 + $0x90] sm:$0xf] }
 0x1db   : > { %3112 = vrot.lane.b32.xlu0 %v7600_v35, %s6490_s6  ;;  %v6147_v17 = vpop.f32.mrf.mxu0 }
 0x1dc   : > { %v1427_v39 = vadd.f32 %v6147_v17, %v7501_v20  ;;  %v2197_v22 = vld [vmem:[#allocation2 + $0x34] sm:$0xf] }
 0x1dd   : > { %v1418_v31 = vpop.f32.mrf.mxu0 }
 0x1de   : > { %v1523_v24 = vmax.f32 %v1427_v39, 0.0  ;;  %v1419_v1 = vadd.f32 %v7501_v20, %v1418_v31  ;;  %v1666_v31 = vld [vmem:[#allocation2 + $0xbc] sm:$0x1] }
 0x1df   : > { %2340 = vrot.lane.b32.xlu0 %v7605_v36, %s6488_s25  ;;  %v6148_v50 = vpop.f32.mrf.mxu0 }
 0x1e0   : > { %v6018_v25 = vpack.c.bf16 %v1523_v24, %v1523_v24  ;;  %v1521_v63 = vmax.f32 %v1419_v1, 0.0  ;;  %v1430_v40 = vadd.f32 %v6148_v50, %v7501_v20  ;;  %v2115_v50 = vld [vmem:[#allocation2 + $0x50] sm:$0x1] }
 0x1e1   : > { %v1421_v44 = vpop.f32.mrf.mxu0 }
 0x1e2   : > { %v1840_v54 = vshrl.u32 %v6018_v25, 16  ;;  %v6016_v16 = vpack.c.bf16 %v1521_v63, %v1521_v63  ;;  %v1524_v11 = vmax.f32 %v1430_v40, 0.0  ;;  %v1422_v0 = vadd.f32 %v7501_v20, %v1421_v44 }
 0x1e3   : > { %3108 = vrot.lane.b32.xlu0 %v7612_v52, %s6490_s6  ;;  %v1843_v7 = vshll.u32 %v6018_v25, 16 }
 0x1e4   : > { %v1842_v23 = vrot.slane %v1840_v54, 7  ;;  %v1823_v56 = vshrl.u32 %v6016_v16, 16  ;;  %v7619_v58 = vpack.c.bf16 %v1524_v11, %v1523_v24  ;;  %v6019_v9 = vpack.c.bf16 %v1524_v11, %v1524_v11 }
 0x1e5   : > { %v1522_v2 = vmax.f32 %v1422_v0, 0.0  ;;  %v1826_v8 = vshll.u32 %v6016_v16, 16  ;;  %v1670_v54 = vsel %vm7357_vm1, 0, %v1669_v13  ;;  %v6426_v16 = vld [vmem:[%s10132_s3 + $0x8] sm:$0xff]   ;;  %v2108_v0 = vld [vmem:[#allocation2 + $0x44] sm:$0x1] }
 0x1e6   : > { %v1845_v41 = vor.u32 %v1843_v7, %v1842_v23  ;;  %v1825_v26 = vrot.slane %v1823_v56, 7  ;;  %v10167_v32 = vrot.slane %v7619_v58, 7  ;;  %v1848_v29 = vshrl.u32 %v6019_v9, 16  ;;  %1671 = vst [vmem:[#allocation2 + $0xc8] sm:$0x1] %v1670_v54  ;;  %6169 = vmatprep.subr.bf16.mxu0 %v6426_v16  ;;  %6313 = vmatprep.subr.bf16.mxu1 %v6426_v16 }
 0x1e7   : > { %v7623_v59 = vpack.c.bf16 %v1522_v2, %v1521_v63  ;;  %v6017_v37 = vpack.c.bf16 %v1522_v2, %v1522_v2  ;;  %v1851_v17 = vshll.u32 %v6019_v9, 16  ;;  %v1846_v24 = vrot.slane %v1842_v23, 4  ;;  %6170 = vmatpush3.bf16.msra.mxu0 %v6426_v16  ;;  %6315 = vmatpush3.bf16.msra.mxu1 %v6426_v16  ;;  %v2246_v13 = vld [vmem:[#allocation2 + $0x30] sm:$0xe]  ;;  %v2194_v16 = vld [vmem:[#allocation2 + $0x24] sm:$0xf] }
 0x1e8   : > { %v2112_v62 = vsel %vm7517_vm5, %v1845_v41, %v2111_v48  ;;  %v1828_v60 = vor.u32 %v1826_v8, %v1825_v26  ;;  %3079 = vrot.lane.b32.xlu1 %v10167_v32, %s6488_s25  ;;  %v1850_v47 = vrot.slane %v1848_v29, 7  ;;  %v1617_v63 = vsel %vm7345_vm15, 0, %v1616_v14  ;;  %v7658_v41 = vld [vmem:[#allocation2 + $0x14] ss:$0 sps:$4 sm:$0x11]   ;;  %v6428_v29 = vld [vmem:[%s10132_s3] sm:$0xff]  }
 0x1e9   : > { %2113 = vst [vmem:[#allocation2 + $0x48] sm:$0xf] %v2112_v62  ;;  %v1831_v39 = vshrl.u32 %v6017_v37, 16  ;;  %v10168_v46 = vrot.slane %v7623_v59, 7  ;;  %v1834_v25 = vshll.u32 %v6017_v37, 16  ;;  %v1829_v11 = vrot.slane %v1825_v26, 4  ;;  %6171 = vmatprep.subr.bf16.mxu0 %v6428_v29  ;;  %6314 = vmatprep.subr.bf16.mxu1 %v6428_v29 }
 0x1ea   : > { %v2105_v1 = vsel %vm7517_vm5, %v1828_v60, %v2104_v4  ;;  %v1853_v40 = vor.u32 %v1851_v17, %v1850_v47  ;;  %v1855_v45 = vrot.slane %v1850_v47, 4  ;;  %1618 = vst [vmem:[#allocation2 + $0xb4] sm:$0x1] %v1617_v63  ;;  %v1667_v23 = vsel %vm7357_vm1, 0, %v1666_v31  ;;  %v2196_v37 = vld [vmem:[#allocation2 + $0x30] sm:$0xf] }
 0x1eb   : > { %2106 = vst [vmem:[#allocation2 + $0x3c] sm:$0xf] %v2105_v1  ;;  %v1833_v44 = vrot.slane %v1831_v39, 7  ;;  %3077 = vrot.lane.b32.xlu0 %v10168_v46, %s6488_s25  ;;  %1668 = vst [vmem:[#allocation2 + $0xbc] sm:$0x1] %v1667_v23  ;;  %v2460_v2 = vsel %vm426_vm0, %v2455_v27, %v2459_v30  ;;  %v10181_v4 = vshll.u32 %v7605_v36, 16  ;;  %v7672_v14 = vcombine.low %v2196_v37, %v2197_v22 }
 0x1ec   : > { %2651 = vrot.lane.b32.xlu1 %v7605_v36, %s6492_s10  ;;  %v1854_v7 = vsel %vm7533_vm9, %v1846_v24, %v1853_v40  ;;  %v2116_v56 = vsel %vm7345_vm15, %v1855_v45, %v2115_v50  ;;  %6172 = vmatpush3.bf16.msra.mxu0 %v6428_v29  ;;  %v7681_v17 = vcombine.low %v2246_v13, %v2197_v22  ;;  %v10192_v39 = vshrl.u32 %v7605_v36, 16  ;;  %v7686_v50 = vld [vmem:[#allocation2 + $0x38] ss:$0 sps:$4 sm:$0x11]   ;;  %v2245_v37 = vld [vmem:[#allocation2 + $0x24] sm:$0xe] }
 0x1ed   : > { %v1836_v48 = vor.u32 %v1834_v25, %v1833_v44  ;;  %v1838_v9 = vrot.slane %v1833_v44, 4  ;;  %2114 = vst.msk [vmem:[#allocation2 + $0x4c] sm:$0xf] %vm1561_vm12, %v1854_v7  ;;  %2117 = vst [vmem:[#allocation2 + $0x50] sm:$0x1] %v2116_v56  ;;  %6316 = vmatpush3.bf16.msra.mxu1 %v6428_v29  ;;  %v2442_v60 = vrot.slane %v10181_v4, 1 }
 0x1ee   : > { %10444 = vst [vmem:[#allocation15_spill] sm:$0xff] %v7672_v14  ;;  %10445 = vst [vmem:[#allocation12_spill] sm:$0xff] %v7681_v17  ;;  %v10191_v31 = vshll.u32 %v7658_v41, 16  ;;  %v2195_v25 = vld [vmem:[#allocation2 + $0x28] sm:$0xf]  ;;  %v10173_v23 = vshll.u32 %v7672_v14, 16 }
 0x1ef   : > { %v1837_v26 = vsel %vm7533_vm9, %v1829_v11, %v1836_v48  ;;  %v2109_v8 = vsel %vm7345_vm15, %v1838_v9, %v2108_v0  ;;  %2621 = vrot.lane.b32.xlu0 %v2460_v2, %s6490_s6  ;;  %v2443_v40 = vor.u32 %v2442_v60, %v10192_v39  ;;  %v7695_v0 = vcombine.low %v2194_v16, %v2195_v25 }
 0x1f0   : > { %2107 = vst.msk [vmem:[#allocation2 + $0x40] sm:$0xf] %vm1561_vm12, %v1837_v26  ;;  %2110 = vst [vmem:[#allocation2 + $0x44] sm:$0x1] %v2109_v8  ;;  %3110 = vrot.lane.b32.xlu1 %v7658_v41, %s6490_s6  ;;  %v2447_v30 = vrot.slane %v10191_v31, 1  ;;  %v7707_v13 = vcombine.low %v2245_v37, %v2195_v25  ;;  %vm10604_vm1 = vcmask 1046528  }
 0x1f1   : > { %10446 = vst [vmem:[#allocation3_spill] sm:$0xff] %v7695_v0  ;;  %v2129_v37 = vld [vmem:[#allocation2 + $0x68] sm:$0x1]  ;;  %vm10614_vm11 = vmmov %vm10604_vm1 }
 0x1f2   : > { %v2448_v2 = vsel %vm426_vm0, %v2443_v40, %v2447_v30  ;;  %10448 = vst [vmem:[#allocation9_spill] sm:$0xff] %v7707_v13  ;;  %v2247_v3 = vld [vmem:[#allocation2 + $0x3c] sm:$0xe]  ;;  %vm10624_vm13 = vmmov %vm10604_vm1 }
 0x1f3   : > { %2657 = vrot.lane.b32.xlu0 %v7672_v14, %s6492_s10  ;;  %v6151_v62 = vpop.f32.mrf.mxu0  ;;  %vm10638_vm2 = vmmov %vm10604_vm1 }
 0x1f4   : > { %v1443_v27 = vadd.f32 %v6151_v62, %v7501_v20  ;;  %2346 = vrot.lane.b32.xlu1 %v7672_v14, %s6488_s25  ;;  %v2125_v62 = vld [vmem:[#allocation2 + $0x60] sm:$0xf]  ;;  %vm10654_vm7 = vmmov %vm10604_vm1 }
 0x1f5   : > { %v1434_v47 = vpop.f32.mrf.mxu0 }
 0x1f6   : > { %v1527_v24 = vmax.f32 %v1443_v27, 0.0  ;;  %v1435_v1 = vadd.f32 %v7501_v20, %v1434_v47  ;;  %v2478_v47 = vrot.slane %v10173_v23, 1  ;;  %v2139_v23 = vld [vmem:[#allocation2 + $0x78] sm:$0xf] }
 0x1f7   : > { %3120 = vrot.lane.b32.xlu0 %v7681_v17, %s6490_s6  ;;  %v6152_v63 = vpop.f32.mrf.mxu0 }
 0x1f8   : > { %v6022_v45 = vpack.c.bf16 %v1527_v24, %v1527_v24  ;;  %v1525_v44 = vmax.f32 %v1435_v1, 0.0  ;;  %v1446_v54 = vadd.f32 %v6152_v63, %v7501_v20  ;;  %3122 = vrot.lane.b32.xlu1 %v7686_v50, %s6490_s6 }
 0x1f9   : > { %v1437_v11 = vpop.f32.mrf.mxu0 }
 0x1fa   : > { %v1874_v7 = vshrl.u32 %v6022_v45, 16  ;;  %v6020_v56 = vpack.c.bf16 %v1525_v44, %v1525_v44  ;;  %v1528_v48 = vmax.f32 %v1446_v54, 0.0  ;;  %v1438_v9 = vadd.f32 %v7501_v20, %v1437_v11 }
 0x1fb   : > { %2344 = vrot.lane.b32.xlu0 %v7695_v0, %s6488_s25  ;;  %v1877_v26 = vshll.u32 %v6022_v45, 16  ;;  %v2118_v45 = vld [vmem:[#allocation2 + $0x54] sm:$0xf] }
 0x1fc   : > { %v1876_v22 = vrot.slane %v1874_v7, 7  ;;  %v1857_v8 = vshrl.u32 %v6020_v56, 16  ;;  %v7704_v29 = vpack.c.bf16 %v1528_v48, %v1527_v24  ;;  %2619 = vrot.lane.b32.xlu1 %v2448_v2, %s6490_s6  ;;  %v6023_v60 = vpack.c.bf16 %v1528_v48, %v1528_v48 }
 0x1fd   : > { %v1526_v27 = vmax.f32 %v1438_v9, 0.0  ;;  %v1860_v54 = vshll.u32 %v6020_v56, 16  ;;  %v10177_v7 = vshrl.u32 %v7672_v14, 16  ;;  %v10175_v56 = vshll.u32 %v7686_v50, 16 }
 0x1fe   : > { %10447 = vst [vmem:[#allocation16_spill] sm:$0xff] %v7704_v29  ;;  %v1879_v1 = vor.u32 %v1877_v26, %v1876_v22  ;;  %v1859_v63 = vrot.slane %v1857_v8, 7  ;;  %v10165_v40 = vrot.slane %v7704_v29, 7  ;;  %v1882_v16 = vshrl.u32 %v6023_v60, 16 }
 0x1ff   : > { %v7712_v24 = vpack.c.bf16 %v1526_v27, %v1525_v44  ;;  %v6021_v11 = vpack.c.bf16 %v1526_v27, %v1526_v27  ;;  %3116 = vrot.lane.b32.xlu0 %v7707_v13, %s6490_s6  ;;  %v1885_v44 = vshll.u32 %v6023_v60, 16  ;;  %v1880_v26 = vrot.slane %v1876_v22, 4 }
 0x200   : > { %v2126_v25 = vsel %vm7517_vm5, %v1879_v1, %v2125_v62  ;;  %v1862_v30 = vor.u32 %v1860_v54, %v1859_v63  ;;  %3083 = vrot.lane.b32.xlu1 %v10165_v40, %s6488_s25  ;;  %v1884_v48 = vrot.slane %v1882_v16, 7  ;;  %v2479_v62 = vor.u32 %v2478_v47, %v10177_v7  ;;  %v2122_v16 = vld [vmem:[#allocation2 + $0x5c] sm:$0x1] }
 0x201   : > { %10449 = vst [vmem:[#allocation7_spill] sm:$0xff] %v7712_v24  ;;  %2127 = vst [vmem:[#allocation2 + $0x60] sm:$0xf] %v2126_v25  ;;  %v1865_v9 = vshrl.u32 %v6021_v11, 16  ;;  %v10166_v2 = vrot.slane %v7712_v24, 7  ;;  %v1868_v40 = vshll.u32 %v6021_v11, 16 }
 0x202   : > { %v2119_v8 = vsel %vm7517_vm5, %v1862_v30, %v2118_v45  ;;  %v1887_v27 = vor.u32 %v1885_v44, %v1884_v48  ;;  %v1889_v1 = vrot.slane %v1884_v48, 4  ;;  %v1863_v60 = vrot.slane %v1859_v63, 4  ;;  %v7741_v30 = vld [vmem:[#allocation2 + $0x2c] ss:$0 sps:$4 sm:$0x11]  }
 0x203   : > { %2120 = vst [vmem:[#allocation2 + $0x54] sm:$0xf] %v2119_v8  ;;  %v1867_v54 = vrot.slane %v1865_v9, 7  ;;  %3081 = vrot.lane.b32.xlu0 %v10166_v2, %s6488_s25  ;;  %v2483_v22 = vrot.slane %v10175_v56, 1  ;;  %v2201_v48 = vld [vmem:[#allocation2 + $0x4c] sm:$0xf] }
 0x204   : > { %2655 = vrot.lane.b32.xlu1 %v7695_v0, %s6492_s10  ;;  %v1888_v47 = vsel %vm7533_vm9, %v1880_v26, %v1887_v27  ;;  %v2130_v45 = vsel %vm7345_vm15, %v1889_v1, %v2129_v37  ;;  %v10174_v26 = vshll.u32 %v7695_v0, 16  ;;  %v2248_v1 = vld [vmem:[#allocation2 + $0x48] sm:$0xe] }
 0x205   : > { %v1870_v25 = vor.u32 %v1868_v40, %v1867_v54  ;;  %v1872_v11 = vrot.slane %v1867_v54, 4  ;;  %2128 = vst.msk [vmem:[#allocation2 + $0x64] sm:$0xf] %vm1561_vm12, %v1888_v47  ;;  %2131 = vst [vmem:[#allocation2 + $0x68] sm:$0x1] %v2130_v45  ;;  %v2484_v63 = vsel %vm426_vm0, %v2479_v62, %v2483_v22  ;;  %v10178_v22 = vshll.u32 %v7741_v30, 16 }
 0x206   : > { %v2200_v40 = vld [vmem:[#allocation2 + $0x48] sm:$0xf]  ;;  %v2466_v62 = vrot.slane %v10174_v26, 1 }
 0x207   : > { %v1871_v44 = vsel %vm7533_vm9, %v1863_v60, %v1870_v25  ;;  %v2123_v9 = vsel %vm7345_vm15, %v1872_v11, %v2122_v16  ;;  %2625 = vrot.lane.b32.xlu0 %v2484_v63, %s6490_s6  ;;  %v7752_v8 = vcombine.low %v2200_v40, %v2201_v48  ;;  %v7761_v60 = vcombine.low %v2248_v1, %v2201_v48  ;;  %v7766_v25 = vld [vmem:[#allocation2 + $0x50] ss:$0 sps:$4 sm:$0x11]   ;;  %v2199_v11 = vld [vmem:[#allocation2 + $0x40] sm:$0xf] }
 0x208   : > { %2121 = vst.msk [vmem:[#allocation2 + $0x58] sm:$0xf] %vm1561_vm12, %v1871_v44  ;;  %2124 = vst [vmem:[#allocation2 + $0x5c] sm:$0x1] %v2123_v9  ;;  %3118 = vrot.lane.b32.xlu1 %v7741_v30, %s6490_s6  ;;  %v10187_v16 = vshrl.u32 %v7695_v0, 16  ;;  %v7787_v42 = vcombine.low %v2247_v3, %v2199_v11 }
 0x209   : > { %10450 = vst [vmem:[#allocation13_spill] sm:$0xff] %v7752_v8  ;;  %10451 = vst [vmem:[#allocation4_spill] sm:$0xff] %v7761_v60  ;;  %v10180_v2 = vshll.u32 %v7752_v8, 16 }
 0x20a   : > { %v2467_v44 = vor.u32 %v2466_v62, %v10187_v16  ;;  %10454 = vst [vmem:[#allocation11_spill] sm:$0xff] %v7787_v42 }
 0x20b   : > { %2661 = vrot.lane.b32.xlu0 %v7752_v8, %s6492_s10  ;;  %v6155_v37 = vpop.f32.mrf.mxu0 }
 0x20c   : > { %v1459_v27 = vadd.f32 %v6155_v37, %v7501_v20  ;;  %2350 = vrot.lane.b32.xlu1 %v7752_v8, %s6488_s25  ;;  %v2198_v37 = vld [vmem:[#allocation2 + $0x3c] sm:$0xf] }
 0x20d   : > { %v1450_v54 = vpop.f32.mrf.mxu0  ;;  %v7775_v1 = vcombine.low %v2198_v37, %v2199_v11 }
 0x20e   : > { %v1531_v47 = vmax.f32 %v1459_v27, 0.0  ;;  %v1451_v45 = vadd.f32 %v7501_v20, %v1450_v54  ;;  %v2471_v54 = vrot.slane %v10178_v22, 1 }
 0x20f   : > { %3128 = vrot.lane.b32.xlu0 %v7761_v60, %s6490_s6  ;;  %v6156_v63 = vpop.f32.mrf.mxu0  ;;  %10452 = vst [vmem:[#allocation6_spill] sm:$0xff] %v7775_v1 }
 0x210   : > { %v6026_v9 = vpack.c.bf16 %v1531_v47, %v1531_v47  ;;  %v1529_v48 = vmax.f32 %v1451_v45, 0.0  ;;  %v1462_v40 = vadd.f32 %v6156_v63, %v7501_v20  ;;  %3130 = vrot.lane.b32.xlu1 %v7766_v25, %s6490_s6  ;;  %v2472_v45 = vsel %vm426_vm0, %v2467_v44, %v2471_v54  ;;  %v2132_v44 = vld [vmem:[#allocation2 + $0x6c] sm:$0xf] }
 0x211   : > { %v1453_v27 = vpop.f32.mrf.mxu0 }
 0x212   : > { %v1908_v32 = vshrl.u32 %v6026_v9, 16  ;;  %v6024_v46 = vpack.c.bf16 %v1529_v48, %v1529_v48  ;;  %v1532_v33 = vmax.f32 %v1462_v40, 0.0  ;;  %v1454_v62 = vadd.f32 %v7501_v20, %v1453_v27 }
 0x213   : > { %2348 = vrot.lane.b32.xlu0 %v7775_v1, %s6488_s25  ;;  %v1911_v12 = vshll.u32 %v6026_v9, 16  ;;  %v2502_v40 = vrot.slane %v10180_v2, 1 }
 0x214   : > { %v1910_v63 = vrot.slane %v1908_v32, 7  ;;  %v1891_v57 = vshrl.u32 %v6024_v46, 16  ;;  %v7784_v37 = vpack.c.bf16 %v1532_v33, %v1531_v47  ;;  %2623 = vrot.lane.b32.xlu1 %v2472_v45, %s6490_s6  ;;  %v6027_v26 = vpack.c.bf16 %v1532_v33, %v1532_v33 }
 0x215   : > { %v1530_v56 = vmax.f32 %v1454_v62, 0.0  ;;  %v1894_v22 = vshll.u32 %v6024_v46, 16 }
 0x216   : > { %10453 = vst [vmem:[#allocation5_spill] sm:$0xff] %v7784_v37  ;;  %v1913_v27 = vor.u32 %v1911_v12, %v1910_v63  ;;  %v1893_v7 = vrot.slane %v1891_v57, 7  ;;  %v10179_v32 = vrot.slane %v7784_v37, 7  ;;  %v1916_v9 = vshrl.u32 %v6027_v26, 16 }
 0x217   : > { %v7792_v47 = vpack.c.bf16 %v1530_v56, %v1529_v48  ;;  %v6025_v54 = vpack.c.bf16 %v1530_v56, %v1530_v56  ;;  %3124 = vrot.lane.b32.xlu0 %v7787_v42, %s6490_s6  ;;  %v10185_v57 = vshrl.u32 %v7752_v8, 16  ;;  %v10184_v12 = vshll.u32 %v7766_v25, 16  ;;  %v2167_v42 = vld [vmem:[#allocation2 + $0xa8] sm:$0xf] }
 0x218   : > { %v2140_v3 = vsel %vm7517_vm5, %v1913_v27, %v2139_v23  ;;  %v1896_v33 = vor.u32 %v1894_v22, %v1893_v7  ;;  %3087 = vrot.lane.b32.xlu1 %v10179_v32, %s6488_s25  ;;  %v1918_v46 = vrot.slane %v1916_v9, 7  ;;  %v1919_v11 = vshll.u32 %v6027_v26, 16  ;;  %v2143_v23 = vld [vmem:[#allocation2 + $0x80] sm:$0x1]  ;;  %v2136_v9 = vld [vmem:[#allocation2 + $0x74] sm:$0x1] }
 0x219   : > { %10455 = vst [vmem:[#allocation18_spill] sm:$0xff] %v7792_v47  ;;  %2141 = vst [vmem:[#allocation2 + $0x78] sm:$0xf] %v2140_v3  ;;  %v1899_v48 = vshrl.u32 %v6025_v54, 16  ;;  %v10182_v56 = vrot.slane %v7792_v47, 7  ;;  %v1914_v62 = vrot.slane %v1910_v63, 4  ;;  %v2503_v22 = vor.u32 %v2502_v40, %v10185_v57 }
 0x21a   : > { %v2133_v45 = vsel %vm7517_vm5, %v1896_v33, %v2132_v44  ;;  %v1921_v27 = vor.u32 %v1919_v11, %v1918_v46  ;;  %v1923_v32 = vrot.slane %v1918_v46, 4  ;;  %v1902_v4 = vshll.u32 %v6025_v54, 16  ;;  %v7821_v33 = vld [vmem:[#allocation2 + $0x44] ss:$0 sps:$4 sm:$0x11]  }
 0x21b   : > { %2134 = vst [vmem:[#allocation2 + $0x6c] sm:$0xf] %v2133_v45  ;;  %v1901_v2 = vrot.slane %v1899_v48, 7  ;;  %3085 = vrot.lane.b32.xlu0 %v10182_v56, %s6488_s25  ;;  %v1897_v26 = vrot.slane %v1893_v7, 4  ;;  %v2507_v63 = vrot.slane %v10184_v12, 1 }
 0x21c   : > { %2659 = vrot.lane.b32.xlu1 %v7775_v1, %s6492_s10  ;;  %v1922_v40 = vsel %vm7533_vm9, %v1914_v62, %v1921_v27  ;;  %v2144_v44 = vsel %vm7345_vm15, %v1923_v32, %v2143_v23  ;;  %v2205_v46 = vld [vmem:[#allocation2 + $0x64] sm:$0xf]  ;;  %v10183_v32 = vshll.u32 %v7775_v1, 16 }
 0x21d   : > { %v1904_v3 = vor.u32 %v1902_v4, %v1901_v2  ;;  %v1906_v54 = vrot.slane %v1901_v2, 4  ;;  %2142 = vst.msk [vmem:[#allocation2 + $0x7c] sm:$0xf] %vm1561_vm12, %v1922_v40  ;;  %2145 = vst [vmem:[#allocation2 + $0x80] sm:$0x1] %v2144_v44  ;;  %v2508_v7 = vsel %vm426_vm0, %v2503_v22, %v2507_v63  ;;  %v10188_v63 = vshll.u32 %v7821_v33, 16 }
 0x21e   : > { %v2204_v4 = vld [vmem:[#allocation2 + $0x60] sm:$0xf]  ;;  %v2490_v45 = vrot.slane %v10183_v32, 1 }
 0x21f   : > { %v1905_v11 = vsel %vm7533_vm9, %v1897_v26, %v1904_v3  ;;  %v2137_v48 = vsel %vm7345_vm15, %v1906_v54, %v2136_v9  ;;  %2629 = vrot.lane.b32.xlu0 %v2508_v7, %s6490_s6  ;;  %v7832_v2 = vcombine.low %v2204_v4, %v2205_v46  ;;  %v2250_v22 = vld [vmem:[#allocation2 + $0x60] sm:$0xe]  ;;  %v10186_v9 = vshrl.u32 %v7775_v1, 16  ;;  %v7846_v3 = vld [vmem:[#allocation2 + $0x68] ss:$0 sps:$4 sm:$0x11]  }
 0x220   : > { %2135 = vst.msk [vmem:[#allocation2 + $0x70] sm:$0xf] %vm1561_vm12, %v1905_v11  ;;  %2138 = vst [vmem:[#allocation2 + $0x74] sm:$0x1] %v2137_v48  ;;  %3126 = vrot.lane.b32.xlu1 %v7821_v33, %s6490_s6  ;;  %v7841_v26 = vcombine.low %v2250_v22, %v2205_v46  ;;  %v2203_v54 = vld [vmem:[#allocation2 + $0x58] sm:$0xf] }
 0x221   : > { %10456 = vst [vmem:[#allocation19_spill] sm:$0xff] %v7832_v2  ;;  %v2491_v11 = vor.u32 %v2490_v45, %v10186_v9  ;;  %v10194_v56 = vshll.u32 %v7832_v2, 16 }
 0x222   : > { %10457 = vst [vmem:[#allocation20_spill] sm:$0xff] %v7841_v26 }
 0x223   : > { %2665 = vrot.lane.b32.xlu0 %v7832_v2, %s6492_s10  ;;  %v6159_v62 = vpop.f32.mrf.mxu0 }
 0x224   : > { %v1475_v23 = vadd.f32 %v6159_v62, %v7501_v20  ;;  %2354 = vrot.lane.b32.xlu1 %v7832_v2, %s6488_s25  ;;  %v2202_v62 = vld [vmem:[#allocation2 + $0x54] sm:$0xf] }
 0x225   : > { %v1466_v27 = vpop.f32.mrf.mxu0  ;;  %v7855_v22 = vcombine.low %v2202_v62, %v2203_v54 }
 0x226   : > { %v1535_v40 = vmax.f32 %v1475_v23, 0.0  ;;  %v1467_v44 = vadd.f32 %v7501_v20, %v1466_v27  ;;  %v2495_v27 = vrot.slane %v10188_v63, 1  ;;  %v2249_v63 = vld [vmem:[#allocation2 + $0x54] sm:$0xe] }
 0x227   : > { %3136 = vrot.lane.b32.xlu0 %v7841_v26, %s6490_s6  ;;  %v6160_v7 = vpop.f32.mrf.mxu0  ;;  %10458 = vst [vmem:[#allocation21_spill] sm:$0xff] %v7855_v22  ;;  %v7867_v39 = vcombine.low %v2249_v63, %v2203_v54 }
 0x228   : > { %v6030_v48 = vpack.c.bf16 %v1535_v40, %v1535_v40  ;;  %v1533_v46 = vmax.f32 %v1467_v44, 0.0  ;;  %v1478_v4 = vadd.f32 %v6160_v7, %v7501_v20  ;;  %3138 = vrot.lane.b32.xlu1 %v7846_v3, %s6490_s6  ;;  %v2496_v44 = vsel %vm426_vm0, %v2491_v11, %v2495_v27  ;;  %v7872_v11 = vpop.permute.xlu0 %2617 }
 0x229   : > { %v1469_v23 = vpop.f32.mrf.mxu0  ;;  %10460 = vst [vmem:[#allocation23_spill] sm:$0xff] %v7867_v39 }
 0x22a   : > { %v1942_v32 = vshrl.u32 %v6030_v48, 16  ;;  %v6028_v12 = vpack.c.bf16 %v1533_v46, %v1533_v46  ;;  %v1536_v57 = vmax.f32 %v1478_v4, 0.0  ;;  %v1470_v45 = vadd.f32 %v7501_v20, %v1469_v23 }
 0x22b   : > { %2352 = vrot.lane.b32.xlu0 %v7855_v22, %s6488_s25  ;;  %v1945_v9 = vshll.u32 %v6030_v48, 16  ;;  %v2526_v20 = vrot.slane %v10194_v56, 1 }
 0x22c   : > { %v1944_v7 = vrot.slane %v1942_v32, 7  ;;  %v1925_v16 = vshrl.u32 %v6028_v12, 16  ;;  %v7864_v62 = vpack.c.bf16 %v1536_v57, %v1535_v40  ;;  %2627 = vrot.lane.b32.xlu1 %v2496_v44, %s6490_s6  ;;  %v6031_v21 = vpack.c.bf16 %v1536_v57, %v1536_v57  ;;  %v2146_v40 = vld [vmem:[#allocation2 + $0x84] sm:$0xf] }
 0x22d   : > { %v1534_v31 = vmax.f32 %v1470_v45, 0.0  ;;  %v1928_v49 = vshll.u32 %v6028_v12, 16  ;;  %v10201_v57 = vshrl.u32 %v7832_v2, 16 }
 0x22e   : > { %10459 = vst [vmem:[#allocation22_spill] sm:$0xff] %v7864_v62  ;;  %v1947_v4 = vor.u32 %v1945_v9, %v1944_v7  ;;  %v1927_v23 = vrot.slane %v1925_v16, 7  ;;  %v10196_v32 = vrot.slane %v7864_v62, 7  ;;  %v1950_v48 = vshrl.u32 %v6031_v21, 16 }
 0x22f   : > { %v7874_v27 = vpack.c.bf16 %v1534_v31, %v1533_v46  ;;  %v6029_v44 = vpack.c.bf16 %v1534_v31, %v1534_v31  ;;  %3132 = vrot.lane.b32.xlu0 %v7867_v39, %s6490_s6  ;;  %v10200_v16 = vshll.u32 %v7846_v3, 16  ;;  %v1953_v54 = vshll.u32 %v6031_v21, 16  ;;  %v2150_v21 = vld [vmem:[#allocation2 + $0x8c] sm:$0x1] }
 0x230   : > { %v2154_v63 = vsel %vm7517_vm5, %v1947_v4, %v2153_v43  ;;  %v1930_v9 = vor.u32 %v1928_v49, %v1927_v23  ;;  %3091 = vrot.lane.b32.xlu1 %v10196_v32, %s6488_s25  ;;  %v1952_v12 = vrot.slane %v1950_v48, 7  ;;  %v2527_v31 = vor.u32 %v2526_v20, %v10201_v57 }
 0x231   : > { %10461 = vst [vmem:[#allocation24_spill] sm:$0xff] %v7874_v27  ;;  %2155 = vst [vmem:[#allocation2 + $0x90] sm:$0xf] %v2154_v63  ;;  %v1933_v46 = vshrl.u32 %v6029_v44, 16  ;;  %v1948_v45 = vrot.slane %v1944_v7, 4  ;;  %v10198_v49 = vrot.slane %v7874_v27, 7 }
 0x232   : > { %v2147_v56 = vsel %vm7517_vm5, %v1930_v9, %v2146_v40  ;;  %v10199_v43 = vshll.u32 %v7855_v22, 16  ;;  %v1955_v4 = vor.u32 %v1953_v54, %v1952_v12  ;;  %v1957_v32 = vrot.slane %v1952_v12, 4  ;;  %v7902_v40 = vpop.permute.xlu0 %2649  ;;  %v7904_v9 = vld [vmem:[#allocation2 + $0x5c] ss:$0 sps:$4 sm:$0x11]  }
 0x233   : > { %2148 = vst [vmem:[#allocation2 + $0x84] sm:$0xf] %v2147_v56  ;;  %v1935_v6 = vrot.slane %v1933_v46, 7  ;;  %v1936_v63 = vshll.u32 %v6029_v44, 16  ;;  %v1931_v48 = vrot.slane %v1927_v23, 4  ;;  %3089 = vrot.lane.b32.xlu0 %v10198_v49, %s6488_s25  ;;  %v2531_v7 = vrot.slane %v10200_v16, 1 }
 0x234   : > { %2663 = vrot.lane.b32.xlu1 %v7855_v22, %s6492_s10  ;;  %v1956_v20 = vsel %vm7533_vm9, %v1948_v45, %v1955_v4  ;;  %v2158_v56 = vsel %vm7345_vm15, %v1957_v32, %v2157_v34  ;;  %v7912_v45 = vld [vmem:[#allocation2 + $0x7c] sm:$0xf]  ;;  %v2514_v34 = vrot.slane %v10199_v43, 1  ;;  %v10203_v32 = vshrl.u32 %v7855_v22, 16  ;;  %v7948_v43 = vpop.permute.xlu1 %3106  ;;  %v2164_v27 = vld [vmem:[#allocation2 + $0xa4] sm:$0x1] }
 0x235   : > { %v1938_v23 = vor.u32 %v1936_v63, %v1935_v6  ;;  %v1940_v44 = vrot.slane %v1935_v6, 4  ;;  %2156 = vst.msk [vmem:[#allocation2 + $0x94] sm:$0xf] %vm1561_vm12, %v1956_v20  ;;  %2159 = vst [vmem:[#allocation2 + $0x98] sm:$0x1] %v2158_v56  ;;  %v2532_v46 = vsel %vm426_vm0, %v2527_v31, %v2531_v7  ;;  %v10202_v4 = vshll.u32 %v7904_v9, 16 }
 0x236   : > { %v2208_v6 = vld [vmem:[#allocation2 + $0x78] sm:$0xf]  ;;  %v7925_v63 = vpop.permute.xlu0 %3104  ;;  %v2515_v7 = vor.u32 %v2514_v34, %v10203_v32  ;;  %v7936_v20 = vld [vmem:[%s10131_s2] ss:$0 sm:$0xff]  ;;  %10465 = vst [vmem:[#allocation28_spill] sm:$0xff] %v7948_v43 }
 0x237   : > { %v1939_v12 = vsel %vm7533_vm9, %v1931_v48, %v1938_v23  ;;  %v2151_v54 = vsel %vm7345_vm15, %v1940_v44, %v2150_v21  ;;  %2633 = vrot.lane.b32.xlu0 %v2532_v46, %s6490_s6  ;;  %v7923_v31 = vcombine.low %v2208_v6, %v7912_v45  ;;  %10463 = vst [vmem:[#allocation26_spill] sm:$0xff] %v7925_v63  ;;  %v7927_v21 = vld [vmem:[#allocation2 + $0x70] sm:$0xf]  ;;  %v2206_v44 = vld [vmem:[#allocation2 + $0x6c] sm:$0xf] }
 0x238   : > { %2149 = vst.msk [vmem:[#allocation2 + $0x88] sm:$0xf] %vm1561_vm12, %v1939_v12  ;;  %2152 = vst [vmem:[#allocation2 + $0x8c] sm:$0x1] %v2151_v54  ;;  %3134 = vrot.lane.b32.xlu1 %v7904_v9, %s6490_s6  ;;  %v2519_v12 = vrot.slane %v10202_v4, 1  ;;  %v7945_v34 = vcombine.low %v2206_v44, %v7927_v21  ;;  %v7965_v43 = vpop.permute.xlu1 %3071 }
 0x239   : > { %10462 = vst [vmem:[#allocation25_spill] sm:$0xff] %v7923_v31  ;;  %v10227_v35 = vshrl.u32 %v7923_v31, 16  ;;  %10469 = vst [vmem:[#allocation32_spill] sm:$0xff] %v7965_v43  ;;  %v2171_v43 = vld [vmem:[#allocation2 + $0xb0] sm:$0x1] }
 0x23a   : > { %10464 = vst [vmem:[#allocation27_spill] sm:$0xff] %v7945_v34  ;;  %v2520_v49 = vsel %vm426_vm0, %v2515_v7, %v2519_v12  ;;  %v7958_v12 = vld [vmem:[#allocation2 + $0x80] ss:$0 sps:$4 sm:$0x11]  }
 0x23b   : > { %v6163_v48 = vpop.f32.mrf.mxu0  ;;  %2669 = vrot.lane.b32.xlu0 %v7923_v31, %s6492_s10  ;;  %10467 = vst [vmem:[#allocation30_spill] sm:$0xff] %v7958_v12 }
 0x23c   : > { %v1491_v56 = vadd.f32 %v7936_v20, %v6163_v48  ;;  %2358 = vrot.lane.b32.xlu1 %v7923_v31, %s6488_s25 }
 0x23d   : > { %v1482_v23 = vpop.f32.mrf.mxu0 }
 0x23e   : > { %v1539_v54 = vmax.f32 %v1491_v56, 0.0  ;;  %v1483_v46 = vadd.f32 %v7936_v20, %v1482_v23  ;;  %v10222_v56 = vshll.u32 %v7923_v31, 16  ;;  %v7955_v23 = vpop.permute.xlu0 %3069  ;;  %v2185_v31 = vld [vmem:[#allocation2 + $0xc8] sm:$0x1] }
 0x23f   : > { %v6164_v6 = vpop.f32.mrf.mxu0  ;;  %2356 = vrot.lane.b32.xlu0 %v7945_v34, %s6488_s25  ;;  %10466 = vst [vmem:[#allocation29_spill] sm:$0xff] %v7955_v23 }
 0x240   : > { %v6034_v48 = vpack.c.bf16 %v1539_v54, %v1539_v54  ;;  %v1537_v16 = vmax.f32 %v1483_v46, 0.0  ;;  %v1494_v57 = vadd.f32 %v7936_v20, %v6164_v6  ;;  %2631 = vrot.lane.b32.xlu1 %v2520_v49, %s6490_s6  ;;  %v2550_v6 = vrot.slane %v10222_v56, 1 }
 0x241   : > { %v1485_v44 = vpop.f32.mrf.mxu0 }
 0x242   : > { %v1976_v4 = vshrl.u32 %v6034_v48, 16  ;;  %v6032_v32 = vpack.c.bf16 %v1537_v16, %v1537_v16  ;;  %v1540_v26 = vmax.f32 %v1494_v57, 0.0  ;;  %v1486_v7 = vadd.f32 %v7936_v20, %v1485_v44 }
 0x243   : > { %v1979_v39 = vshll.u32 %v6034_v48, 16 }
 0x244   : > { %v1978_v46 = vrot.slane %v1976_v4, 7  ;;  %v1959_v60 = vshrl.u32 %v6032_v32, 16  ;;  %v6035_v49 = vpack.c.bf16 %v1540_v26, %v1540_v26  ;;  %v1538_v17 = vmax.f32 %v1486_v7, 0.0  ;;  %v2160_v4 = vld [vmem:[#allocation2 + $0x9c] sm:$0xf] }
 0x245   : > { %v7962_v13 = vpop.permute.xlu0 %3073  ;;  %v1962_v44 = vshll.u32 %v6032_v32, 16  ;;  %v7967_v52 = vpack.c.bf16 %v1540_v26, %v1539_v54  ;;  %v10230_v54 = vshll.u32 %v7945_v34, 16 }
 0x246   : > { %10468 = vst [vmem:[#allocation31_spill] sm:$0xff] %v7962_v13  ;;  %v1981_v57 = vor.u32 %v1979_v39, %v1978_v46  ;;  %v1961_v63 = vrot.slane %v1959_v60, 7  ;;  %v1984_v48 = vshrl.u32 %v6035_v49, 16  ;;  %v7969_v23 = vpack.c.bf16 %v1538_v17, %v1537_v16 }
 0x247   : > { %10470 = vst [vmem:[#allocation33_spill] sm:$0xff] %v7967_v52  ;;  %v6033_v62 = vpack.c.bf16 %v1538_v17, %v1538_v17  ;;  %v2551_v13 = vor.u32 %v2550_v6, %v10227_v35  ;;  %v1987_v60 = vshll.u32 %v6035_v49, 16  ;;  %v1982_v16 = vrot.slane %v1978_v46, 4 }
 0x248   : > { %10471 = vst [vmem:[#allocation34_spill] sm:$0xff] %v7969_v23  ;;  %v2168_v56 = vsel %vm7517_vm5, %v1981_v57, %v2167_v42  ;;  %v1964_v7 = vor.u32 %v1962_v44, %v1961_v63  ;;  %v1986_v39 = vrot.slane %v1984_v48, 7  ;;  %v7981_v42 = vpop.permute.xlu1 %3075  ;;  %v10228_v57 = vrot.slane %v7967_v52, 7 }
 0x249   : > { %2169 = vst [vmem:[#allocation2 + $0xa8] sm:$0xf] %v2168_v56  ;;  %v1967_v32 = vshrl.u32 %v6033_v62, 16  ;;  %v7976_v26 = vpop.permute.xlu0 %2653  ;;  %10472 = vst [vmem:[#allocation35_spill] sm:$0xff] %v7981_v42  ;;  %v10229_v6 = vrot.slane %v7969_v23, 7  ;;  %v1970_v48 = vshll.u32 %v6033_v62, 16 }
 0x24a   : > { %v2161_v17 = vsel %vm7517_vm5, %v1964_v7, %v2160_v4  ;;  %v1989_v56 = vor.u32 %v1987_v60, %v1986_v39  ;;  %v1991_v44 = vrot.slane %v1986_v39, 4  ;;  %v1965_v35 = vrot.slane %v1961_v63, 4  ;;  %3095 = vrot.lane.b32.xlu1 %v10228_v57, %s6488_s25 }
 0x24b   : > { %2162 = vst [vmem:[#allocation2 + $0x9c] sm:$0xf] %v2161_v17  ;;  %v1969_v49 = vrot.slane %v1967_v32, 7  ;;  %3093 = vrot.lane.b32.xlu0 %v10229_v6, %s6488_s25  ;;  %v10473_v46 = vshll.u32 %v7958_v12, 16 }
 0x24c   : > { %v1990_v7 = vsel %vm7533_vm9, %v1982_v16, %v1989_v56  ;;  %v2172_v39 = vsel %vm7345_vm15, %v1991_v44, %v2171_v43  ;;  %v7999_v32 = vld [vmem:[#allocation2 + $0x74] ss:$0 sps:$4 sm:$0x11]   ;;  %v2538_v43 = vrot.slane %v10230_v54, 1  ;;  %v8012_v44 = vpop.permute.xlu1 %2342 }
 0x24d   : > { %v2555_v4 = vrot.slane %v10473_v46, 1  ;;  %v1972_v62 = vor.u32 %v1970_v48, %v1969_v49  ;;  %v1974_v63 = vrot.slane %v1969_v49, 4  ;;  %v7997_v60 = vpop.permute.xlu0 %3112  ;;  %2170 = vst.msk [vmem:[#allocation2 + $0xac] sm:$0xf] %vm1561_vm12, %v1990_v7  ;;  %2173 = vst [vmem:[#allocation2 + $0xb0] sm:$0x1] %v2172_v39 }
 0x24e   : > { %10474 = vst [vmem:[#allocation36_spill] sm:$0xff] %v7997_v60  ;;  %v8007_v56 = vld [vmem:[#allocation2 + $0x94] sm:$0xf]  ;;  %2667 = vrot.lane.b32.xlu1 %v7945_v34, %s6492_s10 }
 0x24f   : > { %v1973_v17 = vsel %vm7533_vm9, %v1965_v35, %v1972_v62  ;;  %v2165_v46 = vsel %vm7345_vm15, %v1974_v63, %v2164_v27  ;;  %v2556_v16 = vsel %vm426_vm0, %v2551_v13, %v2555_v4  ;;  %10475 = vst [vmem:[#allocation37_spill] sm:$0xff] %v8007_v56  ;;  %v2212_v35 = vld [vmem:[#allocation2 + $0x90] sm:$0xf]  ;;  %v10232_v27 = vshrl.u32 %v7945_v34, 16  ;;  %v8028_v63 = vld [vmem:[#allocation2 + $0x88] sm:$0xf] }
 0x250   : > { %2163 = vst.msk [vmem:[#allocation2 + $0xa0] sm:$0xf] %vm1561_vm12, %v1973_v17  ;;  %2166 = vst [vmem:[#allocation2 + $0xa4] sm:$0x1] %v2165_v46  ;;  %2637 = vrot.lane.b32.xlu0 %v2556_v16, %s6490_s6  ;;  %v10231_v13 = vshll.u32 %v7999_v32, 16  ;;  %v8020_v48 = vcombine.low %v2212_v35, %v8007_v56  ;;  %v8040_v35 = vpop.permute.xlu1 %3114 }
 0x251   : > { %v2341_v49 = vpop.permute.xlu0 %2340  ;;  %v2539_v62 = vor.u32 %v2538_v43, %v10232_v27  ;;  %10477 = vst [vmem:[#allocation39_spill] sm:$0xff] %v8028_v63  ;;  %v2210_v43 = vld [vmem:[#allocation2 + $0x84] sm:$0xf]  ;;  %10478 = vst [vmem:[#allocation40_spill] sm:$0xff] %v8040_v35  ;;  %v2181_v35 = vld [vmem:[#allocation2 + $0xc0] sm:$0xf] }
 0x252   : > { %10476 = vst [vmem:[#allocation38_spill] sm:$0xff] %v8020_v48  ;;  %v2683_v4 = vsel %vm1057_vm4, %v7522_v38, %v2341_v49  ;;  %2362 = vrot.lane.b32.xlu1 %v8020_v48, %s6488_s25  ;;  %v8044_v57 = vcombine.low %v2210_v43, %v8028_v63  ;;  %v2216_v29 = vld [vmem:[#allocation2 + $0xa8] sm:$0xf] }
 0x253   : > { %v2730_v7 = vsel %vm1123_vm6, %v2683_v4, %v7872_v11  ;;  %v6167_v39 = vpop.f32.mrf.mxu0  ;;  %v2543_v11 = vrot.slane %v10231_v13, 1 }
 0x254   : > { %2673 = vrot.lane.b32.xlu0 %v8020_v48, %s6492_s10  ;;  %v1507_v17 = vadd.f32 %v7936_v20, %v6167_v39  ;;  %v2762_v46 = vsel %vm1189_vm8, %v2730_v7, %v7902_v40  ;;  %10479 = vst [vmem:[#allocation41_spill] sm:$0xff] %v8044_v57  ;;  %v10269_v19 = vshrl.u32 %v8044_v57, 16 }
 0x255   : > { %6173 = vmatprep.mubr.msk.bf16.mxu0 %vm1255_vm10, %v2762_v46  ;;  %v1498_v16 = vpop.f32.mrf.mxu0  ;;  %v2544_v39 = vsel %vm426_vm0, %v2539_v62, %v2543_v11  ;;  %v10249_v46 = vshll.u32 %v8020_v48, 16  ;;  %v8057_v11 = vld [vmem:[#allocation2 + $0x98] ss:$0 sps:$4 sm:$0x11]  }
 0x256   : > { %v1543_v49 = vmax.f32 %v1507_v17, 0.0  ;;  %v1499_v4 = vadd.f32 %v7936_v20, %v1498_v16  ;;  %2635 = vrot.lane.b32.xlu1 %v2544_v39, %s6490_s6  ;;  %v8052_v17 = vpop.permute.xlu0 %3108 }
 0x257   : > { %v6168_v6 = vpop.f32.mrf.mxu0  ;;  %10480 = vst [vmem:[#allocation42_spill] sm:$0xff] %v8052_v17 }
 0x258   : > { %v6038_v54 = vpack.c.bf16 %v1543_v49, %v1543_v49  ;;  %v1541_v40 = vmax.f32 %v1499_v4, 0.0  ;;  %2360 = vrot.lane.b32.xlu0 %v8044_v57, %s6488_s25  ;;  %v1510_v7 = vadd.f32 %v7936_v20, %v6168_v6  ;;  %v2574_v6 = vrot.slane %v10249_v46, 1 }
 0x259   : > { %v1501_v16 = vpop.f32.mrf.mxu0 }
 0x25a   : > { %v2010_v13 = vshrl.u32 %v6038_v54, 16  ;;  %v6036_v43 = vpack.c.bf16 %v1541_v40, %v1541_v40  ;;  %v1544_v27 = vmax.f32 %v1510_v7, 0.0  ;;  %v8054_v42 = vpop.permute.xlu1 %3079  ;;  %v1502_v62 = vadd.f32 %v7936_v20, %v1501_v16 }
 0x25b   : > { %10481 = vst [vmem:[#allocation43_spill] sm:$0xff] %v8054_v42  ;;  %v2013_v39 = vshll.u32 %v6038_v54, 16  ;;  %v10258_v20 = vshrl.u32 %v8020_v48, 16 }
 0x25c   : > { %v2012_v4 = vrot.slane %v2010_v13, 7  ;;  %v1993_v60 = vshrl.u32 %v6036_v43, 16  ;;  %v8061_v52 = vpack.c.bf16 %v1544_v27, %v1543_v49  ;;  %v6039_v17 = vpack.c.bf16 %v1544_v27, %v1544_v27  ;;  %v2174_v13 = vld [vmem:[#allocation2 + $0xb4] sm:$0xf]  ;;  %v8071_v49 = vld [vmem:[#allocation2 + $0xac] sm:$0xf] }
 0x25d   : > { %v1542_v23 = vmax.f32 %v1502_v62, 0.0  ;;  %v8063_v38 = vpop.permute.xlu0 %3077  ;;  %v1996_v42 = vshll.u32 %v6036_v43, 16  ;;  %v10267_v43 = vshll.u32 %v8044_v57, 16 }
 0x25e   : > { %10482 = vst [vmem:[#allocation44_spill] sm:$0xff] %v8063_v38  ;;  %v2015_v7 = vor.u32 %v2013_v39, %v2012_v4  ;;  %v1995_v37 = vrot.slane %v1993_v60, 7  ;;  %v8065_v56 = vpop.permute.xlu1 %2651  ;;  %v2018_v54 = vshrl.u32 %v6039_v17, 16  ;;  %v2575_v60 = vor.u32 %v2574_v6, %v10258_v20  ;;  %v2178_v20 = vld [vmem:[#allocation2 + $0xbc] sm:$0x1] }
 0x25f   : > { %v8068_v16 = vpack.c.bf16 %v1542_v23, %v1541_v40  ;;  %v6037_v47 = vpack.c.bf16 %v1542_v23, %v1542_v23  ;;  %v2021_v38 = vshll.u32 %v6039_v17, 16  ;;  %v10259_v40 = vrot.slane %v8061_v52, 7 }
 0x260   : > { %v2182_v27 = vsel %vm7517_vm5, %v2015_v7, %v2181_v35  ;;  %v1998_v62 = vor.u32 %v1996_v42, %v1995_v37  ;;  %v2020_v39 = vrot.slane %v2018_v54, 7  ;;  %v2016_v46 = vrot.slane %v2012_v4, 4 }
 0x261   : > { %2183 = vst [vmem:[#allocation2 + $0xc0] sm:$0xf] %v2182_v27  ;;  %v2001_v12 = vshrl.u32 %v6037_v47, 16  ;;  %v2622_v23 = vpop.permute.xlu0 %2621  ;;  %v10260_v42 = vrot.slane %v8068_v16, 7  ;;  %v8085_v6 = vcombine.low %v2216_v29, %v8071_v49  ;;  %v2004_v27 = vshll.u32 %v6037_v47, 16  ;;  %3099 = vrot.lane.b32.xlu1 %v10259_v40, %s6488_s25 }
 0x262   : > { %v2175_v63 = vsel %vm7517_vm5, %v1998_v62, %v2174_v13  ;;  %v8081_v35 = vpop.permute.xlu1 %3110  ;;  %v2023_v7 = vor.u32 %v2021_v38, %v2020_v39  ;;  %v2025_v17 = vrot.slane %v2020_v39, 4  ;;  %v1999_v15 = vrot.slane %v1995_v37, 4  ;;  %v8095_v29 = vld [vmem:[#allocation2 + $0x8c] ss:$0 sps:$4 sm:$0x11]   ;;  %vm10645_vm5 = vmmov %vm10604_vm1 }
 0x263   : > { %10483 = vst [vmem:[#allocation45_spill] sm:$0xff] %v8085_v6  ;;  %2176 = vst [vmem:[#allocation2 + $0xb4] sm:$0xf] %v2175_v63  ;;  %v2003_v54 = vrot.slane %v2001_v12, 7  ;;  %3097 = vrot.lane.b32.xlu0 %v10260_v42, %s6488_s25  ;;  %v10484_v4 = vshll.u32 %v8057_v11, 16  ;;  %v2562_v39 = vrot.slane %v10267_v43, 1 }
 0x264   : > { %v2024_v38 = vsel %vm7533_vm9, %v2016_v46, %v2023_v7  ;;  %v2186_v47 = vsel %vm7345_vm15, %v2025_v17, %v2185_v31  ;;  %v8115_v7 = vld [vmem:[#allocation2 + $0xa0] sm:$0xf]  ;;  %v10261_v17 = vshll.u32 %v8085_v6, 16  ;;  %v10493_v43 = vshrl.u32 %v7310_v61, 16 }
 0x265   : > { %v2579_v13 = vrot.slane %v10484_v4, 1  ;;  %v2006_v12 = vor.u32 %v2004_v27, %v2003_v54  ;;  %v2008_v63 = vrot.slane %v2003_v54, 4  ;;  %v8101_v62 = vpop.permute.xlu0 %2657  ;;  %2184 = vst.msk [vmem:[#allocation2 + $0xc4] sm:$0xf] %vm1561_vm12, %v2024_v38  ;;  %2187 = vst [vmem:[#allocation2 + $0xc8] sm:$0x1] %v2186_v47  ;;  %2671 = vrot.lane.b32.xlu1 %v8044_v57, %s6492_s10 }
 0x266   : > { %v8104_v37 = vpop.permute.xlu1 %2346  ;;  %v10262_v54 = vshll.u32 %v8095_v29, 16  ;;  %v8124_v27 = vld [vmem:[#allocation2 + $0xb0] ss:$0 sps:$4 sm:$0x11]   ;;  %v2598_v38 = vrot.slane %v10261_v17, 1 }
 0x267   : > { %v2007_v4 = vsel %vm7533_vm9, %v1999_v15, %v2006_v12  ;;  %v2179_v46 = vsel %vm7345_vm15, %v2008_v63, %v2178_v20  ;;  %v2580_v31 = vsel %vm426_vm0, %v2575_v60, %v2579_v13  ;;  %v2214_v20 = vld [vmem:[#allocation2 + $0x9c] sm:$0xf]  ;;  %v2563_v60 = vor.u32 %v2562_v39, %v10269_v19  ;;  %vm10631_vm15 = vmmov %vm10604_vm1 }
 0x268   : > { %2177 = vst.msk [vmem:[#allocation2 + $0xb8] sm:$0xf] %vm1561_vm12, %v2007_v4  ;;  %2180 = vst [vmem:[#allocation2 + $0xbc] sm:$0x1] %v2179_v46  ;;  %2641 = vrot.lane.b32.xlu0 %v2580_v31, %s6490_s6  ;;  %v8131_v13 = vcombine.low %v2214_v20, %v8115_v7  ;;  %v2567_v47 = vrot.slane %v10262_v54, 1  ;;  %v10264_v63 = vshrl.u32 %v8085_v6, 16  ;;  %v2686_v4 = vsel %vm1057_vm4, %v7513_v51, %v8012_v44 }
 0x269   : > { %v8122_v55 = vpop.permute.xlu0 %3120  ;;  %2366 = vrot.lane.b32.xlu1 %v8085_v6, %s6488_s25  ;;  %v10263_v39 = vshll.u32 %v8124_v27, 16  ;;  %vm10618_vm12 = vmmov %vm10604_vm1 }
 0x26a   : > { %10485 = vst [vmem:[#allocation46_spill] sm:$0xff] %v8122_v55  ;;  %v8126_v15 = vpop.permute.xlu1 %3122  ;;  %10487 = vst [vmem:[#allocation48_spill] sm:$0xff] %v8131_v13  ;;  %v2568_v46 = vsel %vm426_vm0, %v2563_v60, %v2567_v47  ;;  %v10265_v40 = vshll.u32 %v8131_v13, 16  ;;  %v2599_v54 = vor.u32 %v2598_v38, %v10264_v63  ;;  %v8159_v60 = vld [vmem:[#allocation2 + $0xa4] ss:$0 sps:$4 sm:$0x11]  }
 0x26b   : > { %10486 = vst [vmem:[#allocation47_spill] sm:$0xff] %v8126_v15  ;;  %vm10658_vm9 = vmmov %vm10604_vm1 }
 0x26c   : > { %2677 = vrot.lane.b32.xlu0 %v8085_v6, %s6492_s10 }
 0x26d   : > { %v2345_v12 = vpop.permute.xlu0 %2344  ;;  %2639 = vrot.lane.b32.xlu1 %v2568_v46, %s6490_s6 }
 0x26e   : > { %v2689_v31 = vsel %vm1057_vm4, %v7561_v53, %v2345_v12  ;;  %v2620_v20 = vpop.permute.xlu1 %2619 }
 0x26f   : > { %v2734_v42 = vsel %vm1123_vm6, %v2689_v31, %v2622_v23  ;;  %v2732_v17 = vsel %vm1123_vm6, %v2686_v4, %v2620_v20  ;;  %v2603_v23 = vrot.slane %v10263_v39, 1  ;;  %v8176_v46 = vld [vmem:[#allocation2 + $0xb8] sm:$0xf]  ;;  %v2220_v31 = vld [vmem:[#allocation2 + $0xc0] sm:$0xf] }
 0x270   : > { %v2764_v44 = vsel %vm1189_vm8, %v2732_v17, %v8065_v56  ;;  %2364 = vrot.lane.b32.xlu0 %v8131_v13, %s6488_s25  ;;  %v2766_v12 = vsel %vm1189_vm8, %v2734_v42, %v7976_v26  ;;  %v2221_v56 = vld [vmem:[#allocation2 + $0xc4] sm:$0xf]  ;;  %v2586_v17 = vrot.slane %v10265_v40, 1  ;;  %v10266_v26 = vshrl.u32 %v8131_v13, 16 }
 0x271   : > { %v8161_v47 = vpop.permute.xlu0 %3116  ;;  %6174 = vmatmul.mubr.msk.bf16.vlgmr.msra.gmra.mxu0 %vm1255_vm10, %v2764_v44  ;;  %2675 = vrot.lane.b32.xlu1 %v8131_v13, %s6492_s10  ;;  %v2604_v38 = vsel %vm426_vm0, %v2599_v54, %v2603_v23  ;;  %v10268_v42 = vshll.u32 %v8159_v60, 16  ;;  %v8181_v20 = vcombine.low %v2220_v31, %v2221_v56 }
 0x272   : > { %v8168_v4 = vpop.permute.xlu1 %3083  ;;  %6177 = vmatprep.mubr.msk.bf16.mxu0 %vm1255_vm10, %v2766_v12  ;;  %v2218_v12 = vld [vmem:[#allocation2 + $0xb4] sm:$0xf]  ;;  %v2587_v54 = vor.u32 %v2586_v17, %v10266_v26  ;;  %v2252_v26 = vld [vmem:[#allocation2 + $0x78] sm:$0xe] }
 0x273   : > { %10488 = vst [vmem:[#allocation49_spill] sm:$0xff] %v8168_v4  ;;  %10489 = vst [vmem:[#allocation50_spill] sm:$0xff] %v8181_v20  ;;  %v8186_v63 = vcombine.low %v2218_v12, %v8176_v46  ;;  %v2591_v23 = vrot.slane %v10268_v42, 1  ;;  %v3168_v42 = vrot.slane %v10493_v43, 7  ;;  %v10500_v4 = vshrl.u32 %v7605_v36, 16 }
 0x274   : > { %2645 = vrot.lane.b32.xlu0 %v2604_v38, %s6490_s6  ;;  %v2251_v38 = vld [vmem:[#allocation2 + $0x6c] sm:$0xe] }
 0x275   : > { %v8183_v44 = vpop.permute.xlu0 %3081  ;;  %10491 = vst [vmem:[#allocation52_spill] sm:$0xff] %v8186_v63  ;;  %2370 = vrot.lane.b32.xlu1 %v8181_v20, %s6488_s25  ;;  %v2592_v31 = vsel %vm426_vm0, %v2587_v54, %v2591_v23  ;;  %v8200_v12 = vcombine.low %v2251_v38, %v7927_v21  ;;  %v8212_v54 = vcombine.low %v2252_v26, %v7912_v45  ;;  %v10279_v23 = vshll.u32 %v8186_v63, 16  ;;  %v8219_v21 = vld [vmem:[#allocation2 + $0xbc] ss:$0 sps:$4 sm:$0x11]  }
 0x276   : > { %10490 = vst [vmem:[#allocation51_spill] sm:$0xff] %v8183_v44  ;;  %v2656_v39 = vpop.permute.xlu1 %2655  ;;  %10495 = vst [vmem:[#allocation55_spill] sm:$0xff] %v8219_v21  ;;  %v8224_v38 = vld [vmem:[%s10132_s3 + $0x18] sm:$0xff]   ;;  %v10497_v45 = vshll.u32 %v7318_v18, 16  ;;  %v10282_v18 = vshrl.u32 %v8186_v63, 16 }
 0x277   : > { %10492 = vst [vmem:[#allocation53_spill] sm:$0xff] %v8200_v12  ;;  %10494 = vst [vmem:[#allocation54_spill] sm:$0xff] %v8212_v54  ;;  %v2610_v20 = vrot.slane %v10279_v23, 1  ;;  %6205 = vmatprep.subr.bf16.mxu1 %v8224_v38  ;;  %v2692_v23 = vsel %vm1057_vm4, %v7558_v28, %v8104_v37  ;;  %v10503_v37 = vshrl.u32 %v7571_v10, 16 }
 0x278   : > { %2368 = vrot.lane.b32.xlu0 %v8186_v63, %s6488_s25  ;;  %v3170_v26 = vsel %vm1572_vm14, %v3168_v42, %v10497_v45 }
 0x279   : > { %v2626_v56 = vpop.permute.xlu0 %2625  ;;  %2643 = vrot.lane.b32.xlu1 %v2592_v31, %s6490_s6  ;;  %v8263_v55 = vrot.slane %v10503_v37, 7  ;;  %v10514_v37 = vshrl.u32 %v7672_v14, 16 }
 0x27a   : > { %v8197_v40 = vpop.permute.xlu1 %3118 }
 0x27b   : > { %10504 = vst [vmem:[#allocation59_spill] sm:$0xff] %v8263_v55 }
 0x27c   : > { %3140 = vrot.lane.b32.xlu0 %v8200_v12, %s6490_s6 }
 0x27d   : > { %v8205_v17 = vpop.permute.xlu0 %2661  ;;  %3142 = vrot.lane.b32.xlu1 %v7999_v32, %s6490_s6 }
 0x27e   : > { %v8209_v19 = vpop.permute.xlu1 %2350 }
 0x280   : > { %3144 = vrot.lane.b32.xlu0 %v8212_v54, %s6490_s6  ;;  %v10499_v54 = vshll.u32 %v7310_v61, 16 }
 0x281   : > { %v8226_v43 = vpop.permute.xlu0 %3128  ;;  %2679 = vrot.lane.b32.xlu1 %v8186_v63, %s6492_s10 }
 0x282   : > { %10496 = vst [vmem:[#allocation56_spill] sm:$0xff] %v8226_v43  ;;  %v8231_v31 = vpop.permute.xlu1 %3130  ;;  %v3169_v12 = vor.u32 %v3168_v42, %v10499_v54  ;;  %v8242_v43 = vrot.slane %v10500_v4, 7  ;;  %v2611_v42 = vor.u32 %v2610_v20, %v10282_v18 }
 0x283   : > { %10498 = vst [vmem:[#allocation57_spill] sm:$0xff] %v8231_v31 }
 0x284   : > { %10501 = vst [vmem:[#allocation58_spill] sm:$0xff] %v8242_v43  ;;  %3218 = vrot.lane.b32.xlu0 %v3170_v26, %s6492_s10  ;;  %v10502_v26 = vshll.u32 %v7658_v41, 16 }
 0x285   : > { %v2349_v31 = vpop.permute.xlu0 %2348  ;;  %3216 = vrot.lane.b32.xlu1 %v3169_v12, %s6492_s10 }
 0x286   : > { %v2695_v44 = vsel %vm1057_vm4, %v7623_v59, %v2349_v31  ;;  %v2624_v61 = vpop.permute.xlu1 %2623  ;;  %v3173_v45 = vsel %vm1572_vm14, %v8242_v43, %v10502_v26  ;;  %v10505_v31 = vshll.u32 %v8219_v21, 16 }
 0x287   : > { %v2738_v4 = vsel %vm1123_vm6, %v2695_v44, %v2626_v56  ;;  %v2736_v54 = vsel %vm1123_vm6, %v2692_v23, %v2624_v61  ;;  %v10508_v23 = vshll.u32 %v7585_v5, 16  ;;  %v10513_v5 = vshll.u32 %v7741_v30, 16 }
 0x288   : > { %3222 = vrot.lane.b32.xlu0 %v3173_v45, %s6492_s10  ;;  %v2615_v20 = vrot.slane %v10505_v31, 1  ;;  %v2768_v12 = vsel %vm1189_vm8, %v2736_v54, %v2656_v39  ;;  %v2770_v41 = vsel %vm1189_vm8, %v2738_v4, %v8101_v62  ;;  %v10509_v45 = vshrl.u32 %v7695_v0, 16 }
 0x289   : > { %v8269_v18 = vpop.permute.xlu0 %3124  ;;  %6178 = vmatmul.mubr.msk.bf16.gmra.mxu0 %vm1255_vm10, %v2768_v12  ;;  %v8283_v39 = vsel %vm1572_vm14, %v8263_v55, %v10508_v23  ;;  %v10511_v62 = vshll.u32 %v7605_v36, 16  ;;  %v8305_v31 = vrot.slane %v10514_v37, 7  ;;  %v10516_v36 = vshll.u32 %v7571_v10, 16 }
 0x28a   : > { %10506 = vst [vmem:[#allocation60_spill] sm:$0xff] %v8269_v18  ;;  %v2616_v44 = vsel %vm426_vm0, %v2611_v42, %v2615_v20  ;;  %v8275_v56 = vpop.permute.xlu1 %3087  ;;  %6181 = vmatprep.mubr.msk.bf16.mxu0 %vm1255_vm10, %v2770_v41  ;;  %v8287_v61 = vrot.slane %v10509_v45, 7  ;;  %v10518_v30 = vshll.u32 %v7686_v50, 16  ;;  %v10519_v23 = vshrl.u32 %v7775_v1, 16 }
 0x28b   : > { %10507 = vst [vmem:[#allocation61_spill] sm:$0xff] %v8275_v56  ;;  %2647 = vrot.lane.b32.xlu1 %v2616_v44, %s6490_s6  ;;  %v3172_v42 = vor.u32 %v8242_v43, %v10511_v62  ;;  %10515 = vst [vmem:[#allocation64_spill] sm:$0xff] %v8305_v31  ;;  %v8312_v20 = vor.u32 %v8263_v55, %v10516_v36  ;;  %v10521_v62 = vshll.u32 %v7695_v0, 16  ;;  %v10522_v50 = vshll.u32 %v7821_v33, 16 }
 0x28c   : > { %10510 = vst [vmem:[#allocation62_spill] sm:$0xff] %v8287_v61  ;;  %3226 = vrot.lane.b32.xlu0 %v8283_v39, %s6492_s10  ;;  %v8301_v26 = vsel %vm1572_vm14, %v8287_v61, %v10513_v5  ;;  %v8322_v44 = vsel %vm1572_vm14, %v8305_v31, %v10518_v30  ;;  %v8326_v45 = vrot.slane %v10519_v23, 7  ;;  %v10523_v30 = vshrl.u32 %v7752_v8, 16 }
 0x28d   : > { %v8294_v4 = vpop.permute.xlu0 %3085  ;;  %v10528_v33 = vshll.u32 %v7766_v25, 16  ;;  %v2698_v25 = vsel %vm1057_vm4, %v7619_v58, %v8209_v19  ;;  %v10532_v56 = vshll.u32 %v7904_v9, 16  ;;  %v10535_v9 = vshll.u32 %v7752_v8, 16 }
 0x28e   : > { %10512 = vst [vmem:[#allocation63_spill] sm:$0xff] %v8294_v4  ;;  %v2660_v54 = vpop.permute.xlu1 %2659  ;;  %10520 = vst [vmem:[#allocation66_spill] sm:$0xff] %v8326_v45  ;;  %v8343_v36 = vsel %vm1572_vm14, %v8326_v45, %v10522_v50  ;;  %v8347_v23 = vrot.slane %v10523_v30, 7  ;;  %v10529_v30 = vshrl.u32 %v7855_v22, 16 }
 0x28f   : > { %3220 = vrot.lane.b32.xlu1 %v3172_v42, %s6492_s10  ;;  %v8333_v42 = vor.u32 %v8287_v61, %v10521_v62  ;;  %v10525_v62 = vshll.u32 %v7672_v14, 16 }
 0x290   : > { %3230 = vrot.lane.b32.xlu0 %v8301_v26, %s6492_s10  ;;  %10524 = vst [vmem:[#allocation67_spill] sm:$0xff] %v8347_v23  ;;  %v8366_v50 = vsel %vm1572_vm14, %v8347_v23, %v10528_v33  ;;  %v8370_v61 = vrot.slane %v10529_v30, 7 }
 0x291   : > { %v2630_v12 = vpop.permute.xlu0 %2629  ;;  %v8354_v0 = vor.u32 %v8305_v31, %v10525_v62  ;;  %v10531_v62 = vshll.u32 %v7775_v1, 16 }
 0x292   : > { %v8314_v41 = vpop.permute.xlu1 %3126  ;;  %10530 = vst [vmem:[#allocation70_spill] sm:$0xff] %v8370_v61 }
 0x293   : > { %10517 = vst [vmem:[#allocation65_spill] sm:$0xff] %v8314_v41  ;;  %3224 = vrot.lane.b32.xlu1 %v8312_v20, %s6492_s10  ;;  %v8377_v14 = vor.u32 %v8326_v45, %v10531_v62  ;;  %v8391_v62 = vsel %vm1572_vm14, %v8370_v61, %v10532_v56  ;;  %v10533_v45 = vshrl.u32 %v7832_v2, 16 }
 0x294   : > { %3234 = vrot.lane.b32.xlu0 %v8322_v44, %s6492_s10 }
 0x295   : > { %v8335_v5 = vpop.permute.xlu0 %2665  ;;  %v8396_v19 = vrot.slane %v10533_v45, 7 }
 0x296   : > { %v2355_v37 = vpop.permute.xlu1 %2354 }
 0x297   : > { %3228 = vrot.lane.b32.xlu1 %v8333_v42, %s6492_s10  ;;  %10534 = vst [vmem:[#allocation71_spill] sm:$0xff] %v8396_v19 }
 0x298   : > { %3238 = vrot.lane.b32.xlu0 %v8343_v36, %s6492_s10 }
 0x299   : > { %v8356_v10 = vpop.permute.xlu0 %3136 }
 0x29a   : > { %10526 = vst [vmem:[#allocation68_spill] sm:$0xff] %v8356_v10  ;;  %v8358_v43 = vpop.permute.xlu1 %3138 }
 0x29b   : > { %10527 = vst [vmem:[#allocation69_spill] sm:$0xff] %v8358_v43  ;;  %3232 = vrot.lane.b32.xlu1 %v8354_v0, %s6492_s10 }
 0x29c   : > { %3242 = vrot.lane.b32.xlu0 %v8366_v50, %s6492_s10 }
 0x29d   : > { %v2353_v31 = vpop.permute.xlu0 %2352 }
 0x29e   : > { %v2701_v33 = vsel %vm1057_vm4, %v7712_v24, %v2353_v31  ;;  %v2628_v55 = vpop.permute.xlu1 %2627 }
 0x29f   : > { %3236 = vrot.lane.b32.xlu1 %v8377_v14, %s6492_s10  ;;  %v2740_v30 = vsel %vm1123_vm6, %v2698_v25, %v2628_v55  ;;  %v2742_v1 = vsel %vm1123_vm6, %v2701_v33, %v2630_v12  ;;  %v8406_v25 = vor.u32 %v8347_v23, %v10535_v9  ;;  %v10541_v33 = vshll.u32 %v7855_v22, 16  ;;  %v10545_v22 = vld [vmem:[#allocation25_spill] sm:$0xff]  ;;  %v10548_v23 = vld [vmem:[#allocation39_spill] sm:$0xff] }
 0x2a0   : > { %3246 = vrot.lane.b32.xlu0 %v8391_v62, %s6492_s10  ;;  %v2774_v31 = vsel %vm1189_vm8, %v2742_v1, %v8205_v17  ;;  %v2772_v55 = vsel %vm1189_vm8, %v2740_v30, %v2660_v54  ;;  %v10538_v1 = vshll.u32 %v7846_v3, 16  ;;  %v10539_v54 = vshrl.u32 %v7945_v34, 16 }
 0x2a1   : > { %6185 = vmatprep.mubr.msk.bf16.mxu1 %vm1255_vm10, %v2774_v31  ;;  %v8409_v56 = vpop.permute.xlu0 %3132  ;;  %6182 = vmatmul.mubr.msk.bf16.gmra.mxu0 %vm1255_vm10, %v2772_v55  ;;  %v8431_v30 = vor.u32 %v8370_v61, %v10541_v33  ;;  %v10543_v3 = vshll.u32 %v7999_v32, 16  ;;  %v10546_v8 = vshrl.u32 %v10545_v22, 16 }
 0x2a2   : > { %10536 = vst [vmem:[#allocation72_spill] sm:$0xff] %v8409_v56  ;;  %v8412_v12 = vpop.permute.xlu1 %3091  ;;  %v8420_v17 = vsel %vm1572_vm14, %v8396_v19, %v10538_v1  ;;  %v8424_v45 = vrot.slane %v10539_v54, 7  ;;  %v2253_v1 = vld [vmem:[#allocation2 + $0x84] sm:$0xe]  ;;  %v10544_v54 = vshll.u32 %v7832_v2, 16  ;;  %v6441_v56 = vld [vmem:[%s10132_s3 + $0x10] sm:$0xff]  }
 0x2a3   : > { %10537 = vst [vmem:[#allocation73_spill] sm:$0xff] %v8412_v12  ;;  %3240 = vrot.lane.b32.xlu1 %v8406_v25, %s6492_s10  ;;  %v8452_v61 = vrot.slane %v10546_v8, 7  ;;  %v8455_v12 = vcombine.low %v2253_v1, %v10548_v23  ;;  %v10552_v8 = vshrl.u32 %v8044_v57, 16 }
 0x2a4   : > { %10540 = vst [vmem:[#allocation74_spill] sm:$0xff] %v8424_v45  ;;  %3250 = vrot.lane.b32.xlu0 %v8420_v17, %s6492_s10  ;;  %v8441_v9 = vsel %vm1572_vm14, %v8424_v45, %v10543_v3  ;;  %v8448_v33 = vor.u32 %v8396_v19, %v10544_v54  ;;  %v10551_v3 = vshll.u32 %v7945_v34, 16  ;;  %v10554_v19 = vshll.u32 %v10545_v22, 16  ;;  %v10557_v22 = vld [vmem:[#allocation30_spill] sm:$0xff] }
 0x2a5   : > { %v8433_v31 = vpop.permute.xlu0 %3089  ;;  %10547 = vst [vmem:[#allocation76_spill] sm:$0xff] %v8452_v61  ;;  %10549 = vst [vmem:[#allocation39_spill] sm:$0xff] %v8455_v12  ;;  %v8470_v2 = vrot.slane %v10552_v8, 7 }
 0x2a6   : > { %10542 = vst [vmem:[#allocation75_spill] sm:$0xff] %v8433_v31  ;;  %v2664_v55 = vpop.permute.xlu1 %2663  ;;  %v8466_v54 = vor.u32 %v8424_v45, %v10551_v3  ;;  %v8477_v10 = vor.u32 %v8452_v61, %v10554_v19  ;;  %v10555_v3 = vld [vmem:[#allocation16_spill] sm:$0xff]  ;;  %v10558_v19 = vld [vmem:[#allocation18_spill] sm:$0xff] }
 0x2a7   : > { %3244 = vrot.lane.b32.xlu1 %v8431_v30, %s6492_s10  ;;  %10553 = vst [vmem:[#allocation78_spill] sm:$0xff] %v8470_v2  ;;  %v2704_v34 = vsel %vm1057_vm4, %v10555_v3, %v2355_v37 }
 0x2a8   : > { %3254 = vrot.lane.b32.xlu0 %v8441_v9, %s6492_s10 }
 0x2a9   : > { %v2634_v32 = vpop.permute.xlu0 %2633 }
 0x2aa   : > { %v8457_v31 = vpop.permute.xlu1 %3134 }
 0x2ab   : > { %10550 = vst [vmem:[#allocation77_spill] sm:$0xff] %v8457_v31  ;;  %3248 = vrot.lane.b32.xlu1 %v8448_v33, %s6492_s10 }
 0x2ac   : > { %3148 = vrot.lane.b32.xlu0 %v8455_v12, %s6490_s6  ;;  %v10556_v12 = vshll.u32 %v8044_v57, 16  ;;  %v2254_v57 = vld [vmem:[#allocation2 + $0x90] sm:$0xe] }
 0x2ad   : > { %v8472_v23 = vpop.permute.xlu0 %2669 }
 0x2ae   : > { %v2359_v1 = vpop.permute.xlu1 %2358  ;;  %v8488_v43 = vor.u32 %v8470_v2, %v10556_v12 }
 0x2af   : > { %3252 = vrot.lane.b32.xlu1 %v8466_v54, %s6492_s10 }
 0x2b0   : > { %3256 = vrot.lane.b32.xlu0 %v8477_v10, %s6492_s10 }
 0x2b1   : > { %v2357_v45 = vpop.permute.xlu0 %2356 }
 0x2b2   : > { %v2632_v8 = vpop.permute.xlu1 %2631  ;;  %v2707_v4 = vsel %vm1057_vm4, %v10558_v19, %v2357_v45  ;;  %v10559_v45 = vld [vmem:[#allocation37_spill] sm:$0xff] }
 0x2b3   : > { %3146 = vrot.lane.b32.xlu1 %v10557_v22, %s6490_s6  ;;  %v2744_v31 = vsel %vm1123_vm6, %v2704_v34, %v2632_v8  ;;  %v2746_v37 = vsel %vm1123_vm6, %v2707_v4, %v2634_v32  ;;  %v8506_v18 = vcombine.low %v2254_v57, %v10559_v45  ;;  %v2255_v34 = vld [vmem:[#allocation2 + $0x9c] sm:$0xe]  ;;  %v10561_v4 = vshrl.u32 %v8020_v48, 16 }
 0x2b4   : > { %3260 = vrot.lane.b32.xlu0 %v8488_v43, %s6492_s10  ;;  %v2776_v12 = vsel %vm1189_vm8, %v2744_v31, %v2664_v55  ;;  %v2778_v41 = vsel %vm1189_vm8, %v2746_v37, %v8335_v5  ;;  %v10563_v5 = vshll.u32 %v10557_v22, 16  ;;  %v10568_v22 = vshll.u32 %v8095_v29, 16 }
 0x2b5   : > { %6186 = vmatmul.mubr.msk.bf16.vlgmr.msra.gmra.mxu1 %vm1255_vm10, %v2776_v12  ;;  %10560 = vst [vmem:[#allocation16_spill] sm:$0xff] %v8506_v18  ;;  %v8516_v31 = vrot.slane %v10561_v4, 7 }
 0x2b6   : > { %6189 = vmatprep.mubr.msk.bf16.mxu1 %vm1255_vm10, %v2778_v41  ;;  %6206 = vmatpush3.bf16.msra.mxu1 %v8224_v38  ;;  %v8522_v57 = vsel %vm1572_vm14, %v8452_v61, %v10563_v5  ;;  %v8525_v38 = vcombine.low %v2255_v34, %v8115_v7  ;;  %v10565_v41 = vshrl.u32 %v8131_v13, 16  ;;  %v8541_v8 = vsel %vm1572_vm14, %v8470_v2, %v10568_v22  ;;  %v2256_v5 = vld [vmem:[#allocation2 + $0xa8] sm:$0xe] }
 0x2b7   : > { %3150 = vrot.lane.b32.xlu1 %v8095_v29, %s6490_s6  ;;  %6207 = vmatprep.subr.bf16.mxu1 %v6441_v56  ;;  %10562 = vst [vmem:[#allocation30_spill] sm:$0xff] %v8516_v31  ;;  %v10571_v34 = vshll.u32 %v8131_v13, 16  ;;  %v10573_v13 = vshrl.u32 %v8085_v6, 16  ;;  %v10575_v2 = vld [vmem:[#allocation5_spill] sm:$0xff] }
 0x2b8   : > { %3152 = vrot.lane.b32.xlu0 %v8506_v18, %s6490_s6  ;;  %10564 = vst [vmem:[#allocation37_spill] sm:$0xff] %v8525_v38  ;;  %v8533_v55 = vrot.slane %v10565_v41, 7  ;;  %v8564_v41 = vcombine.low %v2256_v5, %v8071_v49  ;;  %v2710_v61 = vsel %vm1057_vm4, %v10575_v2, %v2359_v1  ;;  %v10576_v49 = vshll.u32 %v8057_v11, 16 }
 0x2ba   : > { %6208 = vmatpush3.bf16.msra.mxu1 %v6441_v56  ;;  %10566 = vst [vmem:[#allocation79_spill] sm:$0xff] %v8533_v55  ;;  %v10570_v56 = vshll.u32 %v8020_v48, 16  ;;  %v8557_v4 = vor.u32 %v8533_v55, %v10571_v34  ;;  %10572 = vst [vmem:[#allocation82_spill] sm:$0xff] %v8564_v41  ;;  %v2257_v34 = vld [vmem:[#allocation2 + $0xb4] sm:$0xe]  ;;  %v8572_v48 = vrot.slane %v10573_v13, 7  ;;  %v8580_v5 = vsel %vm1572_vm14, %v8516_v31, %v10576_v49 }
 0x2bb   : > { %3258 = vrot.lane.b32.xlu1 %v8522_v57, %s6492_s10  ;;  %v10578_v13 = vld [vmem:[#allocation24_spill] sm:$0xff] }
 0x2bc   : > { %3156 = vrot.lane.b32.xlu0 %v8525_v38, %s6490_s6  ;;  %v8535_v32 = vpop.permute.xlu1 %3095  ;;  %v8548_v37 = vor.u32 %v8516_v31, %v10570_v56  ;;  %10574 = vst [vmem:[#allocation83_spill] sm:$0xff] %v8572_v48 }
 0x2bd   : > { %10567 = vst [vmem:[#allocation80_spill] sm:$0xff] %v8535_v32  ;;  %v8543_v7 = vpop.permute.xlu0 %3093 }
 0x2be   : > { %10569 = vst [vmem:[#allocation81_spill] sm:$0xff] %v8543_v7  ;;  %v8583_v7 = vcombine.low %v2257_v34, %v8176_v46  ;;  %v10581_v34 = vshll.u32 %v8159_v60, 16 }
 0x2bf   : > { %3262 = vrot.lane.b32.xlu1 %v8541_v8, %s6492_s10 }
 0x2c0   : > { %3264 = vrot.lane.b32.xlu0 %v8548_v37, %s6492_s10  ;;  %v2668_v12 = vpop.permute.xlu1 %2667  ;;  %10577 = vst [vmem:[#allocation5_spill] sm:$0xff] %v8583_v7 }
 0x2c2   : > { %v2638_v45 = vpop.permute.xlu0 %2637 }
 0x2c3   : > { %3154 = vrot.lane.b32.xlu1 %v8057_v11, %s6490_s6 }
 0x2c4   : > { %3268 = vrot.lane.b32.xlu0 %v8557_v4, %s6492_s10  ;;  %v2363_v22 = vpop.permute.xlu1 %2362 }
 0x2c6   : > { %v2674_v56 = vpop.permute.xlu0 %2673 }
 0x2c7   : > { %3158 = vrot.lane.b32.xlu1 %v8159_v60, %s6490_s6 }
 0x2c8   : > { %3160 = vrot.lane.b32.xlu0 %v8564_v41, %s6490_s6  ;;  %v2636_v32 = vpop.permute.xlu1 %2635 }
 0x2c9   : > { %v2748_v41 = vsel %vm1123_vm6, %v2710_v61, %v2636_v32  ;;  %v10579_v61 = vshrl.u32 %v8186_v63, 16 }
 0x2ca   : > { %v2361_v38 = vpop.permute.xlu0 %2360  ;;  %v2780_v11 = vsel %vm1189_vm8, %v2748_v41, %v2668_v12  ;;  %v8627_v41 = vld [vmem:[%s10132_s3 + $0x38] sm:$0xff]  }
 0x2cb   : > { %3266 = vrot.lane.b32.xlu1 %v8580_v5, %s6492_s10  ;;  %v2713_v18 = vsel %vm1057_vm4, %v10578_v13, %v2361_v38  ;;  %6190 = vmatmul.mubr.msk.bf16.gmra.mxu1 %vm1255_vm10, %v2780_v11  ;;  %v8599_v32 = vrot.slane %v10579_v61, 7  ;;  %v8605_v38 = vsel %vm1572_vm14, %v8533_v55, %v10581_v34 }
 0x2cc   : > { %v2750_v1 = vsel %vm1123_vm6, %v2713_v18, %v2638_v45  ;;  %3164 = vrot.lane.b32.xlu0 %v8583_v7, %s6490_s6  ;;  %v10582_v18 = vshll.u32 %v8085_v6, 16  ;;  %6277 = vmatprep.subr.bf16.mxu1 %v8627_v41  ;;  %v10589_v6 = vld [vmem:[#allocation22_spill] sm:$0xff] }
 0x2cd   : > { %v2782_v46 = vsel %vm1189_vm8, %v2750_v1, %v8472_v23  ;;  %10580 = vst [vmem:[#allocation24_spill] sm:$0xff] %v8599_v32  ;;  %v10583_v23 = vshll.u32 %v8186_v63, 16 }
 0x2ce   : > { %6193 = vmatprep.mubr.msk.bf16.mxu1 %vm1255_vm10, %v2782_v46  ;;  %v8611_v12 = vor.u32 %v8572_v48, %v10582_v18  ;;  %v10585_v46 = vshll.u32 %v8124_v27, 16 }
 0x2cf   : > { %3270 = vrot.lane.b32.xlu1 %v8605_v38, %s6492_s10  ;;  %v8620_v45 = vor.u32 %v8599_v32, %v10583_v23  ;;  %v10586_v23 = vshll.u32 %v8219_v21, 16 }
 0x2d0   : > { %3272 = vrot.lane.b32.xlu0 %v8611_v12, %s6492_s10  ;;  %v8644_v61 = vsel %vm1572_vm14, %v8572_v48, %v10585_v46  ;;  %v2716_v48 = vsel %vm1057_vm4, %v10589_v6, %v2363_v22 }
 0x2d3   : > { %3162 = vrot.lane.b32.xlu1 %v8124_v27, %s6490_s6  ;;  %v8631_v49 = vpop.permute.xlu1 %3099  ;;  %v10587_v27 = vld [vmem:[#allocation10_spill] sm:$0xff] }
 0x2d4   : > { %3276 = vrot.lane.b32.xlu0 %v8620_v45, %s6492_s10  ;;  %10584 = vst [vmem:[#allocation84_spill] sm:$0xff] %v8631_v49  ;;  %v10588_v46 = vrot.slane %v10587_v27, 7 }
 0x2d5   : > { %v8634_v1 = vpop.permute.xlu0 %3097 }
 0x2d7   : > { %3166 = vrot.lane.b32.xlu1 %v8219_v21, %s6490_s6  ;;  %v2672_v11 = vpop.permute.xlu1 %2671 }
 0x2d8   : > { %4064 = vrot.lane.b32.xlu0 %v8312_v20, %s6488_s25  ;;  %v8654_v20 = vsel %vm1572_vm14, %v8599_v32, %v10586_v23  ;;  %v10590_v23 = vld [vmem:[#allocation34_spill] sm:$0xff] }
 0x2da   : > { %v2642_v34 = vpop.permute.xlu0 %2641 }
 0x2db   : > { %3274 = vrot.lane.b32.xlu1 %v8644_v61, %s6492_s10  ;;  %v2367_v18 = vpop.permute.xlu1 %2366 }
 0x2dc   : > { %4068 = vrot.lane.b32.xlu0 %v8333_v42, %s6488_s25 }
 0x2de   : > { %v2678_v63 = vpop.permute.xlu0 %2677 }
 0x2df   : > { %3278 = vrot.lane.b32.xlu1 %v8654_v20, %s6492_s10  ;;  %v2640_v55 = vpop.permute.xlu1 %2639 }
 0x2e0   : > { %4931 = vrot.lane.b32.xlu0 %v10588_v46, %s6492_s10  ;;  %v2752_v42 = vsel %vm1123_vm6, %v2716_v48, %v2640_v55  ;;  %v10591_v55 = vrot.slane %v7513_v51, 7 }
 0x2e1   : > { %v2784_v49 = vsel %vm1189_vm8, %v2752_v42, %v2672_v11 }
 0x2e2   : > { %v2365_v31 = vpop.permute.xlu0 %2364  ;;  %6194 = vmatmul.mubr.msk.bf16.gmra.mxu1 %vm1255_vm10, %v2784_v49 }
 0x2e3   : > { %4895 = vrot.lane.b32.xlu1 %v8283_v39, %s6488_s25  ;;  %v2719_v32 = vsel %vm1057_vm4, %v10590_v23, %v2365_v31  ;;  %v2676_v22 = vpop.permute.xlu1 %2675 }
 0x2e4   : > { %v2754_v21 = vsel %vm1123_vm6, %v2719_v32, %v2642_v34  ;;  %4072 = vrot.lane.b32.xlu0 %v8354_v0, %s6488_s25 }
 0x2e5   : > { %v2786_v46 = vsel %vm1189_vm8, %v2754_v21, %v2674_v56  ;;  %v10592_v21 = vrot.slane %v7561_v53, 7  ;;  %v10593_v56 = vld [vmem:[#allocation33_spill] sm:$0xff] }
 0x2e6   : > { %6197 = vmatprep.mubr.msk.bf16.mxu1 %vm1255_vm10, %v2786_v46  ;;  %v2646_v48 = vpop.permute.xlu0 %2645  ;;  %v2722_v32 = vsel %vm1057_vm4, %v10593_v56, %v2367_v18 }
 0x2e7   : > { %4897 = vrot.lane.b32.xlu1 %v8301_v26, %s6488_s25  ;;  %v2371_v39 = vpop.permute.xlu1 %2370 }
 0x2e8   : > { %4076 = vrot.lane.b32.xlu0 %v8377_v14, %s6488_s25 }
 0x2ea   : > { %v2369_v31 = vpop.permute.xlu0 %2368 }
 0x2eb   : > { %4933 = vrot.lane.b32.xlu1 %v10591_v55, %s6492_s10  ;;  %v2725_v0 = vsel %vm1057_vm4, %v8068_v16, %v2369_v31  ;;  %v2644_v49 = vpop.permute.xlu1 %2643  ;;  %v6450_v55 = vld [vmem:[#allocation2 + $0x14] ss:$0 sps:$4 sm:$0x11]  }
 0x2ec   : > { %4935 = vrot.lane.b32.xlu0 %v10592_v21, %s6492_s10  ;;  %v2758_v26 = vsel %vm1123_vm6, %v2725_v0, %v2646_v48  ;;  %v2756_v14 = vsel %vm1123_vm6, %v2722_v32, %v2644_v49  ;;  %v10597_v48 = vld [vmem:[#allocation14_spill] sm:$0xff]  ;;  %v10598_v0 = vrot.slane %v7558_v28, 7 }
 0x2ed   : > { %v2788_v34 = vsel %vm1189_vm8, %v2756_v14, %v2676_v22  ;;  %v2790_v42 = vsel %vm1189_vm8, %v2758_v26, %v2678_v63  ;;  %v10596_v22 = vld [vmem:[#allocation29_spill] sm:$0xff]  ;;  %v10601_v26 = vld [vmem:[#allocation28_spill] sm:$0xff] }
 0x2ee   : > { %v8691_v11 = vpop.permute.xlu0 %3140  ;;  %6198 = vmatmul.mubr.msk.bf16.gmra.mxu1 %vm1255_vm10, %v2788_v34  ;;  %v3282_v31 = vsel %vm1057_vm4, %v10597_v48, %v10596_v22  ;;  %v3283_v63 = vsel %vm1057_vm4, %v6450_v55, %v10596_v22  ;;  %v2728_v48 = vsel %vm1057_vm4, %v8061_v52, %v2371_v39 }
 0x2ef   : > { %4899 = vrot.lane.b32.xlu1 %v8322_v44, %s6488_s25  ;;  %v8700_v18 = vpop.permute.xlu1 %3142  ;;  %6201 = vmatprep.mubr.msk.bf16.mxu1 %vm1255_vm10, %v2790_v42  ;;  %v3348_v49 = vsel %vm1123_vm6, %v3283_v63, %v10601_v26 }
 0x2f0   : > { %4080 = vrot.lane.b32.xlu0 %v8406_v25, %s6488_s25  ;;  %10594 = vst [vmem:[#allocation10_spill] sm:$0xff] %v8700_v18 }
 0x2f2   : > { %v8703_v46 = vpop.permute.xlu0 %3144 }
 0x2f3   : > { %10595 = vst [vmem:[#allocation85_spill] sm:$0xff] %v8703_v46  ;;  %4901 = vrot.lane.b32.xlu1 %v8343_v36, %s6488_s25  ;;  %v2680_v44 = vpop.permute.xlu1 %2679  ;;  %v10599_v36 = vrot.slane %v7623_v59, 7 }
 0x2f4   : > { %4084 = vrot.lane.b32.xlu0 %v8431_v30, %s6488_s25  ;;  %v10600_v30 = vld [vmem:[#allocation26_spill] sm:$0xff] }
 0x2f5   : > { %v3346_v32 = vsel %vm1123_vm6, %v3282_v31, %v10600_v30  ;;  %v8739_v30 = vld [vmem:[#allocation2 + $0x20] ss:$0 sps:$4 sm:$0x11]  }
 0x2f6   : > { %v3219_v25 = vpop.permute.xlu0 %3218 }
 0x2f7   : > { %4937 = vrot.lane.b32.xlu1 %v10598_v0, %s6492_s10  ;;  %v3217_v21 = vpop.permute.xlu1 %3216  ;;  %v3412_v42 = vsel %vm1189_vm8, %v3348_v49, %v3219_v25  ;;  %v8755_v49 = vld [vmem:[#allocation2 + $0x2c] ss:$0 sps:$4 sm:$0x11]  }
 0x2f8   : > { %4939 = vrot.lane.b32.xlu0 %v10599_v36, %s6492_s10  ;;  %v3410_v14 = vsel %vm1189_vm8, %v3346_v32, %v3217_v21  ;;  %v3506_v31 = vrot.slane %v3412_v42, 1  ;;  %v10602_v36 = vld [vmem:[#allocation32_spill] sm:$0xff] }
 0x2f9   : > { %v3505_v22 = vrot.slane %v3410_v14, 1  ;;  %v10603_v21 = vld [vmem:[#allocation8_spill] sm:$0xff]  ;;  %v10607_v14 = vld [vmem:[#allocation31_spill] sm:$0xff] }
 0x2fa   : > { %v3223_v34 = vpop.permute.xlu0 %3222  ;;  %v3291_v42 = vsel %vm1057_vm4, %v8755_v49, %v10607_v14 }
 0x2fb   : > { %4903 = vrot.lane.b32.xlu1 %v8366_v50, %s6488_s25  ;;  %v3286_v50 = vsel %vm1057_vm4, %v10603_v21, %v10602_v36  ;;  %v3507_v39 = vsel %vm10604_vm1, %v3505_v22, %v3506_v31 }
 0x2fc   : > { %4088 = vrot.lane.b32.xlu0 %v8448_v33, %s6488_s25  ;;  %v3287_v33 = vsel %vm1057_vm4, %v8739_v30, %v10602_v36  ;;  %v10610_v36 = vld [vmem:[#allocation9_spill] sm:$0xff] }
 0x2fd   : > { %v2648_v55 = vpop.permute.xlu1 %2647  ;;  %v3352_v32 = vsel %vm1123_vm6, %v3287_v33, %v8081_v35 }
 0x2fe   : > { %v2760_v0 = vsel %vm1123_vm6, %v2728_v48, %v2648_v55  ;;  %v3227_v63 = vpop.permute.xlu0 %3226  ;;  %v10608_v55 = vld [vmem:[#allocation40_spill] sm:$0xff] }
 0x2ff   : > { %4905 = vrot.lane.b32.xlu1 %v8391_v62, %s6488_s25  ;;  %v2792_v25 = vsel %vm1189_vm8, %v2760_v0, %v2680_v44  ;;  %v10605_v62 = vld [vmem:[#allocation42_spill] sm:$0xff]  ;;  %v3356_v31 = vsel %vm1123_vm6, %v3291_v42, %v10608_v55 }
 0x300   : > { %6202 = vmatmul.mubr.msk.bf16.gmra.mxu1 %vm1255_vm10, %v2792_v25  ;;  %4092 = vrot.lane.b32.xlu0 %v8466_v54, %s6488_s25  ;;  %v3350_v44 = vsel %vm1123_vm6, %v3286_v50, %v10605_v62  ;;  %v3416_v54 = vsel %vm1189_vm8, %v3352_v32, %v3223_v34  ;;  %v10609_v25 = vrot.slane %v7619_v58, 7  ;;  %v3290_v50 = vsel %vm1057_vm4, %v10610_v36, %v10607_v14  ;;  %v6445_v14 = vld [vmem:[%s10132_s3 + $0x30] sm:$0xff]  }
 0x301   : > { %v8752_v26 = vpop.permute.xlu1 %3220  ;;  %6209 = vmatprep.mubr.msk.bf16.mxu1 %vm1255_vm10, %v3507_v39  ;;  %v3420_v33 = vsel %vm1189_vm8, %v3356_v31, %v3227_v63  ;;  %v10611_v34 = vrot.slane %v7712_v24, 7  ;;  %v10612_v39 = vld [vmem:[#allocation36_spill] sm:$0xff]  ;;  %v3509_v32 = vrot.slane %v3416_v54, 1  ;;  %v8790_v24 = vld [vmem:[#allocation2 + $0x38] ss:$0 sps:$4 sm:$0x11]  }
 0x302   : > { %10606 = vst [vmem:[#allocation29_spill] sm:$0xff] %v8752_v26  ;;  %v3414_v22 = vsel %vm1189_vm8, %v3350_v44, %v8752_v26  ;;  %v3231_v48 = vpop.permute.xlu0 %3230  ;;  %v3354_v44 = vsel %vm1123_vm6, %v3290_v50, %v10612_v39  ;;  %v3512_v26 = vrot.slane %v3420_v33, 1  ;;  %v10616_v50 = vld [vmem:[#allocation12_spill] sm:$0xff] }
 0x303   : > { %v3508_v0 = vrot.slane %v3414_v22, 1  ;;  %4941 = vrot.lane.b32.xlu1 %v10609_v25, %s6492_s10 }
 0x304   : > { %4943 = vrot.lane.b32.xlu0 %v10611_v34, %s6492_s10  ;;  %v10615_v34 = vld [vmem:[#allocation35_spill] sm:$0xff] }
 0x305   : > { %v8777_v42 = vpop.permute.xlu1 %3224  ;;  %v3510_v63 = vsel %vm10614_vm11, %v3508_v0, %v3509_v32  ;;  %v3294_v54 = vsel %vm1057_vm4, %v10616_v50, %v10615_v34  ;;  %vm10676_vm11 = vmmov %vm10604_vm1 }
 0x306   : > { %10613 = vst [vmem:[#allocation14_spill] sm:$0xff] %v8777_v42  ;;  %v3418_v22 = vsel %vm1189_vm8, %v3354_v44, %v8777_v42  ;;  %v3235_v25 = vpop.permute.xlu0 %3234  ;;  %v3295_v44 = vsel %vm1057_vm4, %v8790_v24, %v10615_v34  ;;  %v3358_v0 = vsel %vm1123_vm6, %v3294_v54, %v8161_v47  ;;  %v10619_v34 = vld [vmem:[#allocation44_spill] sm:$0xff] }
 0x307   : > { %v3511_v31 = vrot.slane %v3418_v22, 1  ;;  %4907 = vrot.lane.b32.xlu1 %v8420_v17, %s6488_s25  ;;  %v3360_v17 = vsel %vm1123_vm6, %v3295_v44, %v8197_v40  ;;  %v8806_v22 = vld [vmem:[#allocation2 + $0x44] ss:$0 sps:$4 sm:$0x11]  }
 0x308   : > { %6210 = vmatmul.mubr.msk.bf16.vlgmr.msra.gmra.mxu1 %vm1255_vm10, %v3510_v63  ;;  %4096 = vrot.lane.b32.xlu0 %v8477_v10, %s6488_s25  ;;  %v3299_v63 = vsel %vm1057_vm4, %v8806_v22, %v10619_v34  ;;  %v3424_v10 = vsel %vm1189_vm8, %v3360_v17, %v3231_v48 }
 0x309   : > { %v8802_v33 = vpop.permute.xlu1 %3228  ;;  %v3513_v32 = vsel %vm10618_vm12, %v3511_v31, %v3512_v26  ;;  %6278 = vmatpush3.bf16.msra.mxu1 %v8627_v41  ;;  %v3364_v26 = vsel %vm1123_vm6, %v3299_v63, %v8126_v15  ;;  %v10620_v41 = vld [vmem:[#allocation11_spill] sm:$0xff]  ;;  %vm10680_vm12 = vmmov %vm10604_vm1 }
 0x30a   : > { %10617 = vst [vmem:[#allocation26_spill] sm:$0xff] %v8802_v33  ;;  %v3422_v54 = vsel %vm1189_vm8, %v3358_v0, %v8802_v33  ;;  %6213 = vmatprep.mubr.msk.bf16.mxu1 %vm1255_vm10, %v3513_v32  ;;  %v3239_v44 = vpop.permute.xlu0 %3238  ;;  %6279 = vmatprep.subr.bf16.mxu1 %v6445_v14  ;;  %v3298_v42 = vsel %vm1057_vm4, %v10620_v41, %v10619_v34  ;;  %v10621_v0 = vld [vmem:[#allocation46_spill] sm:$0xff]  ;;  %v3515_v32 = vrot.slane %v3424_v10, 1  ;;  %v10623_v34 = vrot.slane %v10555_v3, 7 }
 0x30b   : > { %v3514_v31 = vrot.slane %v3422_v54, 1  ;;  %4909 = vrot.lane.b32.xlu1 %v8441_v9, %s6488_s25  ;;  %v3428_v48 = vsel %vm1189_vm8, %v3364_v26, %v3235_v25  ;;  %v3362_v17 = vsel %vm1123_vm6, %v3298_v42, %v10621_v0  ;;  %v10626_v26 = vld [vmem:[#allocation4_spill] sm:$0xff]  ;;  %v8838_v10 = vld [vmem:[#allocation2 + $0x50] ss:$0 sps:$4 sm:$0x11]   ;;  %v10633_v0 = vld [vmem:[#allocation51_spill] sm:$0xff] }
 0x30c   : > { %4100 = vrot.lane.b32.xlu0 %v8488_v43, %s6488_s25  ;;  %v3518_v54 = vrot.slane %v3428_v48, 1  ;;  %v10625_v43 = vld [vmem:[#allocation43_spill] sm:$0xff]  ;;  %v10627_v48 = vrot.slane %v10558_v19, 7  ;;  %v10634_v19 = vld [vmem:[#allocation57_spill] sm:$0xff] }
 0x30d   : > { %v8827_v33 = vpop.permute.xlu1 %3232  ;;  %6280 = vmatpush3.bf16.msra.mxu1 %v6445_v14  ;;  %v3516_v25 = vsel %vm10624_vm13, %v3514_v31, %v3515_v32  ;;  %v3302_v42 = vsel %vm1057_vm4, %v10626_v26, %v10625_v43  ;;  %v3303_v14 = vsel %vm1057_vm4, %v8838_v10, %v10625_v43  ;;  %v10629_v31 = vld [vmem:[#allocation65_spill] sm:$0xff]  ;;  %v8854_v26 = vld [vmem:[#allocation2 + $0x5c] ss:$0 sps:$4 sm:$0x11]   ;;  %vm10692_vm13 = vmmov %vm10604_vm1 }
 0x30e   : > { %10622 = vst [vmem:[#allocation28_spill] sm:$0xff] %v8827_v33  ;;  %v3426_v63 = vsel %vm1189_vm8, %v3362_v17, %v8827_v33  ;;  %v3243_v9 = vpop.permute.xlu0 %3242  ;;  %v10628_v17 = vld [vmem:[#allocation60_spill] sm:$0xff]  ;;  %v3368_v32 = vsel %vm1123_vm6, %v3303_v14, %v10629_v31  ;;  %10632 = vst [vmem:[#allocation8_spill] sm:$0xff] %v8854_v26 }
 0x30f   : > { %v3517_v15 = vrot.slane %v3426_v63, 1  ;;  %4945 = vrot.lane.b32.xlu1 %v10623_v34, %s6492_s10  ;;  %v3366_v63 = vsel %vm1123_vm6, %v3302_v42, %v10628_v17  ;;  %v3432_v43 = vsel %vm1189_vm8, %v3368_v32, %v3239_v44  ;;  %v10636_v44 = vld [vmem:[#allocation56_spill] sm:$0xff] }
 0x310   : > { %6214 = vmatmul.mubr.msk.bf16.gmra.mxu1 %vm1255_vm10, %v3516_v25  ;;  %4947 = vrot.lane.b32.xlu0 %v10627_v48, %s6492_s10  ;;  %v3307_v25 = vsel %vm1057_vm4, %v8854_v26, %v10633_v0 }
 0x311   : > { %v8851_v34 = vpop.permute.xlu1 %3236  ;;  %v3519_v33 = vsel %vm10631_vm15, %v3517_v15, %v3518_v54  ;;  %v3372_v14 = vsel %vm1123_vm6, %v3307_v25, %v10634_v19  ;;  %v10635_v15 = vld [vmem:[#allocation23_spill] sm:$0xff]  ;;  %v8885_v19 = vld [vmem:[#allocation2 + $0x68] ss:$0 sps:$4 sm:$0x11]   ;;  %vm10697_vm15 = vmmov %vm10604_vm1 }
 0x312   : > { %10630 = vst [vmem:[#allocation32_spill] sm:$0xff] %v8851_v34  ;;  %v3430_v48 = vsel %vm1189_vm8, %v3366_v63, %v8851_v34  ;;  %6217 = vmatprep.mubr.msk.bf16.mxu1 %vm1255_vm10, %v3519_v33  ;;  %v3247_v42 = vpop.permute.xlu0 %3246  ;;  %v3306_v54 = vsel %vm1057_vm4, %v10635_v15, %v10633_v0  ;;  %v3436_v26 = vsel %vm1189_vm8, %v3372_v14, %v3243_v9  ;;  %v3521_v63 = vrot.slane %v3432_v43, 1  ;;  %v10639_v9 = vld [vmem:[#allocation49_spill] sm:$0xff]  ;;  %v10640_v14 = vld [vmem:[#allocation20_spill] sm:$0xff] }
 0x313   : > { %v3520_v31 = vrot.slane %v3430_v48, 1  ;;  %4911 = vrot.lane.b32.xlu1 %v8522_v57, %s6488_s25  ;;  %v3370_v33 = vsel %vm1123_vm6, %v3306_v54, %v10636_v44  ;;  %v3524_v57 = vrot.slane %v3436_v26, 1  ;;  %10641 = vst [vmem:[#allocation31_spill] sm:$0xff] %v8885_v19  ;;  %v3311_v43 = vsel %vm1057_vm4, %v8885_v19, %v10639_v9  ;;  %v10642_v26 = vld [vmem:[#allocation72_spill] sm:$0xff]  ;;  %v10643_v54 = vld [vmem:[#allocation77_spill] sm:$0xff] }
 0x314   : > { %4104 = vrot.lane.b32.xlu0 %v8548_v37, %s6488_s25  ;;  %v3310_v37 = vsel %vm1057_vm4, %v10640_v14, %v10639_v9  ;;  %v10648_v19 = vld [vmem:[#allocation69_spill] sm:$0xff] }
 0x315   : > { %v8875_v32 = vpop.permute.xlu1 %3240  ;;  %v3522_v0 = vsel %vm10638_vm2, %v3520_v31, %v3521_v63  ;;  %v3376_v31 = vsel %vm1123_vm6, %v3311_v43, %v10643_v54  ;;  %vm10699_vm2 = vmmov %vm10604_vm1 }
 0x316   : > { %10637 = vst [vmem:[#allocation42_spill] sm:$0xff] %v8875_v32  ;;  %v3434_v25 = vsel %vm1189_vm8, %v3370_v33, %v8875_v32  ;;  %v3251_v48 = vpop.permute.xlu0 %3250  ;;  %v10647_v32 = vld [vmem:[#allocation63_spill] sm:$0xff] }
 0x317   : > { %v3523_v34 = vrot.slane %v3434_v25, 1  ;;  %4913 = vrot.lane.b32.xlu1 %v8541_v8, %s6488_s25  ;;  %v3374_v8 = vsel %vm1123_vm6, %v3310_v37, %v10642_v26  ;;  %v8900_v25 = vld [vmem:[#allocation2 + $0x74] ss:$0 sps:$4 sm:$0x11]  }
 0x318   : > { %6218 = vmatmul.mubr.msk.bf16.gmra.mxu1 %vm1255_vm10, %v3522_v0  ;;  %4108 = vrot.lane.b32.xlu0 %v8557_v4, %s6488_s25  ;;  %10646 = vst [vmem:[#allocation9_spill] sm:$0xff] %v8900_v25  ;;  %v3315_v9 = vsel %vm1057_vm4, %v8900_v25, %v10647_v32  ;;  %v3440_v0 = vsel %vm1189_vm8, %v3376_v31, %v3247_v42  ;;  %v10652_v31 = vld [vmem:[#allocation68_spill] sm:$0xff] }
 0x319   : > { %v8897_v33 = vpop.permute.xlu1 %3244  ;;  %v3525_v63 = vsel %vm10645_vm5, %v3523_v34, %v3524_v57  ;;  %v3380_v43 = vsel %vm1123_vm6, %v3315_v9, %v10648_v19  ;;  %v10649_v34 = vrot.slane %v10575_v2, 7  ;;  %v10650_v57 = vld [vmem:[#allocation53_spill] sm:$0xff]  ;;  %vm10702_vm5 = vmmov %vm10604_vm1 }
 0x31a   : > { %10644 = vst [vmem:[#allocation40_spill] sm:$0xff] %v8897_v33  ;;  %v3438_v4 = vsel %vm1189_vm8, %v3374_v8, %v8897_v33  ;;  %6221 = vmatprep.mubr.msk.bf16.mxu1 %vm1255_vm10, %v3525_v63  ;;  %v3255_v37 = vpop.permute.xlu0 %3254  ;;  %v3314_v25 = vsel %vm1057_vm4, %v10650_v57, %v10647_v32  ;;  %v3444_v42 = vsel %vm1189_vm8, %v3380_v43, %v3251_v48  ;;  %v10651_v8 = vrot.slane %v10578_v13, 7  ;;  %v10655_v48 = vld [vmem:[#allocation61_spill] sm:$0xff]  ;;  %v10656_v43 = vld [vmem:[#allocation54_spill] sm:$0xff] }
 0x31b   : > { %v3526_v54 = vrot.slane %v3438_v4, 1  ;;  %4949 = vrot.lane.b32.xlu1 %v10649_v34, %s6492_s10  ;;  %v3378_v63 = vsel %vm1123_vm6, %v3314_v25, %v10652_v31  ;;  %v3527_v33 = vrot.slane %v3440_v0, 1  ;;  %v3530_v19 = vrot.slane %v3444_v42, 1  ;;  %v8935_v25 = vld [vmem:[#allocation2 + $0x80] ss:$0 sps:$4 sm:$0x11]  }
 0x31c   : > { %4951 = vrot.lane.b32.xlu0 %v10651_v8, %s6492_s10  ;;  %v3318_v8 = vsel %vm1057_vm4, %v10656_v43, %v10655_v48  ;;  %v3319_v0 = vsel %vm1057_vm4, %v8935_v25, %v10655_v48 }
 0x31d   : > { %v8923_v9 = vpop.permute.xlu1 %3248  ;;  %v3528_v32 = vsel %vm10654_vm7, %v3526_v54, %v3527_v33  ;;  %v3384_v54 = vsel %vm1123_vm6, %v3319_v0, %v8700_v18  ;;  %v10661_v0 = vld [vmem:[#allocation50_spill] sm:$0xff]  ;;  %v10667_v18 = vld [vmem:[#allocation39_spill] sm:$0xff]  ;;  %vm10703_vm7 = vmmov %vm10604_vm1 }
 0x31e   : > { %10653 = vst [vmem:[#allocation36_spill] sm:$0xff] %v8923_v9  ;;  %v3442_v4 = vsel %vm1189_vm8, %v3378_v63, %v8923_v9  ;;  %v8927_v34 = vpop.permute.xlu0 %3148  ;;  %v3448_v63 = vsel %vm1189_vm8, %v3384_v54, %v3255_v37  ;;  %v8963_v37 = vld [vmem:[#allocation2 + $0xd0] sm:$0xf] }
 0x31f   : > { %v3529_v26 = vrot.slane %v3442_v4, 1  ;;  %4915 = vrot.lane.b32.xlu1 %v8580_v5, %s6488_s25  ;;  %v3382_v5 = vsel %vm1123_vm6, %v3318_v8, %v8691_v11  ;;  %v3533_v8 = vrot.slane %v3448_v63, 1  ;;  %10660 = vst [vmem:[#allocation44_spill] sm:$0xff] %v8963_v37  ;;  %v4131_v63 = vshll.u32 %v10587_v27, 16 }
 0x320   : > { %6222 = vmatmul.mubr.msk.bf16.gmra.mxu1 %vm1255_vm10, %v3528_v32  ;;  %4112 = vrot.lane.b32.xlu0 %v8611_v12, %s6488_s25  ;;  %v4128_v12 = vshrl.u32 %v10587_v27, 16 }
 0x321   : > { %v8947_v33 = vpop.permute.xlu1 %3252  ;;  %v3531_v42 = vsel %vm10658_vm9, %v3529_v26, %v3530_v19  ;;  %v2222_v26 = vld [vmem:[#allocation2 + $0xcc] sm:$0xf]  ;;  %vm10706_vm9 = vmmov %vm10604_vm1 }
 0x322   : > { %10657 = vst [vmem:[#allocation35_spill] sm:$0xff] %v8947_v33  ;;  %v3446_v4 = vsel %vm1189_vm8, %v3382_v5, %v8947_v33  ;;  %6225 = vmatprep.mubr.msk.bf16.mxu1 %vm1255_vm10, %v3531_v42  ;;  %v8954_v32 = vpop.permute.xlu0 %3256  ;;  %v4051_v5 = vshrl.u32 %v10661_v0, 16  ;;  %v8968_v42 = vrot.slane %v4128_v12, 7  ;;  %v8980_v33 = vcombine.low %v2222_v26, %v8963_v37  ;;  %v10666_v12 = vld [vmem:[#allocation75_spill] sm:$0xff] }
 0x323   : > { %10659 = vst [vmem:[#allocation12_spill] sm:$0xff] %v8954_v32  ;;  %v3532_v48 = vrot.slane %v3446_v4, 1  ;;  %4917 = vrot.lane.b32.xlu1 %v8605_v38, %s6488_s25  ;;  %v10663_v4 = vrot.slane %v10589_v6, 7  ;;  %v3322_v6 = vsel %vm1057_vm4, %v10667_v18, %v10666_v12  ;;  %v3323_v27 = vsel %vm1057_vm4, %v8095_v29, %v10666_v12 }
 0x324   : > { %4116 = vrot.lane.b32.xlu0 %v8620_v45, %s6488_s25  ;;  %v10664_v45 = vrot.slane %v10590_v23, 7  ;;  %10665 = vst [vmem:[#allocation43_spill] sm:$0xff] %v8980_v33  ;;  %v10671_v23 = vld [vmem:[#allocation16_spill] sm:$0xff] }
 0x325   : > { %v8961_v19 = vpop.permute.xlu1 %3146  ;;  %v3534_v38 = vsel %vm10604_vm1, %v3532_v48, %v3533_v8  ;;  %v4133_v48 = vor.u32 %v4131_v63, %v8968_v42  ;;  %v8990_v8 = vrot.slane %v4051_v5, 7  ;;  %v4058_v5 = vshrl.u32 %v8980_v33, 16  ;;  %v9004_v63 = vld [vmem:[#allocation2 + $0xc8] ss:$0 sps:$4 sm:$0x11]  }
 0x326   : > { %v8966_v54 = vpop.permute.xlu0 %3260 }
 0x327   : > { %10662 = vst [vmem:[#allocation11_spill] sm:$0xff] %v8966_v54  ;;  %4953 = vrot.lane.b32.xlu1 %v10663_v4, %s6492_s10  ;;  %10669 = vst [vmem:[#allocation51_spill] sm:$0xff] %v8990_v8 }
 0x328   : > { %6226 = vmatmul.mubr.msk.bf16.gmra.mxu1 %vm1255_vm10, %v3534_v38  ;;  %4955 = vrot.lane.b32.xlu0 %v10664_v45, %s6492_s10  ;;  %v3386_v38 = vsel %vm1123_vm6, %v3322_v6, %v8703_v46  ;;  %v4054_v45 = vshll.u32 %v10661_v0, 16  ;;  %v3388_v6 = vsel %vm1123_vm6, %v3323_v27, %v8961_v19  ;;  %v9021_v27 = vld [vmem:[#allocation2 + $0x98] ss:$0 sps:$4 sm:$0x11]  }
 0x329   : > { %v8982_v9 = vpop.permute.xlu1 %3150  ;;  %v3450_v26 = vsel %vm1189_vm8, %v3386_v38, %v8954_v32  ;;  %10674 = vst [vmem:[#allocation49_spill] sm:$0xff] %v9021_v27 }
 0x32a   : > { %v8987_v4 = vpop.permute.xlu0 %3152  ;;  %v3535_v0 = vrot.slane %v3450_v26, 1 }
 0x32b   : > { %10668 = vst [vmem:[#allocation60_spill] sm:$0xff] %v8987_v4  ;;  %4919 = vrot.lane.b32.xlu1 %v8644_v61, %s6488_s25  ;;  %v10670_v61 = vld [vmem:[#allocation73_spill] sm:$0xff] }
 0x32c   : > { %4224 = vrot.lane.b32.xlu0 %v4133_v48, %s6490_s6  ;;  %v3326_v46 = vsel %vm1057_vm4, %v10671_v23, %v10670_v61  ;;  %v9015_v48 = vor.u32 %v4054_v45, %v8990_v8  ;;  %v3327_v23 = vsel %vm1057_vm4, %v9021_v27, %v10670_v61  ;;  %v9030_v45 = vrot.slane %v4058_v5, 7  ;;  %v9038_v27 = vld [vmem:[#allocation2 + $0xd4] ss:$0 sps:$4 sm:$0x11]  }
 0x32d   : > { %v3259_v37 = vpop.permute.xlu1 %3258  ;;  %v3390_v38 = vsel %vm1123_vm6, %v3326_v46, %v8927_v34  ;;  %v4061_v46 = vshll.u32 %v8980_v33, 16  ;;  %v3392_v26 = vsel %vm1123_vm6, %v3327_v23, %v8982_v9  ;;  %v4134_v61 = vshrl.u32 %v7513_v51, 16  ;;  %10677 = vst [vmem:[#allocation63_spill] sm:$0xff] %v9038_v27 }
 0x32e   : > { %v3452_v29 = vsel %vm1189_vm8, %v3388_v6, %v3259_v37  ;;  %v9012_v12 = vpop.permute.xlu0 %3156  ;;  %10673 = vst [vmem:[#allocation56_spill] sm:$0xff] %v9015_v48  ;;  %v3454_v37 = vsel %vm1189_vm8, %v3390_v38, %v8966_v54  ;;  %10675 = vst [vmem:[#allocation20_spill] sm:$0xff] %v9030_v45  ;;  %v10679_v23 = vrot.slane %v10593_v56, 7  ;;  %v10688_v56 = vld [vmem:[#allocation82_spill] sm:$0xff] }
 0x32f   : > { %10672 = vst [vmem:[#allocation23_spill] sm:$0xff] %v9012_v12  ;;  %v3536_v32 = vrot.slane %v3452_v29, 1  ;;  %4921 = vrot.lane.b32.xlu1 %v8654_v20, %s6488_s25  ;;  %v4889_v29 = vshll.u32 %v9004_v63, 16  ;;  %v3538_v54 = vrot.slane %v3454_v37, 1 }
 0x330   : > { %4120 = vrot.lane.b32.xlu0 %v9015_v48, %s6488_s25 }
 0x331   : > { %v3263_v20 = vpop.permute.xlu1 %3262  ;;  %v3537_v6 = vsel %vm10676_vm11, %v3535_v0, %v3536_v32  ;;  %v4891_v32 = vsel %vm1572_vm14, %v8990_v8, %v4889_v29  ;;  %v4063_v0 = vor.u32 %v4061_v46, %v9030_v45  ;;  %v4137_v29 = vshll.u32 %v7513_v51, 16  ;;  %v10687_v8 = vld [vmem:[#allocation80_spill] sm:$0xff]  ;;  %vm10714_vm11 = vmmov %vm10604_vm1 }
 0x332   : > { %v3456_v38 = vsel %vm1189_vm8, %v3392_v26, %v3263_v20  ;;  %6229 = vmatprep.mubr.msk.bf16.mxu1 %vm1255_vm10, %v3537_v6  ;;  %v9042_v5 = vpop.permute.xlu0 %3264  ;;  %v4136_v20 = vrot.slane %v4134_v61, 7  ;;  %v4892_v6 = vshll.u32 %v9038_v27, 16  ;;  %v10685_v61 = vld [vmem:[#allocation37_spill] sm:$0xff] }
 0x333   : > { %10678 = vst [vmem:[#allocation53_spill] sm:$0xff] %v9042_v5  ;;  %v3539_v33 = vrot.slane %v3456_v38, 1  ;;  %4957 = vrot.lane.b32.xlu1 %v10679_v23, %s6492_s10  ;;  %v10682_v38 = vld [vmem:[#allocation59_spill] sm:$0xff]  ;;  %v6447_v27 = vld [vmem:[%s10132_s3 + $0x28] sm:$0xff]  }
 0x334   : > { %4923 = vrot.lane.b32.xlu0 %v4891_v32, %s6488_s25  ;;  %v4139_v46 = vor.u32 %v4137_v29, %v4136_v20  ;;  %6241 = vmatprep.subr.bf16.mxu0 %v6447_v27 }
 0x335   : > { %v9051_v48 = vpop.permute.xlu1 %3154  ;;  %v3540_v26 = vsel %vm10680_vm12, %v3538_v54, %v3539_v33  ;;  %v4894_v33 = vsel %vm1572_vm14, %v9030_v45, %v4892_v6  ;;  %v10684_v54 = vld [vmem:[#allocation81_spill] sm:$0xff]  ;;  %6242 = vmatpush3.bf16.msra.mxu0 %v6447_v27  ;;  %vm10691_vm14 = vmmov %vm10604_vm1 }
 0x336   : > { %6230 = vmatmul.mubr.msk.bf16.gmra.mxu1 %vm1255_vm10, %v3540_v26  ;;  %v9056_v37 = vpop.permute.xlu0 %3268  ;;  %v3330_v32 = vsel %vm1057_vm4, %v10685_v61, %v10684_v54  ;;  %vm10718_vm12 = vmmov %vm10604_vm1 }
 0x337   : > { %10681 = vst [vmem:[#allocation68_spill] sm:$0xff] %v9056_v37  ;;  %4066 = vrot.lane.b32.xlu1 %v10682_v38, %s6488_s25  ;;  %v3394_v51 = vsel %vm1123_vm6, %v3330_v32, %v8987_v4  ;;  %v3334_v32 = vsel %vm1057_vm4, %v10688_v56, %v10687_v8 }
 0x338   : > { %4124 = vrot.lane.b32.xlu0 %v4063_v0, %s6488_s25  ;;  %v3331_v0 = vsel %vm1057_vm4, %v8159_v60, %v10684_v54  ;;  %v3458_v6 = vsel %vm1189_vm8, %v3394_v51, %v9042_v5  ;;  %v3398_v60 = vsel %vm1123_vm6, %v3334_v32, %v9012_v12  ;;  %v9095_v5 = vld [vmem:[#allocation2 + $0xb0] ss:$0 sps:$4 sm:$0x11]  }
 0x339   : > { %v9062_v23 = vpop.permute.xlu1 %3158  ;;  %v3396_v29 = vsel %vm1123_vm6, %v3331_v0, %v9051_v48  ;;  %v3541_v54 = vrot.slane %v3458_v6, 1  ;;  %v3335_v27 = vsel %vm1057_vm4, %v9095_v5, %v10687_v8  ;;  %v3462_v0 = vsel %vm1189_vm8, %v3398_v60, %v9056_v37  ;;  %v6448_v6 = vld [vmem:[%s10132_s3 + $0x20] sm:$0xff]  }
 0x33a   : > { %10683 = vst [vmem:[#allocation61_spill] sm:$0xff] %v9062_v23  ;;  %v9069_v26 = vpop.permute.xlu0 %3160  ;;  %v4140_v60 = vshrl.u32 %v7561_v53, 16  ;;  %6243 = vmatprep.subr.bf16.mxu0 %v6448_v6 }
 0x33b   : > { %10686 = vst [vmem:[#allocation54_spill] sm:$0xff] %v9069_v26  ;;  %4228 = vrot.lane.b32.xlu1 %v4139_v46, %s6490_s6  ;;  %6244 = vmatpush3.bf16.msra.mxu0 %v6448_v6 }
 0x33c   : > { %4925 = vrot.lane.b32.xlu0 %v4894_v33, %s6488_s25  ;;  %v10689_v33 = vld [vmem:[#allocation62_spill] sm:$0xff] }
 0x33d   : > { %v3267_v45 = vpop.permute.xlu1 %3266 }
 0x33e   : > { %v3460_v46 = vsel %vm1189_vm8, %v3396_v29, %v3267_v45  ;;  %v9089_v4 = vpop.permute.xlu0 %3164  ;;  %v10690_v45 = vld [vmem:[#allocation58_spill] sm:$0xff]  ;;  %v3400_v29 = vsel %vm1123_vm6, %v3335_v27, %v9062_v23 }
 0x33f   : > { %v3542_v51 = vrot.slane %v3460_v46, 1  ;;  %4070 = vrot.lane.b32.xlu1 %v10689_v33, %s6488_s25 }
 0x340   : > { %4288 = vrot.lane.b32.xlu0 %v10690_v45, %s6492_s10  ;;  %v3544_v45 = vrot.slane %v3462_v0, 1  ;;  %v6462_v0 = vld [vmem:[#allocation2 + $0xc4] sm:$0xf] }
 0x341   : > { %v3271_v32 = vpop.permute.xlu1 %3270  ;;  %v3543_v46 = vsel %vm10691_vm14, %v3541_v54, %v3542_v51  ;;  %vm10723_vm14 = vmmov %vm10604_vm1 }
 0x342   : > { %v3464_v12 = vsel %vm1189_vm8, %v3400_v29, %v3271_v32  ;;  %6233 = vmatprep.mubr.msk.bf16.mxu1 %vm1255_vm10, %v3543_v46  ;;  %v9112_v8 = vpop.permute.xlu0 %3272  ;;  %v4142_v29 = vrot.slane %v4140_v60, 7  ;;  %v4146_v32 = vshrl.u32 %v7558_v28, 16 }
 0x343   : > { %v3545_v37 = vrot.slane %v3464_v12, 1  ;;  %4226 = vrot.lane.b32.xlu1 %v8968_v42, %s6490_s6  ;;  %v2258_v12 = vld [vmem:[#allocation2 + $0xc0] sm:$0xe]  ;;  %v4143_v42 = vshll.u32 %v7561_v53, 16  ;;  %v10694_v53 = vld [vmem:[#allocation55_spill] sm:$0xff] }
 0x344   : > { %4929 = vrot.lane.b32.xlu0 %v9004_v63, %s6490_s6  ;;  %v9130_v6 = vcombine.low %v2258_v12, %v6462_v0  ;;  %v4149_v0 = vshll.u32 %v7558_v28, 16  ;;  %v10696_v28 = vrot.slane %v8068_v16, 7 }
 0x345   : > { %v9119_v27 = vpop.permute.xlu1 %3162  ;;  %v3546_v54 = vsel %vm10692_vm13, %v3544_v45, %v3545_v37  ;;  %v3338_v37 = vsel %vm1057_vm4, %v8583_v7, %v8634_v1  ;;  %v4145_v45 = vor.u32 %v4143_v42, %v4142_v29  ;;  %v10695_v7 = vld [vmem:[#allocation84_spill] sm:$0xff]  ;;  %vm10725_vm13 = vmmov %vm10604_vm1 }
 0x346   : > { %6234 = vmatmul.mubr.msk.bf16.gmra.mxu1 %vm1255_vm10, %v3546_v54  ;;  %v9123_v51 = vpop.permute.xlu0 %3276  ;;  %v9139_v54 = vrot.slane %v4146_v32, 7 }
 0x347   : > { %10693 = vst [vmem:[#allocation75_spill] sm:$0xff] %v9123_v51  ;;  %4230 = vrot.lane.b32.xlu1 %v4136_v20, %s6490_s6  ;;  %v3402_v20 = vsel %vm1123_vm6, %v3338_v37, %v9069_v26  ;;  %v3342_v37 = vsel %vm1057_vm4, %v9130_v6, %v10695_v7 }
 0x348   : > { %4290 = vrot.lane.b32.xlu0 %v10682_v38, %s6492_s10  ;;  %v3339_v38 = vsel %vm1057_vm4, %v10694_v53, %v8634_v1  ;;  %v3466_v12 = vsel %vm1189_vm8, %v3402_v20, %v9112_v8  ;;  %v4151_v1 = vor.u32 %v4149_v0, %v9139_v54  ;;  %v3406_v20 = vsel %vm1123_vm6, %v3342_v37, %v9089_v4 }
 0x349   : > { %v9132_v46 = vpop.permute.xlu1 %3166  ;;  %v3404_v32 = vsel %vm1123_vm6, %v3339_v38, %v9119_v27  ;;  %v3344_v38 = vsel %vm1057_vm4, %v9004_v63, %v10695_v7 }
 0x34a   : > { %v9137_v60 = vpop.permute.xlu0 %4064  ;;  %v3408_v0 = vsel %vm1123_vm6, %v3344_v38, %v9132_v46 }
 0x34b   : > { %4927 = vrot.lane.b32.xlu1 %v9130_v6, %s6490_s6 }
 0x34c   : > { %4232 = vrot.lane.b32.xlu0 %v4145_v45, %s6490_s6  ;;  %v3547_v45 = vrot.slane %v3466_v12, 1 }
 0x34d   : > { %v3275_v42 = vpop.permute.xlu1 %3274 }
 0x34e   : > { %v3468_v26 = vsel %vm1189_vm8, %v3404_v32, %v3275_v42  ;;  %v9158_v23 = vpop.permute.xlu0 %4068  ;;  %v3470_v32 = vsel %vm1189_vm8, %v3406_v20, %v9123_v51 }
 0x34f   : > { %v3548_v53 = vrot.slane %v3468_v26, 1  ;;  %4959 = vrot.lane.b32.xlu1 %v10696_v28, %s6492_s10  ;;  %v4963_v26 = vsel %vm1057_vm4, %v10603_v21, %v9137_v60  ;;  %v4152_v28 = vshrl.u32 %v7623_v59, 16  ;;  %v3550_v20 = vrot.slane %v3470_v32, 1 }
 0x350   : > { %4236 = vrot.lane.b32.xlu0 %v4151_v1, %s6490_s6  ;;  %v10698_v1 = vrot.slane %v8061_v52, 7 }
 0x351   : > { %v3279_v42 = vpop.permute.xlu1 %3278  ;;  %v3549_v12 = vsel %vm10697_vm15, %v3547_v45, %v3548_v53  ;;  %v5012_v45 = vsel %vm1123_vm6, %v4963_v26, %v10605_v62  ;;  %v10700_v62 = vld [vmem:[#allocation64_spill] sm:$0xff]  ;;  %vm10730_vm15 = vmmov %vm10604_vm1 }
 0x352   : > { %v3472_v37 = vsel %vm1189_vm8, %v3408_v0, %v3279_v42  ;;  %6237 = vmatprep.mubr.msk.bf16.mxu1 %vm1255_vm10, %v3549_v12  ;;  %v4932_v7 = vpop.permute.xlu0 %4931  ;;  %v4154_v42 = vrot.slane %v4152_v28, 7  ;;  %v4158_v12 = vshrl.u32 %v7619_v58, 16  ;;  %v4966_v28 = vsel %vm1057_vm4, %v10610_v36, %v9158_v23 }
 0x353   : > { %v3551_v51 = vrot.slane %v3472_v37, 1  ;;  %4961 = vrot.lane.b32.xlu1 %v10698_v1, %s6492_s10  ;;  %v5047_v38 = vsel %vm1189_vm8, %v5012_v45, %v4932_v7 }
 0x354   : > { %4234 = vrot.lane.b32.xlu0 %v4142_v29, %s6490_s6  ;;  %v5126_v26 = vrot.slane %v5047_v38, 1 }
 0x355   : > { %v4896_v53 = vpop.permute.xlu1 %4895  ;;  %v3552_v21 = vsel %vm10699_vm2, %v3550_v20, %v3551_v51  ;;  %vm10733_vm2 = vmmov %vm10604_vm1 }
 0x356   : > { %v4965_v0 = vsel %vm1057_vm4, %v8739_v30, %v4896_v53  ;;  %6238 = vmatmul.mubr.msk.bf16.gmra.mxu1 %vm1255_vm10, %v3552_v21  ;;  %v9192_v32 = vpop.permute.xlu0 %4072  ;;  %v4155_v30 = vshll.u32 %v7623_v59, 16  ;;  %v9210_v53 = vrot.slane %v4158_v12, 7  ;;  %v5014_v21 = vsel %vm1123_vm6, %v4966_v28, %v10612_v39  ;;  %v10704_v28 = vld [vmem:[#allocation7_spill] sm:$0xff] }
 0x357   : > { %v5013_v29 = vsel %vm1123_vm6, %v4965_v0, %v8081_v35  ;;  %4074 = vrot.lane.b32.xlu1 %v10700_v62, %s6488_s25  ;;  %v4969_v38 = vsel %vm1057_vm4, %v10616_v50, %v9192_v32 }
 0x358   : > { %v5048_v51 = vsel %vm1189_vm8, %v5013_v29, %v4932_v7  ;;  %4292 = vrot.lane.b32.xlu0 %v10689_v33, %s6492_s10  ;;  %v4157_v45 = vor.u32 %v4155_v30, %v4154_v42  ;;  %v10701_v7 = vld [vmem:[#allocation66_spill] sm:$0xff]  ;;  %v4161_v33 = vshll.u32 %v7619_v58, 16  ;;  %v5016_v39 = vsel %vm1123_vm6, %v4969_v38, %v8161_v47 }
 0x359   : > { %v5127_v37 = vrot.slane %v5048_v51, 1  ;;  %v4898_v20 = vpop.permute.xlu1 %4897  ;;  %v4167_v38 = vshll.u32 %v10704_v28, 16 }
 0x35a   : > { %v4968_v35 = vsel %vm1057_vm4, %v8755_v49, %v4898_v20  ;;  %v9208_v1 = vpop.permute.xlu0 %4076  ;;  %v4163_v51 = vor.u32 %v4161_v33, %v9210_v53 }
 0x35b   : > { %4078 = vrot.lane.b32.xlu1 %v10701_v7, %s6488_s25  ;;  %v5128_v59 = vsel %vm10702_vm5, %v5126_v26, %v5127_v37  ;;  %v5015_v36 = vsel %vm1123_vm6, %v4968_v35, %v10608_v55  ;;  %v4164_v35 = vshrl.u32 %v10704_v28, 16  ;;  %v10710_v28 = vld [vmem:[#allocation70_spill] sm:$0xff]  ;;  %vm10738_vm5 = vmmov %vm10604_vm1 }
 0x35c   : > { %6281 = vmatprep.mubr.msk.bf16.mxu1 %vm1255_vm10, %v5128_v59  ;;  %4240 = vrot.lane.b32.xlu0 %v4157_v45, %s6490_s6 }
 0x35d   : > { %v4934_v49 = vpop.permute.xlu1 %4933 }
 0x35e   : > { %v5050_v0 = vsel %vm1189_vm8, %v5014_v21, %v4934_v49  ;;  %v5051_v12 = vsel %vm1189_vm8, %v5015_v36, %v4934_v49  ;;  %v4936_v29 = vpop.permute.xlu0 %4935  ;;  %v4972_v36 = vsel %vm1057_vm4, %v10620_v41, %v9208_v1  ;;  %v4166_v21 = vrot.slane %v4164_v35, 7 }
 0x35f   : > { %v5129_v30 = vrot.slane %v5050_v0, 1  ;;  %v5130_v58 = vrot.slane %v5051_v12, 1  ;;  %4238 = vrot.lane.b32.xlu1 %v9139_v54, %s6490_s6  ;;  %v5053_v26 = vsel %vm1189_vm8, %v5016_v39, %v4936_v29  ;;  %v10707_v0 = vld [vmem:[#allocation47_spill] sm:$0xff]  ;;  %v4173_v35 = vshll.u32 %v10555_v3, 16 }
 0x360   : > { %4244 = vrot.lane.b32.xlu0 %v4163_v51, %s6490_s6  ;;  %v5132_v45 = vrot.slane %v5053_v26, 1 }
 0x361   : > { %v5131_v55 = vsel %vm10703_vm7, %v5129_v30, %v5130_v58  ;;  %v4900_v50 = vpop.permute.xlu1 %4899  ;;  %v10709_v30 = vld [vmem:[#allocation4_spill] sm:$0xff]  ;;  %vm10741_vm7 = vmmov %vm10604_vm1 }
 0x362   : > { %v4971_v37 = vsel %vm1057_vm4, %v8790_v24, %v4900_v50  ;;  %6282 = vmatmul.mubr.msk.bf16.vlgmr.msra.gmra.mxu1 %vm1255_vm10, %v5131_v55  ;;  %v9238_v20 = vpop.permute.xlu0 %4080  ;;  %v4170_v24 = vshrl.u32 %v10555_v3, 16  ;;  %v4169_v50 = vor.u32 %v4167_v38, %v4166_v21 }
 0x363   : > { %v5017_v54 = vsel %vm1123_vm6, %v4971_v37, %v8197_v40  ;;  %4294 = vrot.lane.b32.xlu1 %v10700_v62, %s6492_s10  ;;  %v10705_v62 = vld [vmem:[#allocation67_spill] sm:$0xff]  ;;  %v4975_v58 = vsel %vm1057_vm4, %v10709_v30, %v9238_v20 }
 0x364   : > { %v5054_v47 = vsel %vm1189_vm8, %v5017_v54, %v4936_v29  ;;  %4242 = vrot.lane.b32.xlu0 %v4154_v42, %s6490_s6  ;;  %v9266_v51 = vrot.slane %v4170_v24, 7  ;;  %v5020_v54 = vsel %vm1123_vm6, %v4975_v58, %v10628_v17  ;;  %v10715_v58 = vld [vmem:[#allocation57_spill] sm:$0xff] }
 0x365   : > { %v5133_v59 = vrot.slane %v5054_v47, 1  ;;  %v4902_v33 = vpop.permute.xlu1 %4901 }
 0x366   : > { %v4974_v49 = vsel %vm1057_vm4, %v8806_v22, %v4902_v33  ;;  %v9253_v40 = vpop.permute.xlu0 %4084  ;;  %v10708_v22 = vld [vmem:[#allocation46_spill] sm:$0xff] }
 0x367   : > { %4082 = vrot.lane.b32.xlu1 %v10705_v62, %s6488_s25  ;;  %v5134_v42 = vsel %vm10706_vm9, %v5132_v45, %v5133_v59  ;;  %v5019_v41 = vsel %vm1123_vm6, %v4974_v49, %v10707_v0  ;;  %v5018_v29 = vsel %vm1123_vm6, %v4972_v36, %v10708_v22  ;;  %v4175_v36 = vor.u32 %v4173_v35, %v9266_v51  ;;  %v10711_v49 = vld [vmem:[#allocation65_spill] sm:$0xff]  ;;  %vm10745_vm9 = vmmov %vm10604_vm1 }
 0x368   : > { %6285 = vmatprep.mubr.msk.bf16.mxu1 %vm1255_vm10, %v5134_v42  ;;  %4296 = vrot.lane.b32.xlu0 %v10701_v7, %s6492_s10 }
 0x369   : > { %v4938_v12 = vpop.permute.xlu1 %4937 }
 0x36a   : > { %v5056_v55 = vsel %vm1189_vm8, %v5018_v29, %v4938_v12  ;;  %v5057_v39 = vsel %vm1189_vm8, %v5019_v41, %v4938_v12  ;;  %v4940_v7 = vpop.permute.xlu0 %4939  ;;  %v10712_v41 = vld [vmem:[#allocation8_spill] sm:$0xff]  ;;  %v10713_v29 = vld [vmem:[#allocation18_spill] sm:$0xff] }
 0x36b   : > { %v5135_v26 = vrot.slane %v5056_v55, 1  ;;  %v5136_v37 = vrot.slane %v5057_v39, 1  ;;  %4086 = vrot.lane.b32.xlu1 %v10710_v28, %s6488_s25  ;;  %v5059_v59 = vsel %vm1189_vm8, %v5020_v54, %v4940_v7  ;;  %v4176_v30 = vshrl.u32 %v10713_v29, 16 }
 0x36c   : > { %4248 = vrot.lane.b32.xlu0 %v4169_v50, %s6490_s6  ;;  %v5138_v42 = vrot.slane %v5059_v59, 1 }
 0x36d   : > { %v4904_v47 = vpop.permute.xlu1 %4903  ;;  %v5137_v45 = vsel %vm10604_vm1, %v5135_v26, %v5136_v37  ;;  %v4178_v35 = vrot.slane %v4176_v30, 7 }
 0x36e   : > { %v4977_v33 = vsel %vm1057_vm4, %v8838_v10, %v4904_v47  ;;  %6286 = vmatmul.mubr.msk.bf16.gmra.mxu1 %vm1255_vm10, %v5137_v45  ;;  %v9284_v24 = vpop.permute.xlu0 %4088  ;;  %v4978_v10 = vsel %vm1057_vm4, %v10635_v15, %v9253_v40  ;;  %v10716_v47 = vld [vmem:[#allocation71_spill] sm:$0xff]  ;;  %v10717_v45 = vld [vmem:[#allocation72_spill] sm:$0xff] }
 0x36f   : > { %v5021_v3 = vsel %vm1123_vm6, %v4977_v33, %v10711_v49  ;;  %4246 = vrot.lane.b32.xlu1 %v9210_v53, %s6490_s6  ;;  %v5022_v39 = vsel %vm1123_vm6, %v4978_v10, %v10636_v44  ;;  %v4981_v50 = vsel %vm1057_vm4, %v10640_v14, %v9284_v24  ;;  %v4179_v44 = vshll.u32 %v10713_v29, 16  ;;  %v10719_v49 = vld [vmem:[#allocation31_spill] sm:$0xff]  ;;  %v10721_v10 = vld [vmem:[#allocation74_spill] sm:$0xff] }
 0x370   : > { %v5060_v17 = vsel %vm1189_vm8, %v5021_v3, %v4940_v7  ;;  %4252 = vrot.lane.b32.xlu0 %v4175_v36, %s6490_s6  ;;  %v4182_v7 = vshrl.u32 %v10575_v2, 16  ;;  %v5024_v59 = vsel %vm1123_vm6, %v4981_v50, %v10717_v45 }
 0x371   : > { %v5139_v38 = vrot.slane %v5060_v17, 1  ;;  %v4906_v0 = vpop.permute.xlu1 %4905 }
 0x372   : > { %v4980_v12 = vsel %vm1057_vm4, %v10712_v41, %v4906_v0  ;;  %v9298_v22 = vpop.permute.xlu0 %4092 }
 0x373   : > { %4298 = vrot.lane.b32.xlu1 %v10705_v62, %s6492_s10  ;;  %v5140_v53 = vsel %vm10714_vm11, %v5138_v42, %v5139_v38  ;;  %v5023_v55 = vsel %vm1123_vm6, %v4980_v12, %v10715_v58  ;;  %v4181_v42 = vor.u32 %v4179_v44, %v4178_v35  ;;  %v9330_v38 = vrot.slane %v4182_v7, 7  ;;  %vm10760_vm11 = vmmov %vm10604_vm1 }
 0x374   : > { %6289 = vmatprep.mubr.msk.bf16.mxu1 %vm1255_vm10, %v5140_v53  ;;  %4250 = vrot.lane.b32.xlu0 %v4166_v21, %s6490_s6  ;;  %v4185_v12 = vshll.u32 %v10575_v2, 16  ;;  %v4984_v58 = vsel %vm1057_vm4, %v10650_v57, %v9298_v22  ;;  %v10724_v2 = vld [vmem:[#allocation69_spill] sm:$0xff]  ;;  %v4188_v44 = vshrl.u32 %v10578_v13, 16 }
 0x375   : > { %v4942_v15 = vpop.permute.xlu1 %4941 }
 0x376   : > { %v5062_v62 = vsel %vm1189_vm8, %v5022_v39, %v4942_v15  ;;  %v5063_v26 = vsel %vm1189_vm8, %v5023_v55, %v4942_v15  ;;  %v4944_v37 = vpop.permute.xlu0 %4943  ;;  %v10722_v55 = vld [vmem:[#allocation9_spill] sm:$0xff]  ;;  %v4187_v7 = vor.u32 %v4185_v12, %v9330_v38 }
 0x377   : > { %v5141_v21 = vrot.slane %v5062_v62, 1  ;;  %v5142_v54 = vrot.slane %v5063_v26, 1  ;;  %4090 = vrot.lane.b32.xlu1 %v10716_v47, %s6488_s25  ;;  %v5065_v36 = vsel %vm1189_vm8, %v5024_v59, %v4944_v37  ;;  %v5026_v26 = vsel %vm1123_vm6, %v4984_v58, %v10652_v31  ;;  %v9388_v58 = vld [vmem:[#allocation2 + $0x8c] ss:$0 sps:$4 sm:$0x11]  }
 0x378   : > { %4300 = vrot.lane.b32.xlu0 %v10710_v28, %s6492_s10  ;;  %v10720_v28 = vld [vmem:[#allocation77_spill] sm:$0xff]  ;;  %v5144_v29 = vrot.slane %v5065_v36, 1 }
 0x379   : > { %v4908_v14 = vpop.permute.xlu1 %4907  ;;  %v5143_v33 = vsel %vm10718_vm12, %v5141_v21, %v5142_v54  ;;  %vm10761_vm12 = vmmov %vm10604_vm1 }
 0x37a   : > { %v4983_v3 = vsel %vm1057_vm4, %v10719_v49, %v4908_v14  ;;  %6290 = vmatmul.mubr.msk.bf16.gmra.mxu1 %vm1255_vm10, %v5143_v33  ;;  %v9328_v17 = vpop.permute.xlu0 %4096 }
 0x37b   : > { %v5025_v0 = vsel %vm1123_vm6, %v4983_v3, %v10720_v28  ;;  %4094 = vrot.lane.b32.xlu1 %v10721_v10, %s6488_s25  ;;  %v4190_v3 = vrot.slane %v4188_v44, 7  ;;  %v10727_v28 = vld [vmem:[#allocation10_spill] sm:$0xff] }
 0x37c   : > { %v5066_v41 = vsel %vm1189_vm8, %v5025_v0, %v4944_v37  ;;  %4256 = vrot.lane.b32.xlu0 %v4181_v42, %s6490_s6  ;;  %v4987_v37 = vsel %vm1057_vm4, %v10656_v43, %v9328_v17  ;;  %v10726_v42 = vld [vmem:[#allocation22_spill] sm:$0xff]  ;;  %v9379_v0 = vpop.f32.mrf.mxu1 }
 0x37d   : > { %v5145_v30 = vrot.slane %v5066_v41, 1  ;;  %v4910_v53 = vpop.permute.xlu1 %4909  ;;  %v5028_v31 = vsel %vm1123_vm6, %v4987_v37, %v8691_v11  ;;  %v10728_v11 = vld [vmem:[#allocation76_spill] sm:$0xff] }
 0x37e   : > { %v4986_v15 = vsel %vm1057_vm4, %v10722_v55, %v4910_v53  ;;  %v9344_v39 = vpop.permute.xlu0 %4100 }
 0x37f   : > { %4254 = vrot.lane.b32.xlu1 %v9266_v51, %s6490_s6  ;;  %v5146_v50 = vsel %vm10723_vm14, %v5144_v29, %v5145_v30  ;;  %v5027_v62 = vsel %vm1123_vm6, %v4986_v15, %v10724_v2  ;;  %v4990_v53 = vsel %vm1057_vm4, %v10667_v18, %v9344_v39  ;;  %v9399_v2 = vpop.f32.mrf.mxu1  ;;  %v4197_v18 = vshll.u32 %v10726_v42, 16 }
 0x380   : > { %6293 = vmatprep.mubr.msk.bf16.mxu1 %vm1255_vm10, %v5146_v50  ;;  %4260 = vrot.lane.b32.xlu0 %v4187_v7, %s6490_s6 }
 0x381   : > { %v4946_v57 = vpop.permute.xlu1 %4945 }
 0x382   : > { %v5068_v21 = vsel %vm1189_vm8, %v5026_v26, %v4946_v57  ;;  %v5069_v51 = vsel %vm1189_vm8, %v5027_v62, %v4946_v57  ;;  %v4948_v54 = vpop.permute.xlu0 %4947  ;;  %v10731_v26 = vld [vmem:[#allocation85_spill] sm:$0xff] }
 0x383   : > { %v5147_v45 = vrot.slane %v5068_v21, 1  ;;  %v5148_v59 = vrot.slane %v5069_v51, 1  ;;  %4302 = vrot.lane.b32.xlu1 %v10716_v47, %s6492_s10  ;;  %v5071_v33 = vsel %vm1189_vm8, %v5028_v31, %v4948_v54  ;;  %v4194_v47 = vshrl.u32 %v10726_v42, 16  ;;  %v10732_v21 = vld [vmem:[#allocation16_spill] sm:$0xff] }
 0x384   : > { %4258 = vrot.lane.b32.xlu0 %v4178_v35, %s6490_s6  ;;  %v5150_v12 = vrot.slane %v5071_v33, 1  ;;  %v5030_v37 = vsel %vm1123_vm6, %v4990_v53, %v10731_v26 }
 0x385   : > { %v4912_v14 = vpop.permute.xlu1 %4911  ;;  %v5149_v43 = vsel %vm10725_vm13, %v5147_v45, %v5148_v59  ;;  %v9394_v50 = vrot.slane %v4194_v47, 7  ;;  %v10734_v47 = vld [vmem:[#allocation49_spill] sm:$0xff] }
 0x386   : > { %v4989_v36 = vsel %vm1057_vm4, %v8935_v25, %v4912_v14  ;;  %6294 = vmatmul.mubr.msk.bf16.gmra.mxu1 %vm1255_vm10, %v5149_v43  ;;  %v9372_v49 = vpop.permute.xlu0 %4104  ;;  %v4191_v25 = vshll.u32 %v10578_v13, 16 }
 0x387   : > { %v5029_v35 = vsel %vm1123_vm6, %v4989_v36, %v10727_v28  ;;  %4098 = vrot.lane.b32.xlu1 %v10728_v11, %s6488_s25  ;;  %v4993_v51 = vsel %vm1057_vm4, %v10732_v21, %v9372_v49  ;;  %v4199_v59 = vor.u32 %v4197_v18, %v9394_v50 }
 0x388   : > { %v5072_v41 = vsel %vm1189_vm8, %v5029_v35, %v4948_v54  ;;  %4304 = vrot.lane.b32.xlu0 %v10721_v10, %s6492_s10  ;;  %v4193_v7 = vor.u32 %v4191_v25, %v4190_v3  ;;  %v10729_v10 = vld [vmem:[#allocation78_spill] sm:$0xff]  ;;  %v5032_v43 = vsel %vm1123_vm6, %v4993_v51, %v8927_v34  ;;  %v10739_v51 = vld [vmem:[#allocation60_spill] sm:$0xff] }
 0x389   : > { %v5151_v29 = vrot.slane %v5072_v41, 1  ;;  %v4914_v30 = vpop.permute.xlu1 %4913 }
 0x38a   : > { %v4992_v55 = vsel %vm1057_vm4, %v9388_v58, %v4914_v30  ;;  %v9392_v15 = vpop.permute.xlu0 %4108 }
 0x38b   : > { %4102 = vrot.lane.b32.xlu1 %v10729_v10, %s6488_s25  ;;  %v5152_v13 = vsel %vm10730_vm15, %v5150_v12, %v5151_v29  ;;  %v5031_v62 = vsel %vm1123_vm6, %v4992_v55, %v8961_v19  ;;  %v9416_v19 = vpop.f32.mrf.mxu1  ;;  %v4996_v55 = vsel %vm1057_vm4, %v10685_v61, %v9392_v15 }
 0x38c   : > { %6297 = vmatprep.mubr.msk.bf16.mxu1 %vm1255_vm10, %v5152_v13  ;;  %4264 = vrot.lane.b32.xlu0 %v4193_v7, %s6490_s6  ;;  %v9442_v13 = vld [vmem:[#allocation2 + $0xa4] ss:$0 sps:$4 sm:$0x11]  }
 0x38d   : > { %v4950_v57 = vpop.permute.xlu1 %4949  ;;  %v9433_v34 = vpop.f32.mrf.mxu1 }
 0x38e   : > { %v5074_v54 = vsel %vm1189_vm8, %v5030_v37, %v4950_v57  ;;  %v5075_v44 = vsel %vm1189_vm8, %v5031_v62, %v4950_v57  ;;  %v4952_v45 = vpop.permute.xlu0 %4951  ;;  %v10736_v62 = vld [vmem:[#allocation33_spill] sm:$0xff] }
 0x38f   : > { %v5153_v31 = vrot.slane %v5074_v54, 1  ;;  %v5154_v14 = vrot.slane %v5075_v44, 1  ;;  %4262 = vrot.lane.b32.xlu1 %v9330_v38, %s6490_s6  ;;  %v5077_v42 = vsel %vm1189_vm8, %v5032_v43, %v4952_v45  ;;  %v10735_v38 = vld [vmem:[#allocation34_spill] sm:$0xff]  ;;  %v9440_v7 = vpop.f32.mrf.mxu1  ;;  %v4206_v57 = vshrl.u32 %v10736_v62, 16 }
 0x390   : > { %4268 = vrot.lane.b32.xlu0 %v4199_v59, %s6490_s6  ;;  %v4200_v41 = vshrl.u32 %v10735_v38, 16  ;;  %v5156_v29 = vrot.slane %v5077_v42, 1  ;;  %v4203_v61 = vshll.u32 %v10735_v38, 16  ;;  %v5034_v54 = vsel %vm1123_vm6, %v4996_v55, %v10739_v51 }
 0x391   : > { %v4916_v33 = vpop.permute.xlu1 %4915  ;;  %v5155_v36 = vsel %vm10733_vm2, %v5153_v31, %v5154_v14  ;;  %v9460_v44 = vpop.f32.mrf.mxu1  ;;  %v9464_v43 = vrot.slane %v4206_v57, 7  ;;  %v4209_v42 = vshll.u32 %v10736_v62, 16 }
 0x392   : > { %v4995_v28 = vsel %vm1057_vm4, %v10734_v47, %v4916_v33  ;;  %6298 = vmatmul.mubr.msk.bf16.gmra.mxu1 %vm1255_vm10, %v5155_v36  ;;  %v9426_v35 = vpop.permute.xlu0 %4112  ;;  %v4202_v18 = vrot.slane %v4200_v41, 7  ;;  %v10740_v36 = vld [vmem:[#allocation79_spill] sm:$0xff] }
 0x393   : > { %v5033_v25 = vsel %vm1123_vm6, %v4995_v28, %v8982_v9  ;;  %4306 = vrot.lane.b32.xlu1 %v10728_v11, %s6492_s10  ;;  %v9474_v38 = vpop.f32.mrf.mxu1  ;;  %v10742_v41 = vld [vmem:[#allocation23_spill] sm:$0xff] }
 0x394   : > { %v5078_v12 = vsel %vm1189_vm8, %v5033_v25, %v4952_v45  ;;  %4266 = vrot.lane.b32.xlu0 %v4190_v3, %s6490_s6  ;;  %v10737_v3 = vld [vmem:[#allocation30_spill] sm:$0xff]  ;;  %v4205_v14 = vor.u32 %v4203_v61, %v4202_v18 }
 0x395   : > { %v5157_v30 = vrot.slane %v5078_v12, 1  ;;  %v4918_v53 = vpop.permute.xlu1 %4917 }
 0x396   : > { %v4998_v9 = vsel %vm1057_vm4, %v9442_v13, %v4918_v53  ;;  %v9446_v11 = vpop.permute.xlu0 %4116  ;;  %v10743_v53 = vld [vmem:[#allocation61_spill] sm:$0xff] }
 0x397   : > { %4106 = vrot.lane.b32.xlu1 %v10737_v3, %s6488_s25  ;;  %v5158_v26 = vsel %vm10738_vm5, %v5156_v29, %v5157_v30  ;;  %v5035_v37 = vsel %vm1123_vm6, %v4998_v9, %v9051_v48  ;;  %v4211_v29 = vor.u32 %v4209_v42, %v9464_v43 }
 0x398   : > { %6301 = vmatprep.mubr.msk.bf16.mxu1 %vm1255_vm10, %v5158_v26  ;;  %4308 = vrot.lane.b32.xlu0 %v10729_v10, %s6492_s10  ;;  %v4999_v10 = vsel %vm1057_vm4, %v10688_v56, %v9426_v35  ;;  %v10744_v26 = vld [vmem:[#allocation5_spill] sm:$0xff] }
 0x399   : > { %v4954_v21 = vpop.permute.xlu1 %4953  ;;  %v5036_v25 = vsel %vm1123_vm6, %v4999_v10, %v10742_v41  ;;  %v5002_v61 = vsel %vm1057_vm4, %v10744_v26, %v9446_v11  ;;  %v10746_v10 = vld [vmem:[#allocation54_spill] sm:$0xff]  ;;  %v10749_v26 = vld [vmem:[#allocation24_spill] sm:$0xff] }
 0x39a   : > { %v5080_v45 = vsel %vm1189_vm8, %v5034_v54, %v4954_v21  ;;  %v5081_v59 = vsel %vm1189_vm8, %v5035_v37, %v4954_v21  ;;  %v4956_v31 = vpop.permute.xlu0 %4955  ;;  %v9494_v21 = vld [vmem:[#allocation2 + $0xbc] ss:$0 sps:$4 sm:$0x11]  }
 0x39b   : > { %v5159_v33 = vrot.slane %v5080_v45, 1  ;;  %v5160_v48 = vrot.slane %v5081_v59, 1  ;;  %4110 = vrot.lane.b32.xlu1 %v10740_v36, %s6488_s25  ;;  %v5083_v30 = vsel %vm1189_vm8, %v5036_v25, %v4956_v31  ;;  %v10747_v25 = vld [vmem:[#allocation83_spill] sm:$0xff] }
 0x39c   : > { %4272 = vrot.lane.b32.xlu0 %v4205_v14, %s6490_s6  ;;  %v5162_v37 = vrot.slane %v5083_v30, 1 }
 0x39d   : > { %v4920_v47 = vpop.permute.xlu1 %4919  ;;  %v5161_v28 = vsel %vm10741_vm7, %v5159_v33, %v5160_v48  ;;  %v5038_v33 = vsel %vm1123_vm6, %v5002_v61, %v10746_v10 }
 0x39e   : > { %v5001_v56 = vsel %vm1057_vm4, %v9095_v5, %v4920_v47  ;;  %6302 = vmatmul.mubr.msk.bf16.gmra.mxu1 %vm1255_vm10, %v5161_v28  ;;  %v4225_v12 = vpop.permute.xlu0 %4224  ;;  %v9489_v5 = vpop.f32.mrf.mxu1  ;;  %v4218_v28 = vshrl.u32 %v8061_v52, 16 }
 0x39f   : > { %v5037_v55 = vsel %vm1123_vm6, %v5001_v56, %v10743_v53  ;;  %4270 = vrot.lane.b32.xlu1 %v9394_v50, %s6490_s6  ;;  %v4212_v50 = vshrl.u32 %v8068_v16, 16  ;;  %v4215_v56 = vshll.u32 %v8068_v16, 16  ;;  %v4221_v16 = vshll.u32 %v8061_v52, 16 }
 0x3a0   : > { %v5084_v9 = vsel %vm1189_vm8, %v5037_v55, %v4956_v31  ;;  %4276 = vrot.lane.b32.xlu0 %v4211_v29, %s6490_s6 }
 0x3a1   : > { %v5163_v62 = vrot.slane %v5084_v9, 1  ;;  %v4922_v57 = vpop.permute.xlu1 %4921  ;;  %v4214_v47 = vrot.slane %v4212_v50, 7  ;;  %v4220_v9 = vrot.slane %v4218_v28, 7  ;;  %v10752_v28 = vld [vmem:[#allocation14_spill] sm:$0xff] }
 0x3a2   : > { %v5004_v51 = vsel %vm1057_vm4, %v9494_v21, %v4922_v57  ;;  %v9498_v54 = vpop.permute.xlu0 %4120  ;;  %v9503_v45 = vpop.f32.mrf.mxu1 }
 0x3a3   : > { %4310 = vrot.lane.b32.xlu1 %v10737_v3, %s6492_s10  ;;  %v5164_v59 = vsel %vm10745_vm9, %v5162_v37, %v5163_v62  ;;  %v5039_v31 = vsel %vm1123_vm6, %v5004_v51, %v9119_v27  ;;  %v4217_v55 = vor.u32 %v4215_v56, %v4214_v47  ;;  %v10748_v62 = vld [vmem:[#allocation17_spill] sm:$0xff]  ;;  %v4223_v50 = vor.u32 %v4221_v16, %v4220_v9  ;;  %v10753_v16 = vld [vmem:[#allocation51_spill] sm:$0xff] }
 0x3a4   : > { %4274 = vrot.lane.b32.xlu0 %v4202_v18, %s6490_s6  ;;  %6305 = vmatprep.mubr.msk.bf16.mxu1 %vm1255_vm10, %v5164_v59  ;;  %v9519_v27 = vpop.f32.mrf.mxu1  ;;  %v4323_v57 = vsel %vm1057_vm4, %v10748_v62, %v9137_v60  ;;  %v10750_v59 = vld [vmem:[#allocation3_spill] sm:$0xff]  ;;  %v10751_v60 = vld [vmem:[#allocation29_spill] sm:$0xff] }
 0x3a5   : > { %v4958_v14 = vpop.permute.xlu1 %4957 }
 0x3a6   : > { %v5086_v48 = vsel %vm1189_vm8, %v5038_v33, %v4958_v14  ;;  %v5087_v42 = vsel %vm1189_vm8, %v5039_v31, %v4958_v14  ;;  %v9514_v3 = vpop.permute.xlu0 %4923  ;;  %v9534_v61 = vpop.f32.mrf.mxu1  ;;  %v4327_v31 = vsel %vm1057_vm4, %v10750_v59, %v9158_v23 }
 0x3a7   : > { %v5165_v41 = vrot.slane %v5086_v48, 1  ;;  %v5166_v18 = vrot.slane %v5087_v42, 1  ;;  %4114 = vrot.lane.b32.xlu1 %v10747_v25, %s6488_s25 }
 0x3a8   : > { %4312 = vrot.lane.b32.xlu0 %v10740_v36, %s6492_s10  ;;  %v4388_v36 = vsel %vm1123_vm6, %v4323_v57, %v4225_v12  ;;  %v9547_v12 = vpop.f32.mrf.mxu1 }
 0x3a9   : > { %v4067_v29 = vpop.permute.xlu1 %4066  ;;  %v5167_v30 = vsel %vm10604_vm1, %v5165_v41, %v5166_v18  ;;  %v4451_v14 = vsel %vm1189_vm8, %v4388_v36, %v10751_v60 }
 0x3aa   : > { %6306 = vmatmul.mubr.msk.bf16.gmra.mxu1 %vm1255_vm10, %v5167_v30  ;;  %v9526_v53 = vpop.permute.xlu0 %4124  ;;  %v4502_v33 = vshll.u32 %v4451_v14, 16 }
 0x3ab   : > { %4118 = vrot.lane.b32.xlu1 %v10749_v26, %s6488_s25 }
 0x3ac   : > { %4280 = vrot.lane.b32.xlu0 %v4217_v55, %s6490_s6  ;;  %v4504_v56 = vrot.slane %v4502_v33, 1 }
 0x3ad   : > { %v4229_v37 = vpop.permute.xlu1 %4228 }
 0x3ae   : > { %v9538_v51 = vpop.permute.xlu0 %4925  ;;  %v4392_v10 = vsel %vm1123_vm6, %v4327_v31, %v4229_v37  ;;  %v9551_v48 = vpop.f32.mrf.mxu1  ;;  %v4500_v37 = vshrl.u32 %v4451_v14, 16 }
 0x3af   : > { %4278 = vrot.lane.b32.xlu1 %v9464_v43, %s6490_s6  ;;  %v4454_v23 = vsel %vm1189_vm8, %v4392_v10, %v10752_v28  ;;  %v6466_v43 = vld [vmem:[#allocation2 + $0x20] ss:$0 sps:$4 sm:$0x11]  }
 0x3b0   : > { %4284 = vrot.lane.b32.xlu0 %v4223_v50, %s6490_s6  ;;  %v4325_v41 = vsel %vm1057_vm4, %v6466_v43, %v4067_v29  ;;  %v4512_v30 = vshll.u32 %v4454_v23, 16  ;;  %v9559_v55 = vpop.f32.mrf.mxu1  ;;  %v4505_v59 = vor.u32 %v4504_v56, %v4500_v37  ;;  %v4510_v43 = vshrl.u32 %v4454_v23, 16 }
 0x3b1   : > { %v4071_v52 = vpop.permute.xlu1 %4070  ;;  %v5005_v56 = vsel %vm1057_vm4, %v9130_v6, %v9498_v54 }
 0x3b2   : > { %v4289_v42 = vpop.permute.xlu0 %4288  ;;  %v4514_v31 = vrot.slane %v4512_v30, 1  ;;  %v9567_v60 = vpop.f32.mrf.mxu1  ;;  %v5007_v30 = vsel %vm1057_vm4, %v9004_v63, %v9514_v3 }
 0x3b3   : > { %4314 = vrot.lane.b32.xlu1 %v10747_v25, %s6492_s10  ;;  %v5041_v63 = vsel %vm1123_vm6, %v5007_v30, %v9132_v46 }
 0x3b4   : > { %4282 = vrot.lane.b32.xlu0 %v4214_v47, %s6490_s6  ;;  %v6467_v47 = vld [vmem:[#allocation2 + $0x2c] ss:$0 sps:$4 sm:$0x11]   ;;  %v9583_v23 = vpop.f32.mrf.mxu1 }
 0x3b5   : > { %v4227_v18 = vpop.permute.xlu1 %4226  ;;  %v4329_v29 = vsel %vm1057_vm4, %v6467_v47, %v4071_v52  ;;  %v2259_v52 = vld [vmem:[#allocation2 + $0xcc] sm:$0xe] }
 0x3b6   : > { %v4390_v62 = vsel %vm1123_vm6, %v4325_v41, %v4227_v18  ;;  %v4930_v57 = vpop.permute.xlu0 %4929 }
 0x3b7   : > { %v4453_v36 = vsel %vm1189_vm8, %v4390_v62, %v4289_v42  ;;  %4122 = vrot.lane.b32.xlu1 %v10753_v16, %s6488_s25  ;;  %v10754_v42 = vld [vmem:[#allocation20_spill] sm:$0xff]  ;;  %v4515_v62 = vor.u32 %v4514_v31, %v4510_v43 }
 0x3b8   : > { %v4506_v25 = vshll.u32 %v4453_v36, 16  ;;  %4286 = vrot.lane.b32.xlu0 %v4220_v9, %s6490_s6 }
 0x3b9   : > { %v4231_v50 = vpop.permute.xlu1 %4230 }
 0x3ba   : > { %v4508_v10 = vrot.slane %v4506_v25, 1  ;;  %v4394_v33 = vsel %vm1123_vm6, %v4329_v29, %v4231_v50  ;;  %v4291_v28 = vpop.permute.xlu0 %4290  ;;  %v10756_v25 = vld [vmem:[#allocation15_spill] sm:$0xff]  ;;  %v10757_v29 = vld [vmem:[#allocation44_spill] sm:$0xff] }
 0x3bb   : > { %4126 = vrot.lane.b32.xlu1 %v10754_v42, %s6488_s25  ;;  %v4456_v14 = vsel %vm1189_vm8, %v4394_v33, %v4291_v28  ;;  %v4331_v47 = vsel %vm1057_vm4, %v10756_v25, %v9192_v32  ;;  %v5949_v50 = vcombine.low %v2259_v52, %v10757_v29  ;;  %v10758_v33 = vld [vmem:[#allocation63_spill] sm:$0xff] }
 0x3bc   : > { %v4516_v41 = vshll.u32 %v4456_v14, 16  ;;  %4320 = vrot.lane.b32.xlu0 %v10753_v16, %s6492_s10  ;;  %v4509_v9 = vsel %vm426_vm0, %v4505_v59, %v4508_v10  ;;  %v10755_v16 = vld [vmem:[#allocation56_spill] sm:$0xff]  ;;  %v5040_v10 = vsel %vm1123_vm6, %v5005_v56, %v9089_v4  ;;  %v5011_v32 = vsel %vm1057_vm4, %v10758_v33, %v9538_v51 }
 0x3bd   : > { %v4928_v18 = vpop.permute.xlu1 %4927  ;;  %6245 = vmatprep.mubr.msk.bf16.mxu0 %vm1255_vm10, %v4509_v9  ;;  %v5009_v4 = vsel %vm1057_vm4, %v5949_v50, %v9526_v53  ;;  %v10759_v9 = vld [vmem:[#allocation26_spill] sm:$0xff]  ;;  %v5045_v51 = vsel %vm1123_vm6, %v5011_v32, %v4930_v57 }
 0x3be   : > { %v4518_v36 = vrot.slane %v4516_v41, 1  ;;  %v4233_v37 = vpop.permute.xlu0 %4232  ;;  %v5043_v30 = vsel %vm1123_vm6, %v5009_v4, %v4928_v18  ;;  %v10762_v18 = vld [vmem:[#allocation6_spill] sm:$0xff] }
 0x3bf   : > { %4318 = vrot.lane.b32.xlu1 %v10755_v16, %s6492_s10  ;;  %v4396_v3 = vsel %vm1123_vm6, %v4331_v47, %v4233_v37 }
 0x3c0   : > { %v4519_v6 = vsel %vm426_vm0, %v4515_v62, %v4518_v36  ;;  %v9592_v59 = vpop.f32.mrf.mxu1  ;;  %v4457_v52 = vsel %vm1189_vm8, %v4396_v3, %v10759_v9  ;;  %v4335_v3 = vsel %vm1057_vm4, %v10762_v18, %v9208_v1  ;;  %v10763_v1 = vld [vmem:[#allocation28_spill] sm:$0xff] }
 0x3c1   : > { %v4960_v31 = vpop.permute.xlu1 %4959  ;;  %6246 = vmatmul.mubr.msk.bf16.vlgmr.msra.gmra.mxu0 %vm1255_vm10, %v4519_v6  ;;  %v4522_v47 = vshll.u32 %v4457_v52, 16  ;;  %v4520_v9 = vshrl.u32 %v4457_v52, 16 }
 0x3c2   : > { %v5089_v28 = vsel %vm1189_vm8, %v5040_v10, %v4960_v31  ;;  %v5090_v42 = vsel %vm1189_vm8, %v5041_v63, %v4960_v31  ;;  %v9605_v14 = vpop.f32.mrf.mxu1  ;;  %v4237_v43 = vpop.permute.xlu0 %4236  ;;  %v6468_v31 = vld [vmem:[#allocation2 + $0x38] ss:$0 sps:$4 sm:$0x11]  }
 0x3c3   : > { %v5168_v46 = vrot.slane %v5089_v28, 1  ;;  %v5169_v41 = vrot.slane %v5090_v42, 1  ;;  %4316 = vrot.lane.b32.xlu1 %v10749_v26, %s6492_s10  ;;  %v4524_v28 = vrot.slane %v4522_v47, 1  ;;  %v4400_v42 = vsel %vm1123_vm6, %v4335_v3, %v4237_v43  ;;  %v10764_v43 = vld [vmem:[#allocation13_spill] sm:$0xff]  ;;  %s6007_s10 = sshll.u32 %s10787_s19, 9 }
 0x3c4   : > { %v9613_v56 = vpop.f32.mrf.mxu1  ;;  %v6469_v3 = vld [vmem:[#allocation2 + $0x44] ss:$0 sps:$4 sm:$0x11]   ;;  %s9827_s19 = scalar_lea.vmem %s10134_s5, %s6007_s10 }
 0x3c5   : > { %v4962_v62 = vpop.permute.xlu1 %4961  ;;  %v5170_v36 = vsel %vm10760_vm11, %v5168_v46, %v5169_v41 }
 0x3c6   : > { %v5092_v37 = vsel %vm1189_vm8, %v5043_v30, %v4962_v62  ;;  %v5093_v16 = vsel %vm1189_vm8, %v5045_v51, %v4962_v62  ;;  %v9620_v26 = vpop.f32.mrf.mxu1  ;;  %6309 = vmatprep.mubr.msk.bf16.mxu1 %vm1255_vm10, %v5170_v36  ;;  %v4235_v25 = vpop.permute.xlu0 %4234  ;;  %v4460_v62 = vsel %vm1189_vm8, %v4400_v42, %v10763_v1 }
 0x3c7   : > { %v5171_v29 = vrot.slane %v5092_v37, 1  ;;  %v5172_v50 = vrot.slane %v5093_v16, 1  ;;  %v4525_v16 = vor.u32 %v4524_v28, %v4520_v9  ;;  %v4530_v9 = vshrl.u32 %v4460_v62, 16 }
 0x3c8   : > { %v6211_v6 = vpop.f32.mrf.mxu1 }
 0x3c9   : > { %v4075_v63 = vpop.permute.xlu1 %4074  ;;  %3815 = vrot.lane.b32.xlu1 %v6211_v6, %s6487_s24  ;;  %v5173_v57 = vsel %vm10761_vm12, %v5171_v29, %v5172_v50  ;;  %v4532_v50 = vshll.u32 %v4460_v62, 16 }
 0x3ca   : > { %v4333_v10 = vsel %vm1057_vm4, %v6468_v31, %v4075_v63  ;;  %v3652_v33 = vpop.f32.mrf.mxu1  ;;  %6310 = vmatmul.mubr.msk.bf16.gmra.mxu1 %vm1255_vm10, %v5173_v57  ;;  %v4293_v32 = vpop.permute.xlu0 %4292 }
 0x3cb   : > { %v4398_v46 = vsel %vm1123_vm6, %v4333_v10, %v4235_v25  ;;  %v4339_v25 = vsel %vm1057_vm4, %v10764_v43, %v9238_v20  ;;  %v10765_v10 = vld [vmem:[#allocation32_spill] sm:$0xff] }
 0x3cc   : > { %v4459_v41 = vsel %vm1189_vm8, %v4398_v46, %v4293_v32  ;;  %v6212_v4 = vpop.f32.mrf.mxu1  ;;  %v4534_v32 = vrot.slane %v4532_v50, 1 }
 0x3cd   : > { %v4526_v51 = vshll.u32 %v4459_v41, 16  ;;  %v4079_v30 = vpop.permute.xlu1 %4078  ;;  %3811 = vrot.lane.b32.xlu1 %v3652_v33, %s6487_s24  ;;  %3817 = vrot.lane.b32.xlu0 %v6212_v4, %s6487_s24 }
 0x3ce   : > { %v3655_v36 = vpop.f32.mrf.mxu1  ;;  %v4241_v37 = vpop.permute.xlu0 %4240  ;;  %v4337_v31 = vsel %vm1057_vm4, %v6469_v3, %v4079_v30 }
 0x3cf   : > { %v4528_v47 = vrot.slane %v4526_v51, 1  ;;  %v4404_v52 = vsel %vm1123_vm6, %v4339_v25, %v4241_v37  ;;  %v6470_v25 = vld [vmem:[#allocation2 + $0x50] ss:$0 sps:$4 sm:$0x11]  }
 0x3d0   : > { %v6215_v29 = vpop.f32.mrf.mxu1  ;;  %v4463_v20 = vsel %vm1189_vm8, %v4404_v52, %v10765_v10 }
 0x3d1   : > { %v4239_v6 = vpop.permute.xlu1 %4238  ;;  %3823 = vrot.lane.b32.xlu1 %v6215_v29, %s6487_s24  ;;  %3813 = vrot.lane.b32.xlu0 %v3655_v36, %s6487_s24  ;;  %v4529_v63 = vsel %vm426_vm0, %v4525_v16, %v4528_v47  ;;  %v4542_v51 = vshll.u32 %v4463_v20, 16  ;;  %v4535_v36 = vor.u32 %v4534_v32, %v4530_v9  ;;  %v10766_v47 = vld [vmem:[#allocation21_spill] sm:$0xff]  ;;  %v4540_v10 = vshrl.u32 %v4463_v20, 16  ;;  %v10767_v32 = vld [vmem:[#allocation42_spill] sm:$0xff] }
 0x3d2   : > { %v3668_v57 = vpop.f32.mrf.mxu1  ;;  %6249 = vmatprep.mubr.msk.bf16.mxu0 %vm1255_vm10, %v4529_v63  ;;  %v4245_v18 = vpop.permute.xlu0 %4244  ;;  %v4402_v28 = vsel %vm1123_vm6, %v4337_v31, %v4239_v6  ;;  %v4343_v43 = vsel %vm1057_vm4, %v10766_v47, %v9253_v40  ;;  %v6471_v47 = vld [vmem:[#allocation2 + $0x5c] ss:$0 sps:$4 sm:$0x11]  }
 0x3d3   : > { %v4544_v62 = vrot.slane %v4542_v51, 1  ;;  %v4408_v6 = vsel %vm1123_vm6, %v4343_v43, %v4245_v18 }
 0x3d4   : > { %v6216_v33 = vpop.f32.mrf.mxu1 }
 0x3d5   : > { %v4295_v42 = vpop.permute.xlu1 %4294  ;;  %3819 = vrot.lane.b32.xlu1 %v3668_v57, %s6487_s24  ;;  %3825 = vrot.lane.b32.xlu0 %v6216_v33, %s6487_s24 }
 0x3d6   : > { %v4462_v46 = vsel %vm1189_vm8, %v4402_v28, %v4295_v42  ;;  %v3671_v41 = vpop.f32.mrf.mxu1  ;;  %v4243_v4 = vpop.permute.xlu0 %4242  ;;  %v4466_v28 = vsel %vm1189_vm8, %v4408_v6, %v10767_v32 }
 0x3d7   : > { %v4536_v1 = vshll.u32 %v4462_v46, 16  ;;  %v4545_v46 = vor.u32 %v4544_v62, %v4540_v10 }
 0x3d8   : > { %v6219_v30 = vpop.f32.mrf.mxu1 }
 0x3d9   : > { %v4538_v37 = vrot.slane %v4536_v1, 1  ;;  %v4083_v16 = vpop.permute.xlu1 %4082  ;;  %3831 = vrot.lane.b32.xlu1 %v6219_v30, %s6487_s24  ;;  %3821 = vrot.lane.b32.xlu0 %v3671_v41, %s6487_s24  ;;  %v4552_v1 = vshll.u32 %v4466_v28, 16 }
 0x3da   : > { %v4341_v29 = vsel %vm1057_vm4, %v6470_v25, %v4083_v16  ;;  %v3684_v50 = vpop.f32.mrf.mxu1  ;;  %v4297_v52 = vpop.permute.xlu0 %4296  ;;  %v10769_v25 = vld [vmem:[#allocation40_spill] sm:$0xff] }
 0x3db   : > { %v4406_v63 = vsel %vm1123_vm6, %v4341_v29, %v4243_v4  ;;  %v4539_v57 = vsel %vm426_vm0, %v4535_v36, %v4538_v37  ;;  %v10768_v4 = vld [vmem:[#allocation19_spill] sm:$0xff] }
 0x3dc   : > { %v4465_v3 = vsel %vm1189_vm8, %v4406_v63, %v4297_v52  ;;  %v6220_v31 = vpop.f32.mrf.mxu1  ;;  %6250 = vmatmul.mubr.msk.bf16.gmra.mxu0 %vm1255_vm10, %v4539_v57  ;;  %v4347_v9 = vsel %vm1057_vm4, %v10768_v4, %v9284_v24 }
 0x3dd   : > { %v4546_v33 = vshll.u32 %v4465_v3, 16  ;;  %v4087_v40 = vpop.permute.xlu1 %4086  ;;  %3827 = vrot.lane.b32.xlu1 %v3684_v50, %s6487_s24  ;;  %3833 = vrot.lane.b32.xlu0 %v6220_v31, %s6487_s24  ;;  %v4554_v50 = vrot.slane %v4552_v1, 1  ;;  %v4550_v3 = vshrl.u32 %v4466_v28, 16 }
 0x3de   : > { %v3687_v18 = vpop.f32.mrf.mxu1  ;;  %v4249_v42 = vpop.permute.xlu0 %4248  ;;  %v4345_v43 = vsel %vm1057_vm4, %v6471_v47, %v4087_v40 }
 0x3df   : > { %v4548_v41 = vrot.slane %v4546_v33, 1  ;;  %v4412_v20 = vsel %vm1123_vm6, %v4347_v9, %v4249_v42  ;;  %v4555_v40 = vor.u32 %v4554_v50, %v4550_v3  ;;  %v10770_v42 = vld [vmem:[#allocation27_spill] sm:$0xff] }
 0x3e0   : > { %v6223_v51 = vpop.f32.mrf.mxu1  ;;  %v4469_v24 = vsel %vm1189_vm8, %v4412_v20, %v10769_v25  ;;  %v10771_v25 = vld [vmem:[#allocation36_spill] sm:$0xff] }
 0x3e1   : > { %v4247_v30 = vpop.permute.xlu1 %4246  ;;  %3839 = vrot.lane.b32.xlu1 %v6223_v51, %s6487_s24  ;;  %3829 = vrot.lane.b32.xlu0 %v3687_v18, %s6487_s24  ;;  %v4549_v36 = vsel %vm426_vm0, %v4545_v46, %v4548_v41  ;;  %v4562_v31 = vshll.u32 %v4469_v24, 16  ;;  %v4351_v46 = vsel %vm1057_vm4, %v10770_v42, %v9298_v22  ;;  %v6472_v41 = vld [vmem:[#allocation2 + $0x68] ss:$0 sps:$4 sm:$0x11]   ;;  %v4560_v47 = vshrl.u32 %v4469_v24, 16 }
 0x3e2   : > { %v3700_v37 = vpop.f32.mrf.mxu1  ;;  %6253 = vmatprep.mubr.msk.bf16.mxu0 %vm1255_vm10, %v4549_v36  ;;  %v4253_v16 = vpop.permute.xlu0 %4252  ;;  %v4410_v52 = vsel %vm1123_vm6, %v4345_v43, %v4247_v30 }
 0x3e3   : > { %v4564_v28 = vrot.slane %v4562_v31, 1  ;;  %v4416_v1 = vsel %vm1123_vm6, %v4351_v46, %v4253_v16 }
 0x3e4   : > { %v6224_v29 = vpop.f32.mrf.mxu1 }
 0x3e5   : > { %v4299_v62 = vpop.permute.xlu1 %4298  ;;  %3835 = vrot.lane.b32.xlu1 %v3700_v37, %s6487_s24  ;;  %3841 = vrot.lane.b32.xlu0 %v6224_v29, %s6487_s24  ;;  %v4472_v29 = vsel %vm1189_vm8, %v4416_v1, %v10771_v25  ;;  %v4565_v50 = vor.u32 %v4564_v28, %v4560_v47  ;;  %v10774_v47 = vld [vmem:[#allocation41_spill] sm:$0xff] }
 0x3e6   : > { %v4468_v6 = vsel %vm1189_vm8, %v4410_v52, %v4299_v62  ;;  %v3703_v63 = vpop.f32.mrf.mxu1  ;;  %v4251_v57 = vpop.permute.xlu0 %4250  ;;  %v10772_v62 = vld [vmem:[#allocation25_spill] sm:$0xff] }
 0x3e7   : > { %v4556_v10 = vshll.u32 %v4468_v6, 16  ;;  %v4355_v6 = vsel %vm1057_vm4, %v10772_v62, %v9328_v17 }
 0x3e8   : > { %v6227_v33 = vpop.f32.mrf.mxu1 }
 0x3e9   : > { %v4558_v32 = vrot.slane %v4556_v10, 1  ;;  %v4091_v18 = vpop.permute.xlu1 %4090  ;;  %3847 = vrot.lane.b32.xlu1 %v6227_v33, %s6487_s24  ;;  %3837 = vrot.lane.b32.xlu0 %v3703_v63, %s6487_s24  ;;  %v6473_v33 = vld [vmem:[#allocation2 + $0x74] ss:$0 sps:$4 sm:$0x11]  }
 0x3ea   : > { %v4349_v4 = vsel %vm1057_vm4, %v6472_v41, %v4091_v18  ;;  %v3716_v9 = vpop.f32.mrf.mxu1  ;;  %v4301_v51 = vpop.permute.xlu0 %4300 }
 0x3eb   : > { %v4414_v20 = vsel %vm1123_vm6, %v4349_v4, %v4251_v57  ;;  %v4559_v30 = vsel %vm426_vm0, %v4555_v40, %v4558_v32  ;;  %v4572_v57 = vshll.u32 %v4472_v29, 16  ;;  %v10773_v32 = vld [vmem:[#allocation35_spill] sm:$0xff] }
 0x3ec   : > { %v4471_v36 = vsel %vm1189_vm8, %v4414_v20, %v4301_v51  ;;  %v6228_v37 = vpop.f32.mrf.mxu1  ;;  %6254 = vmatmul.mubr.msk.bf16.gmra.mxu0 %vm1255_vm10, %v4559_v30  ;;  %v4570_v51 = vshrl.u32 %v4472_v29, 16 }
 0x3ed   : > { %v4566_v43 = vshll.u32 %v4471_v36, 16  ;;  %v4095_v22 = vpop.permute.xlu1 %4094  ;;  %3843 = vrot.lane.b32.xlu1 %v3716_v9, %s6487_s24  ;;  %3849 = vrot.lane.b32.xlu0 %v6228_v37, %s6487_s24  ;;  %v4574_v42 = vrot.slane %v4572_v57, 1 }
 0x3ee   : > { %v4257_v16 = vpop.permute.xlu0 %4256  ;;  %v3719_v63 = vpop.f32.mrf.mxu1  ;;  %v4353_v40 = vsel %vm1057_vm4, %v6473_v33, %v4095_v22  ;;  %v6474_v22 = vld [vmem:[#allocation2 + $0x80] ss:$0 sps:$4 sm:$0x11]  }
 0x3ef   : > { %v4568_v52 = vrot.slane %v4566_v43, 1  ;;  %v4420_v24 = vsel %vm1123_vm6, %v4355_v6, %v4257_v16  ;;  %v4575_v30 = vor.u32 %v4574_v42, %v4570_v51  ;;  %v4359_v43 = vsel %vm1057_vm4, %v10774_v47, %v9344_v39  ;;  %v10776_v42 = vld [vmem:[#allocation38_spill] sm:$0xff] }
 0x3f0   : > { %v4475_v18 = vsel %vm1189_vm8, %v4420_v24, %v10773_v32 }
 0x3f1   : > { %v4255_v3 = vpop.permute.xlu1 %4254  ;;  %3845 = vrot.lane.b32.xlu0 %v3719_v63, %s6487_s24  ;;  %v4569_v31 = vsel %vm426_vm0, %v4565_v50, %v4568_v52  ;;  %v4582_v28 = vshll.u32 %v4475_v18, 16  ;;  %v4580_v39 = vshrl.u32 %v4475_v18, 16 }
 0x3f2   : > { %6257 = vmatprep.mubr.msk.bf16.mxu0 %vm1255_vm10, %v4569_v31  ;;  %v4261_v10 = vpop.permute.xlu0 %4260  ;;  %v4418_v17 = vsel %vm1123_vm6, %v4353_v40, %v4255_v3  ;;  %v10775_v3 = vld [vmem:[#allocation12_spill] sm:$0xff] }
 0x3f3   : > { %v4584_v52 = vrot.slane %v4582_v28, 1  ;;  %v4424_v29 = vsel %vm1123_vm6, %v4359_v43, %v4261_v10  ;;  %v10777_v28 = vld [vmem:[#allocation11_spill] sm:$0xff] }
 0x3f4   : > { %v4478_v31 = vsel %vm1189_vm8, %v4424_v29, %v10775_v3  ;;  %v10778_v29 = vld [vmem:[#allocation48_spill] sm:$0xff] }
 0x3f5   : > { %v4303_v46 = vpop.permute.xlu1 %4302  ;;  %v4585_v40 = vor.u32 %v4584_v52, %v4580_v39  ;;  %v4590_v43 = vshrl.u32 %v4478_v31, 16 }
 0x3f6   : > { %v4474_v41 = vsel %vm1189_vm8, %v4418_v17, %v4303_v46  ;;  %v6231_v4 = vpop.f32.mrf.mxu1  ;;  %v4259_v9 = vpop.permute.xlu0 %4258  ;;  %v4363_v17 = vsel %vm1057_vm4, %v10776_v42, %v9372_v49  ;;  %v4592_v46 = vshll.u32 %v4478_v31, 16  ;;  %v10779_v42 = vld [vmem:[#allocation53_spill] sm:$0xff] }
 0x3f7   : > { %v4576_v1 = vshll.u32 %v4474_v41, 16  ;;  %3855 = vrot.lane.b32.xlu1 %v6231_v4, %s6487_s24 }
 0x3f8   : > { %v3732_v20 = vpop.f32.mrf.mxu1 }
 0x3f9   : > { %v4578_v36 = vrot.slane %v4576_v1, 1  ;;  %v4099_v37 = vpop.permute.xlu1 %4098 }
 0x3fa   : > { %v4357_v25 = vsel %vm1057_vm4, %v6474_v22, %v4099_v37  ;;  %v6232_v16 = vpop.f32.mrf.mxu1  ;;  %v4305_v50 = vpop.permute.xlu0 %4304 }
 0x3fb   : > { %3851 = vrot.lane.b32.xlu1 %v3732_v20, %s6487_s24  ;;  %3857 = vrot.lane.b32.xlu0 %v6232_v16, %s6487_s24  ;;  %v4422_v62 = vsel %vm1123_vm6, %v4357_v25, %v4259_v9  ;;  %v4579_v6 = vsel %vm426_vm0, %v4575_v30, %v4578_v36  ;;  %v4594_v20 = vrot.slane %v4592_v46, 1 }
 0x3fc   : > { %v4477_v63 = vsel %vm1189_vm8, %v4422_v62, %v4305_v50  ;;  %6258 = vmatmul.mubr.msk.bf16.gmra.mxu0 %vm1255_vm10, %v4579_v6  ;;  %v3735_v33 = vpop.f32.mrf.mxu1  ;;  %v4367_v62 = vsel %vm1057_vm4, %v10778_v29, %v9392_v15  ;;  %v6475_v6 = vld [vmem:[#allocation2 + $0x98] ss:$0 sps:$4 sm:$0x11]  }
 0x3fd   : > { %v4586_v57 = vshll.u32 %v4477_v63, 16  ;;  %v4103_v24 = vpop.permute.xlu1 %4102  ;;  %v4595_v50 = vor.u32 %v4594_v20, %v4590_v43 }
 0x3fe   : > { %v4265_v10 = vpop.permute.xlu0 %4264  ;;  %v4361_v51 = vsel %vm1057_vm4, %v9388_v58, %v4103_v24 }
 0x3ff   : > { %v4588_v32 = vrot.slane %v4586_v57, 1  ;;  %3853 = vrot.lane.b32.xlu0 %v3735_v33, %s6487_s24  ;;  %v4428_v41 = vsel %vm1123_vm6, %v4363_v17, %v4265_v10 }
 0x400   : > { %v4481_v1 = vsel %vm1189_vm8, %v4428_v41, %v10777_v28 }
 0x401   : > { %v4263_v4 = vpop.permute.xlu1 %4262  ;;  %v4589_v18 = vsel %vm426_vm0, %v4585_v40, %v4588_v32  ;;  %v4602_v22 = vshll.u32 %v4481_v1, 16  ;;  %v4600_v15 = vshrl.u32 %v4481_v1, 16 }
 0x402   : > { %6261 = vmatprep.mubr.msk.bf16.mxu0 %vm1255_vm10, %v4589_v18  ;;  %v4269_v9 = vpop.permute.xlu0 %4268  ;;  %v4426_v30 = vsel %vm1123_vm6, %v4361_v51, %v4263_v4 }
 0x403   : > { %v4604_v24 = vrot.slane %v4602_v22, 1  ;;  %v4432_v3 = vsel %vm1123_vm6, %v4367_v62, %v4269_v9  ;;  %v10780_v9 = vld [vmem:[#allocation45_spill] sm:$0xff] }
 0x404   : > { %v4484_v17 = vsel %vm1189_vm8, %v4432_v3, %v10779_v42  ;;  %v4371_v51 = vsel %vm1057_vm4, %v10780_v9, %v9426_v35 }
 0x405   : > { %v4307_v36 = vpop.permute.xlu1 %4306  ;;  %v4605_v4 = vor.u32 %v4604_v24, %v4600_v15  ;;  %v4612_v28 = vshll.u32 %v4484_v17, 16  ;;  %v6476_v24 = vld [vmem:[#allocation2 + $0xb0] ss:$0 sps:$4 sm:$0x11]  }
 0x406   : > { %v4480_v49 = vsel %vm1189_vm8, %v4426_v30, %v4307_v36  ;;  %v6235_v37 = vpop.f32.mrf.mxu1  ;;  %v4267_v47 = vpop.permute.xlu0 %4266 }
 0x407   : > { %v4596_v25 = vshll.u32 %v4480_v49, 16  ;;  %3863 = vrot.lane.b32.xlu1 %v6235_v37, %s6487_s24  ;;  %v10781_v37 = vld [vmem:[#allocation68_spill] sm:$0xff]  ;;  %v4614_v43 = vrot.slane %v4612_v28, 1 }
 0x408   : > { %v3748_v16 = vpop.f32.mrf.mxu1 }
 0x409   : > { %v4598_v52 = vrot.slane %v4596_v25, 1  ;;  %v4107_v58 = vpop.permute.xlu1 %4106 }
 0x40a   : > { %v4365_v63 = vsel %vm1057_vm4, %v6475_v6, %v4107_v58  ;;  %v6236_v39 = vpop.f32.mrf.mxu1  ;;  %v4309_v57 = vpop.permute.xlu0 %4308 }
 0x40b   : > { %3859 = vrot.lane.b32.xlu1 %v3748_v16, %s6487_s24  ;;  %3865 = vrot.lane.b32.xlu0 %v6236_v39, %s6487_s24  ;;  %v4430_v31 = vsel %vm1123_vm6, %v4365_v63, %v4267_v47  ;;  %v4599_v33 = vsel %vm426_vm0, %v4595_v50, %v4598_v52  ;;  %v4610_v52 = vshrl.u32 %v4484_v17, 16  ;;  %v10782_v39 = vld [vmem:[#allocation52_spill] sm:$0xff] }
 0x40c   : > { %v4483_v10 = vsel %vm1189_vm8, %v4430_v31, %v4309_v57  ;;  %6262 = vmatmul.mubr.msk.bf16.gmra.mxu0 %vm1255_vm10, %v4599_v33  ;;  %v3751_v46 = vpop.f32.mrf.mxu1  ;;  %v4375_v57 = vsel %vm1057_vm4, %v10782_v39, %v9446_v11 }
 0x40d   : > { %v4606_v40 = vshll.u32 %v4483_v10, 16  ;;  %v4111_v32 = vpop.permute.xlu1 %4110  ;;  %v4615_v6 = vor.u32 %v4614_v43, %v4610_v52  ;;  %v6175_v52 = vpop.f32.mrf.mxu0 }
 0x40e   : > { %v4273_v41 = vpop.permute.xlu0 %4272  ;;  %v4369_v49 = vsel %vm1057_vm4, %v9442_v13, %v4111_v32 }
 0x40f   : > { %v4608_v18 = vrot.slane %v4606_v40, 1  ;;  %3861 = vrot.lane.b32.xlu0 %v3751_v46, %s6487_s24  ;;  %v4436_v20 = vsel %vm1123_vm6, %v4371_v51, %v4273_v41 }
 0x410   : > { %v4487_v47 = vsel %vm1189_vm8, %v4436_v20, %v10781_v37 }
 0x411   : > { %v4271_v30 = vpop.permute.xlu1 %4270  ;;  %v4609_v1 = vsel %vm426_vm0, %v4605_v4, %v4608_v18  ;;  %v4622_v58 = vshll.u32 %v4487_v47, 16  ;;  %v4620_v11 = vshrl.u32 %v4487_v47, 16 }
 0x412   : > { %6265 = vmatprep.mubr.msk.bf16.mxu0 %vm1255_vm10, %v4609_v1  ;;  %v4277_v36 = vpop.permute.xlu0 %4276  ;;  %v4434_v22 = vsel %vm1123_vm6, %v4369_v49, %v4271_v30 }
 0x413   : > { %v4624_v10 = vrot.slane %v4622_v58, 1  ;;  %v4440_v15 = vsel %vm1123_vm6, %v4375_v57, %v4277_v36 }
 0x414   : > { %v4490_v41 = vsel %vm1189_vm8, %v4440_v15, %v9112_v8 }
 0x415   : > { %v4311_v25 = vpop.permute.xlu1 %4310  ;;  %v4625_v9 = vor.u32 %v4624_v10, %v4620_v11  ;;  %v4632_v28 = vshll.u32 %v4490_v41, 16  ;;  %v6477_v10 = vld [vmem:[#allocation2 + $0xd4] ss:$0 sps:$4 sm:$0x11]  }
 0x416   : > { %v4486_v35 = vsel %vm1189_vm8, %v4434_v22, %v4311_v25  ;;  %v6239_v16 = vpop.f32.mrf.mxu1  ;;  %v4275_v50 = vpop.permute.xlu0 %4274 }
 0x417   : > { %v4616_v29 = vshll.u32 %v4486_v35, 16  ;;  %3871 = vrot.lane.b32.xlu1 %v6239_v16, %s6487_s24  ;;  %v4634_v37 = vrot.slane %v4632_v28, 1  ;;  %v4630_v16 = vshrl.u32 %v4490_v41, 16 }
 0x418   : > { %v3764_v62 = vpop.f32.mrf.mxu1 }
 0x419   : > { %v4618_v63 = vrot.slane %v4616_v29, 1  ;;  %v4115_v13 = vpop.permute.xlu1 %4114  ;;  %v4635_v58 = vor.u32 %v4634_v37, %v4630_v16 }
 0x41a   : > { %v4373_v3 = vsel %vm1057_vm4, %v6476_v24, %v4115_v13  ;;  %v6240_v31 = vpop.f32.mrf.mxu1  ;;  %v4313_v33 = vpop.permute.xlu0 %4312 }
 0x41b   : > { %3867 = vrot.lane.b32.xlu1 %v3764_v62, %s6487_s24  ;;  %3873 = vrot.lane.b32.xlu0 %v6240_v31, %s6487_s24  ;;  %v4438_v40 = vsel %vm1123_vm6, %v4373_v3, %v4275_v50  ;;  %v4619_v32 = vsel %vm426_vm0, %v4615_v6, %v4618_v63  ;;  %v2875_v3 = vpop.f32.mrf.mxu0  ;;  %v10784_v31 = vld [vmem:[#allocation75_spill] sm:$0xff] }
 0x41c   : > { %v4489_v42 = vsel %vm1189_vm8, %v4438_v40, %v4313_v33  ;;  %6266 = vmatmul.mubr.msk.bf16.gmra.mxu0 %vm1255_vm10, %v4619_v32  ;;  %v3767_v4 = vpop.f32.mrf.mxu1 }
 0x41d   : > { %v4626_v17 = vshll.u32 %v4489_v42, 16  ;;  %v4119_v46 = vpop.permute.xlu1 %4118 }
 0x41e   : > { %v4281_v18 = vpop.permute.xlu0 %4280  ;;  %v4377_v49 = vsel %vm1057_vm4, %v9494_v21, %v4119_v46  ;;  %v10783_v21 = vld [vmem:[#allocation50_spill] sm:$0xff] }
 0x41f   : > { %v4628_v51 = vrot.slane %v4626_v17, 1  ;;  %3869 = vrot.lane.b32.xlu0 %v3767_v4, %s6487_s24  ;;  %v4379_v6 = vsel %vm1057_vm4, %v10783_v21, %v9498_v54  ;;  %v10785_v54 = vld [vmem:[#allocation43_spill] sm:$0xff] }
 0x420   : > { %v4444_v39 = vsel %vm1123_vm6, %v4379_v6, %v4281_v18  ;;  %v4383_v32 = vsel %vm1057_vm4, %v10785_v54, %v9526_v53  ;;  %v6176_v18 = vpop.f32.mrf.mxu0 }
 0x421   : > { %v4279_v20 = vpop.permute.xlu1 %4278  ;;  %v4629_v30 = vsel %vm426_vm0, %v4625_v9, %v4628_v51  ;;  %v4493_v33 = vsel %vm1189_vm8, %v4444_v39, %v10784_v31  ;;  %v6478_v9 = vld [vmem:[#allocation2 + $0xc8] ss:$0 sps:$4 sm:$0x11]  }
 0x422   : > { %6269 = vmatprep.mubr.msk.bf16.mxu0 %vm1255_vm10, %v4629_v30  ;;  %v6283_v1 = vpop.f32.mrf.mxu1  ;;  %v4285_v36 = vpop.permute.xlu0 %4284  ;;  %v4442_v47 = vsel %vm1123_vm6, %v4377_v49, %v4279_v20  ;;  %v4642_v46 = vshll.u32 %v4493_v33, 16  ;;  %v4640_v16 = vshrl.u32 %v4493_v33, 16 }
 0x423   : > { %5436 = vrot.lane.b32.xlu1 %v6283_v1, %s6487_s24  ;;  %v4448_v41 = vsel %vm1123_vm6, %v4383_v32, %v4285_v36  ;;  %v2878_v37 = vpop.f32.mrf.mxu0 }
 0x424   : > { %v5273_v8 = vpop.f32.mrf.mxu1  ;;  %v4644_v53 = vrot.slane %v4642_v46, 1 }
 0x425   : > { %v4315_v43 = vpop.permute.xlu1 %4314 }
 0x426   : > { %v4492_v22 = vsel %vm1189_vm8, %v4442_v47, %v4315_v43  ;;  %v6284_v25 = vpop.f32.mrf.mxu1  ;;  %v4283_v35 = vpop.permute.xlu0 %4282 }
 0x427   : > { %v4636_v50 = vshll.u32 %v4492_v22, 16  ;;  %5432 = vrot.lane.b32.xlu1 %v5273_v8, %s6487_s24  ;;  %5438 = vrot.lane.b32.xlu0 %v6284_v25, %s6487_s24 }
 0x428   : > { %v5276_v63 = vpop.f32.mrf.mxu1 }
 0x429   : > { %v4638_v29 = vrot.slane %v4636_v50, 1  ;;  %v4123_v62 = vpop.permute.xlu1 %4122 }
 0x42a   : > { %v4287_v13 = vpop.permute.xlu0 %4286  ;;  %v4381_v51 = vsel %vm1057_vm4, %v6478_v9, %v4123_v62  ;;  %v4645_v62 = vor.u32 %v4644_v53, %v4640_v16 }
 0x42b   : > { %5434 = vrot.lane.b32.xlu0 %v5276_v63, %s6487_s24  ;;  %v4639_v57 = vsel %vm426_vm0, %v4635_v58, %v4638_v29  ;;  %v4446_v36 = vsel %vm1123_vm6, %v4381_v51, %v4283_v35  ;;  %v6179_v58 = vpop.f32.mrf.mxu0  ;;  %v9814_v35 = vld [vmem:[%s10133_s4] ss:$0 sm:$0xff] }
 0x42c   : > { %6270 = vmatmul.mubr.msk.bf16.gmra.mxu0 %vm1255_vm10, %v4639_v57 }
 0x42d   : > { %v4127_v24 = vpop.permute.xlu1 %4126  ;;  %v2891_v57 = vpop.f32.mrf.mxu0 }
 0x42e   : > { %v4386_v15 = vsel %vm1057_vm4, %v6477_v10, %v4127_v24  ;;  %v6287_v40 = vpop.f32.mrf.mxu1  ;;  %v4321_v11 = vpop.permute.xlu0 %4320 }
 0x42f   : > { %5444 = vrot.lane.b32.xlu1 %v6287_v40, %s6487_s24  ;;  %v4450_v42 = vsel %vm1123_vm6, %v4386_v15, %v4287_v13  ;;  %v6180_v32 = vpop.f32.mrf.mxu0 }
 0x430   : > { %v5289_v17 = vpop.f32.mrf.mxu1  ;;  %v4499_v30 = vsel %vm1189_vm8, %v4450_v42, %v4321_v11 }
 0x431   : > { %v4319_v4 = vpop.permute.xlu1 %4318  ;;  %v4656_v47 = vshll.u32 %v4499_v30, 16 }
 0x432   : > { %v4497_v28 = vsel %vm1189_vm8, %v4448_v41, %v4319_v4  ;;  %v6288_v20 = vpop.f32.mrf.mxu1 }
 0x433   : > { %v4652_v1 = vshll.u32 %v4497_v28, 16  ;;  %5440 = vrot.lane.b32.xlu1 %v5289_v17, %s6487_s24  ;;  %5446 = vrot.lane.b32.xlu0 %v6288_v20, %s6487_s24  ;;  %v4650_v43 = vshrl.u32 %v4497_v28, 16  ;;  %v4658_v6 = vrot.slane %v4656_v47, 1  ;;  %v2894_v20 = vpop.f32.mrf.mxu0 }
 0x434   : > { %v5292_v22 = vpop.f32.mrf.mxu1 }
 0x435   : > { %v4654_v49 = vrot.slane %v4652_v1, 1  ;;  %v4317_v8 = vpop.permute.xlu1 %4316  ;;  %v6183_v53 = vpop.f32.mrf.mxu0 }
 0x436   : > { %v4495_v25 = vsel %vm1189_vm8, %v4446_v36, %v4317_v8 }
 0x437   : > { %v4646_v50 = vshll.u32 %v4495_v25, 16  ;;  %5442 = vrot.lane.b32.xlu0 %v5292_v22, %s6487_s24  ;;  %v4655_v29 = vor.u32 %v4654_v49, %v4650_v43 }
 0x439   : > { %v4648_v21 = vrot.slane %v4646_v50, 1  ;;  %v4659_v33 = vsel %vm426_vm0, %v4655_v29, %v4658_v6 }
 0x43a   : > { %v6291_v63 = vpop.f32.mrf.mxu1 }
 0x43b   : > { %v3816_v13 = vpop.permute.xlu1 %3815  ;;  %5452 = vrot.lane.b32.xlu1 %v6291_v63, %s6487_s24  ;;  %v4649_v39 = vsel %vm426_vm0, %v4645_v62, %v4648_v21 }
 0x43c   : > { %v3909_v24 = vsel %vm1024_vm3, %v6175_v52, %v3816_v13  ;;  %6273 = vmatprep.mubr.msk.bf16.mxu0 %vm1255_vm10, %v4649_v39  ;;  %v5305_v31 = vpop.f32.mrf.mxu1 }
 0x43d   : > { %v3948_v10 = vadd.f32 %v9814_v35, %v3909_v24  ;;  %6274 = vmatmul.mubr.msk.bf16.gmra.mxu0 %vm1255_vm10, %v4659_v33 }
 0x43e   : > { %v6292_v15 = vpop.f32.mrf.mxu1 }
 0x43f   : > { %v3980_v40 = vmax.f32 %v3948_v10, 0.0  ;;  %v3812_v54 = vpop.permute.xlu1 %3811  ;;  %5448 = vrot.lane.b32.xlu1 %v5305_v31, %s6487_s24  ;;  %5454 = vrot.lane.b32.xlu0 %v6292_v15, %s6487_s24  ;;  %v3818_v52 = vpop.permute.xlu0 %3817 }
 0x440   : > { %v3907_v42 = vsel %vm1024_vm3, %v2875_v3, %v3812_v54  ;;  %v3910_v11 = vsel %vm1024_vm3, %v6176_v18, %v3818_v52  ;;  %v5308_v41 = vpop.f32.mrf.mxu1 }
 0x441   : > { %4012 = vst.msk [vmem:[%s9827_s19 + $0x20] sm:$0xff] %vm1057_vm4, %v3980_v40  ;;  %v3946_v17 = vadd.f32 %v9814_v35, %v3907_v42  ;;  %v3949_v46 = vadd.f32 %v9814_v35, %v3910_v11 }
 0x443   : > { %v3978_v4 = vmax.f32 %v3946_v17, 0.0  ;;  %v3981_v9 = vmax.f32 %v3949_v46, 0.0  ;;  %v3824_v51 = vpop.permute.xlu1 %3823  ;;  %5450 = vrot.lane.b32.xlu0 %v5308_v41, %s6487_s24  ;;  %v3814_v28 = vpop.permute.xlu0 %3813 }
 0x444   : > { %v3913_v30 = vsel %vm1024_vm3, %v6179_v58, %v3824_v51  ;;  %v3908_v3 = vsel %vm1024_vm3, %v2878_v37, %v3814_v28  ;;  %v2907_v58 = vpop.f32.mrf.mxu0 }
 0x445   : > { %4010 = vst.msk [vmem:[%s9827_s19] sm:$0xff] %vm1057_vm4, %v3978_v4  ;;  %4013 = vst.msk [vmem:[%s9827_s19 + $0x28] sm:$0xff] %vm1057_vm4, %v3981_v9  ;;  %v3952_v18 = vadd.f32 %v9814_v35, %v3913_v30  ;;  %v3947_v1 = vadd.f32 %v9814_v35, %v3908_v3 }
 0x446   : > { %v6295_v49 = vpop.f32.mrf.mxu1  ;;  %v6184_v31 = vpop.f32.mrf.mxu0 }
 0x447   : > { %v3984_v8 = vmax.f32 %v3952_v18, 0.0  ;;  %v3979_v36 = vmax.f32 %v3947_v1, 0.0  ;;  %v3820_v47 = vpop.permute.xlu1 %3819  ;;  %5460 = vrot.lane.b32.xlu1 %v6295_v49, %s6487_s24  ;;  %v3826_v43 = vpop.permute.xlu0 %3825 }
 0x448   : > { %v3911_v22 = vsel %vm1024_vm3, %v2891_v57, %v3820_v47  ;;  %v3914_v37 = vsel %vm1024_vm3, %v6180_v32, %v3826_v43  ;;  %v5321_v25 = vpop.f32.mrf.mxu1  ;;  %v2910_v17 = vpop.f32.mrf.mxu0 }
 0x449   : > { %4016 = vst.msk [vmem:[%s9827_s19 + $0x60] sm:$0xff] %vm1057_vm4, %v3984_v8  ;;  %4011 = vst.msk [vmem:[%s9827_s19 + $0x8] sm:$0xff] %vm1057_vm4, %v3979_v36  ;;  %v3950_v16 = vadd.f32 %v9814_v35, %v3911_v22  ;;  %v3953_v50 = vadd.f32 %v9814_v35, %v3914_v37 }
 0x44a   : > { %v6296_v29 = vpop.f32.mrf.mxu1 }
 0x44b   : > { %v3982_v62 = vmax.f32 %v3950_v16, 0.0  ;;  %v3985_v21 = vmax.f32 %v3953_v50, 0.0  ;;  %v3832_v6 = vpop.permute.xlu1 %3831  ;;  %5456 = vrot.lane.b32.xlu1 %v5321_v25, %s6487_s24  ;;  %5462 = vrot.lane.b32.xlu0 %v6296_v29, %s6487_s24  ;;  %v3822_v63 = vpop.permute.xlu0 %3821 }
 0x44c   : > { %v3917_v13 = vsel %vm1024_vm3, %v6183_v53, %v3832_v6  ;;  %v3912_v39 = vsel %vm1024_vm3, %v2894_v20, %v3822_v63  ;;  %v5324_v33 = vpop.f32.mrf.mxu1 }
 0x44d   : > { %4014 = vst.msk [vmem:[%s9827_s19 + $0x40] sm:$0xff] %vm1057_vm4, %v3982_v62  ;;  %4017 = vst.msk [vmem:[%s9827_s19 + $0x68] sm:$0xff] %vm1057_vm4, %v3985_v21  ;;  %v3956_v57 = vadd.f32 %v9814_v35, %v3917_v13  ;;  %v3951_v24 = vadd.f32 %v9814_v35, %v3912_v39 }
 0x44f   : > { %v3988_v10 = vmax.f32 %v3956_v57, 0.0  ;;  %v3983_v15 = vmax.f32 %v3951_v24, 0.0  ;;  %v3828_v40 = vpop.permute.xlu1 %3827  ;;  %5458 = vrot.lane.b32.xlu0 %v5324_v33, %s6487_s24  ;;  %v3834_v54 = vpop.permute.xlu0 %3833 }
 0x450   : > { %v3915_v52 = vsel %vm1024_vm3, %v2907_v58, %v3828_v40  ;;  %v3918_v32 = vsel %vm1024_vm3, %v6184_v31, %v3834_v54 }
 0x451   : > { %4020 = vst.msk [vmem:[%s9827_s19 + $0xa0] sm:$0xff] %vm1057_vm4, %v3988_v10  ;;  %4015 = vst.msk [vmem:[%s9827_s19 + $0x48] sm:$0xff] %vm1057_vm4, %v3983_v15  ;;  %v3954_v42 = vadd.f32 %v9814_v35, %v3915_v52  ;;  %v3957_v11 = vadd.f32 %v9814_v35, %v3918_v32 }
 0x452   : > { %v6299_v46 = vpop.f32.mrf.mxu1 }
 0x453   : > { %v3986_v41 = vmax.f32 %v3954_v42, 0.0  ;;  %v3989_v4 = vmax.f32 %v3957_v11, 0.0  ;;  %v3840_v9 = vpop.permute.xlu1 %3839  ;;  %5468 = vrot.lane.b32.xlu1 %v6299_v46, %s6487_s24  ;;  %v3830_v51 = vpop.permute.xlu0 %3829 }
 0x454   : > { %v3921_v28 = vsel %vm1024_vm3, %v9379_v0, %v3840_v9  ;;  %v3916_v20 = vsel %vm1024_vm3, %v2910_v17, %v3830_v51  ;;  %v5337_v30 = vpop.f32.mrf.mxu1 }
 0x455   : > { %4018 = vst.msk [vmem:[%s9827_s19 + $0x80] sm:$0xff] %vm1057_vm4, %v3986_v41  ;;  %4021 = vst.msk [vmem:[%s9827_s19 + $0xa8] sm:$0xff] %vm1057_vm4, %v3989_v4  ;;  %v3960_v3 = vadd.f32 %v9814_v35, %v3921_v28  ;;  %v3955_v18 = vadd.f32 %v9814_v35, %v3916_v20 }
 0x456   : > { %v6300_v1 = vpop.f32.mrf.mxu1 }
 0x457   : > { %v3992_v53 = vmax.f32 %v3960_v3, 0.0  ;;  %v3987_v49 = vmax.f32 %v3955_v18, 0.0  ;;  %v3836_v8 = vpop.permute.xlu1 %3835  ;;  %5464 = vrot.lane.b32.xlu1 %v5337_v30, %s6487_s24  ;;  %5470 = vrot.lane.b32.xlu0 %v6300_v1, %s6487_s24  ;;  %v3842_v0 = vpop.permute.xlu0 %3841 }
 0x458   : > { %v3919_v36 = vsel %vm1024_vm3, %v9399_v2, %v3836_v8  ;;  %v3922_v47 = vsel %vm1024_vm3, %v9416_v19, %v3842_v0  ;;  %v5340_v37 = vpop.f32.mrf.mxu1 }
 0x459   : > { %4024 = vst.msk [vmem:[%s9827_s19 + $0xe0] sm:$0xff] %vm1057_vm4, %v3992_v53  ;;  %4019 = vst.msk [vmem:[%s9827_s19 + $0x88] sm:$0xff] %vm1057_vm4, %v3987_v49  ;;  %v3958_v43 = vadd.f32 %v9814_v35, %v3919_v36  ;;  %v3961_v22 = vadd.f32 %v9814_v35, %v3922_v47 }
 0x45b   : > { %v3990_v25 = vmax.f32 %v3958_v43, 0.0  ;;  %v3993_v16 = vmax.f32 %v3961_v22, 0.0  ;;  %v3848_v50 = vpop.permute.xlu1 %3847  ;;  %5466 = vrot.lane.b32.xlu0 %v5340_v37, %s6487_s24  ;;  %v3838_v58 = vpop.permute.xlu0 %3837 }
 0x45c   : > { %v3925_v2 = vsel %vm1024_vm3, %v9440_v7, %v3848_v50  ;;  %v3920_v19 = vsel %vm1024_vm3, %v9433_v34, %v3838_v58 }
 0x45d   : > { %4022 = vst.msk [vmem:[%s9827_s19 + $0xc0] sm:$0xff] %vm1057_vm4, %v3990_v25  ;;  %4025 = vst.msk [vmem:[%s9827_s19 + $0xe8] sm:$0xff] %vm1057_vm4, %v3993_v16  ;;  %v3964_v29 = vadd.f32 %v9814_v35, %v3925_v2  ;;  %v3959_v62 = vadd.f32 %v9814_v35, %v3920_v19 }
 0x45e   : > { %v6303_v21 = vpop.f32.mrf.mxu1 }
 0x45f   : > { %v3996_v6 = vmax.f32 %v3964_v29, 0.0  ;;  %v3991_v63 = vmax.f32 %v3959_v62, 0.0  ;;  %v3844_v13 = vpop.permute.xlu1 %3843  ;;  %5476 = vrot.lane.b32.xlu1 %v6303_v21, %s6487_s24  ;;  %v3850_v7 = vpop.permute.xlu0 %3849 }
 0x460   : > { %v3923_v34 = vsel %vm1024_vm3, %v9460_v44, %v3844_v13  ;;  %v3926_v39 = vsel %vm1024_vm3, %v9474_v38, %v3850_v7  ;;  %v5353_v57 = vpop.f32.mrf.mxu1 }
 0x461   : > { %4028 = vst.msk [vmem:[%s9827_s19 + $0x120] sm:$0xff] %vm1057_vm4, %v3996_v6  ;;  %4023 = vst.msk [vmem:[%s9827_s19 + $0xc8] sm:$0xff] %vm1057_vm4, %v3991_v63  ;;  %v3962_v24 = vadd.f32 %v9814_v35, %v3923_v34  ;;  %v3965_v31 = vadd.f32 %v9814_v35, %v3926_v39 }
 0x462   : > { %v6304_v33 = vpop.f32.mrf.mxu1 }
 0x463   : > { %v3994_v10 = vmax.f32 %v3962_v24, 0.0  ;;  %v3997_v15 = vmax.f32 %v3965_v31, 0.0  ;;  %5472 = vrot.lane.b32.xlu1 %v5353_v57, %s6487_s24  ;;  %5478 = vrot.lane.b32.xlu0 %v6304_v33, %s6487_s24  ;;  %v3846_v44 = vpop.permute.xlu0 %3845 }
 0x464   : > { %v3924_v38 = vsel %vm1024_vm3, %v9489_v5, %v3846_v44  ;;  %v5356_v54 = vpop.f32.mrf.mxu1 }
 0x465   : > { %4026 = vst.msk [vmem:[%s9827_s19 + $0x100] sm:$0xff] %vm1057_vm4, %v3994_v10  ;;  %4029 = vst.msk [vmem:[%s9827_s19 + $0x128] sm:$0xff] %vm1057_vm4, %v3997_v15  ;;  %v3963_v40 = vadd.f32 %v9814_v35, %v3924_v38 }
 0x467   : > { %v3995_v52 = vmax.f32 %v3963_v40, 0.0  ;;  %5474 = vrot.lane.b32.xlu0 %v5356_v54, %s6487_s24 }
 0x469   : > { %4027 = vst.msk [vmem:[%s9827_s19 + $0x108] sm:$0xff] %vm1057_vm4, %v3995_v52  ;;  %v3856_v32 = vpop.permute.xlu1 %3855 }
 0x46a   : > { %v3929_v42 = vsel %vm1024_vm3, %v9503_v45, %v3856_v32  ;;  %v6307_v11 = vpop.f32.mrf.mxu1 }
 0x46b   : > { %v3968_v5 = vadd.f32 %v9814_v35, %v3929_v42  ;;  %5484 = vrot.lane.b32.xlu1 %v6307_v11, %s6487_s24 }
 0x46c   : > { %v5369_v17 = vpop.f32.mrf.mxu1 }
 0x46d   : > { %v4000_v46 = vmax.f32 %v3968_v5, 0.0  ;;  %v3852_v41 = vpop.permute.xlu1 %3851  ;;  %v3858_v4 = vpop.permute.xlu0 %3857 }
 0x46e   : > { %v3927_v9 = vsel %vm1024_vm3, %v9519_v27, %v3852_v41  ;;  %v3930_v51 = vsel %vm1024_vm3, %v9534_v61, %v3858_v4  ;;  %v6308_v28 = vpop.f32.mrf.mxu1 }
 0x46f   : > { %4032 = vst.msk [vmem:[%s9827_s19 + $0x160] sm:$0xff] %vm1057_vm4, %v4000_v46  ;;  %v3966_v45 = vadd.f32 %v9814_v35, %v3927_v9  ;;  %v3969_v20 = vadd.f32 %v9814_v35, %v3930_v51  ;;  %5480 = vrot.lane.b32.xlu1 %v5369_v17, %s6487_s24  ;;  %5486 = vrot.lane.b32.xlu0 %v6308_v28, %s6487_s24 }
 0x470   : > { %v5372_v1 = vpop.f32.mrf.mxu1 }
 0x471   : > { %v3998_v30 = vmax.f32 %v3966_v45, 0.0  ;;  %v4001_v3 = vmax.f32 %v3969_v20, 0.0  ;;  %v3854_v18 = vpop.permute.xlu0 %3853 }
 0x472   : > { %v3928_v27 = vsel %vm1024_vm3, %v9547_v12, %v3854_v18 }
 0x473   : > { %4030 = vst.msk [vmem:[%s9827_s19 + $0x140] sm:$0xff] %vm1057_vm4, %v3998_v30  ;;  %4033 = vst.msk [vmem:[%s9827_s19 + $0x168] sm:$0xff] %vm1057_vm4, %v4001_v3  ;;  %v3967_v61 = vadd.f32 %v9814_v35, %v3928_v27  ;;  %5482 = vrot.lane.b32.xlu0 %v5372_v1, %s6487_s24 }
 0x475   : > { %v3999_v53 = vmax.f32 %v3967_v61, 0.0 }
 0x477   : > { %4031 = vst.msk [vmem:[%s9827_s19 + $0x148] sm:$0xff] %vm1057_vm4, %v3999_v53 }
 0x479   : > { %v3864_v49 = vpop.permute.xlu1 %3863 }
 0x47a   : > { %v3933_v8 = vsel %vm1024_vm3, %v9551_v48, %v3864_v49 }
 0x47b   : > { %v3972_v0 = vadd.f32 %v9814_v35, %v3933_v8 }
 0x47d   : > { %v4004_v12 = vmax.f32 %v3972_v0, 0.0  ;;  %v3860_v36 = vpop.permute.xlu1 %3859  ;;  %v3866_v47 = vpop.permute.xlu0 %3865 }
 0x47e   : > { %v3931_v43 = vsel %vm1024_vm3, %v9559_v55, %v3860_v36  ;;  %v3934_v22 = vsel %vm1024_vm3, %v9567_v60, %v3866_v47 }
 0x47f   : > { %4036 = vst.msk [vmem:[%s9827_s19 + $0x1a0] sm:$0xff] %vm1057_vm4, %v4004_v12  ;;  %v3970_v37 = vadd.f32 %v9814_v35, %v3931_v43  ;;  %v3973_v25 = vadd.f32 %v9814_v35, %v3934_v22 }
 0x481   : > { %v4002_v16 = vmax.f32 %v3970_v37, 0.0  ;;  %v4005_v48 = vmax.f32 %v3973_v25, 0.0  ;;  %v3862_v50 = vpop.permute.xlu0 %3861  ;;  %v6247_v13 = vpop.f32.mrf.mxu0 }
 0x482   : > { %v3932_v58 = vsel %vm1024_vm3, %v9583_v23, %v3862_v50 }
 0x483   : > { %4034 = vst.msk [vmem:[%s9827_s19 + $0x180] sm:$0xff] %vm1057_vm4, %v4002_v16  ;;  %4037 = vst.msk [vmem:[%s9827_s19 + $0x1a8] sm:$0xff] %vm1057_vm4, %v4005_v48  ;;  %v3971_v55 = vadd.f32 %v9814_v35, %v3932_v58 }
 0x485   : > { %v4003_v60 = vmax.f32 %v3971_v55, 0.0 }
 0x487   : > { %4035 = vst.msk [vmem:[%s9827_s19 + $0x188] sm:$0xff] %vm1057_vm4, %v4003_v60 }
 0x489   : > { %v3872_v2 = vpop.permute.xlu1 %3871 }
 0x48a   : > { %v3937_v19 = vsel %vm1024_vm3, %v9592_v59, %v3872_v2  ;;  %v6311_v29 = vpop.f32.mrf.mxu1 }
 0x48b   : > { %v3976_v62 = vadd.f32 %v9814_v35, %v3937_v19 }
 0x48c   : > { %v5385_v21 = vpop.f32.mrf.mxu1 }
 0x48d   : > { %v4008_v6 = vmax.f32 %v3976_v62, 0.0  ;;  %v3868_v23 = vpop.permute.xlu1 %3867  ;;  %5488 = vrot.lane.b32.xlu1 %v5385_v21, %s6487_s24  ;;  %v3874_v63 = vpop.permute.xlu0 %3873 }
 0x48e   : > { %v3935_v7 = vsel %vm1024_vm3, %v9605_v14, %v3868_v23  ;;  %v3938_v34 = vsel %vm1024_vm3, %v9613_v56, %v3874_v63  ;;  %v6312_v39 = vpop.f32.mrf.mxu1  ;;  %v4759_v14 = vpop.f32.mrf.mxu0 }
 0x48f   : > { %4040 = vst.msk [vmem:[%s9827_s19 + $0x1e0] sm:$0xff] %vm1057_vm4, %v4008_v6  ;;  %v3974_v59 = vadd.f32 %v9814_v35, %v3935_v7  ;;  %v3977_v57 = vadd.f32 %v9814_v35, %v3938_v34 }
 0x490   : > { %v5388_v24 = vpop.f32.mrf.mxu1  ;;  %v6248_v40 = vpop.f32.mrf.mxu0 }
 0x491   : > { %v4006_v31 = vmax.f32 %v3974_v59, 0.0  ;;  %v4009_v33 = vmax.f32 %v3977_v57, 0.0  ;;  %5492 = vrot.lane.b32.xlu1 %v6311_v29, %s6487_s24  ;;  %5490 = vrot.lane.b32.xlu0 %v5388_v24, %s6487_s24  ;;  %v3870_v10 = vpop.permute.xlu0 %3869 }
 0x492   : > { %v3936_v56 = vsel %vm1024_vm3, %v9620_v26, %v3870_v10  ;;  %v4762_v11 = vpop.f32.mrf.mxu0 }
 0x493   : > { %4038 = vst.msk [vmem:[%s9827_s19 + $0x1c0] sm:$0xff] %vm1057_vm4, %v4006_v31  ;;  %4041 = vst.msk [vmem:[%s9827_s19 + $0x1e8] sm:$0xff] %vm1057_vm4, %v4009_v33  ;;  %v3975_v15 = vadd.f32 %v9814_v35, %v3936_v56 }
 0x495   : > { %v4007_v44 = vmax.f32 %v3975_v15, 0.0  ;;  %v5437_v38 = vpop.permute.xlu1 %5436  ;;  %5494 = vrot.lane.b32.xlu0 %v6312_v39, %s6487_s24 }
 0x496   : > { %v5530_v54 = vsel %vm1024_vm3, %v6247_v13, %v5437_v38 }
 0x497   : > { %4039 = vst.msk [vmem:[%s9827_s19 + $0x1c8] sm:$0xff] %vm1057_vm4, %v4007_v44  ;;  %v5569_v52 = vadd.f32 %v9814_v35, %v5530_v54 }
 0x499   : > { %v5601_v26 = vmax.f32 %v5569_v52, 0.0  ;;  %v5433_v32 = vpop.permute.xlu1 %5432  ;;  %v5439_v42 = vpop.permute.xlu0 %5438 }
 0x49a   : > { %v5528_v5 = vsel %vm1024_vm3, %v4759_v14, %v5433_v32  ;;  %v5531_v17 = vsel %vm1024_vm3, %v6248_v40, %v5439_v42 }
 0x49b   : > { %5975 = vst.msk [vmem:[%s9827_s19 + $0x30] sm:$0xff] %vm1057_vm4, %v5601_v26  ;;  %v5567_v46 = vadd.f32 %v9814_v35, %v5528_v5  ;;  %v5570_v41 = vadd.f32 %v9814_v35, %v5531_v17 }
 0x49c   : > { %v6251_v4 = vpop.f32.mrf.mxu0 }
 0x49d   : > { %v5599_v9 = vmax.f32 %v5567_v46, 0.0  ;;  %v5602_v51 = vmax.f32 %v5570_v41, 0.0  ;;  %v5435_v28 = vpop.permute.xlu0 %5434 }
 0x49e   : > { %v5529_v45 = vsel %vm1024_vm3, %v4762_v11, %v5435_v28  ;;  %v4775_v30 = vpop.f32.mrf.mxu0 }
 0x49f   : > { %5973 = vst.msk [vmem:[%s9827_s19 + $0x10] sm:$0xff] %vm1057_vm4, %v5599_v9  ;;  %5976 = vst.msk [vmem:[%s9827_s19 + $0x38] sm:$0xff] %vm1057_vm4, %v5602_v51  ;;  %v5568_v20 = vadd.f32 %v9814_v35, %v5529_v45 }
 0x4a0   : > { %v6252_v61 = vpop.f32.mrf.mxu0 }
 0x4a1   : > { %v5600_v3 = vmax.f32 %v5568_v20, 0.0  ;;  %v5445_v18 = vpop.permute.xlu1 %5444 }
 0x4a2   : > { %v5534_v1 = vsel %vm1024_vm3, %v6251_v4, %v5445_v18  ;;  %v4778_v43 = vpop.f32.mrf.mxu0 }
 0x4a3   : > { %5974 = vst.msk [vmem:[%s9827_s19 + $0x18] sm:$0xff] %vm1057_vm4, %v5600_v3  ;;  %v5573_v27 = vadd.f32 %v9814_v35, %v5534_v1 }
 0x4a5   : > { %v5605_v53 = vmax.f32 %v5573_v27, 0.0  ;;  %v5441_v49 = vpop.permute.xlu1 %5440  ;;  %v5447_v8 = vpop.permute.xlu0 %5446 }
 0x4a6   : > { %v5532_v0 = vsel %vm1024_vm3, %v4775_v30, %v5441_v49  ;;  %v5535_v12 = vsel %vm1024_vm3, %v6252_v61, %v5447_v8 }
 0x4a7   : > { %5979 = vst.msk [vmem:[%s9827_s19 + $0x70] sm:$0xff] %vm1057_vm4, %v5605_v53  ;;  %v5571_v36 = vadd.f32 %v9814_v35, %v5532_v0  ;;  %v5574_v47 = vadd.f32 %v9814_v35, %v5535_v12 }
 0x4a9   : > { %v5603_v22 = vmax.f32 %v5571_v36, 0.0  ;;  %v5606_v37 = vmax.f32 %v5574_v47, 0.0  ;;  %v5443_v25 = vpop.permute.xlu0 %5442 }
 0x4aa   : > { %v5533_v16 = vsel %vm1024_vm3, %v4778_v43, %v5443_v25 }
 0x4ab   : > { %5977 = vst.msk [vmem:[%s9827_s19 + $0x50] sm:$0xff] %vm1057_vm4, %v5603_v22  ;;  %5980 = vst.msk [vmem:[%s9827_s19 + $0x78] sm:$0xff] %vm1057_vm4, %v5606_v37  ;;  %v5572_v48 = vadd.f32 %v9814_v35, %v5533_v16 }
 0x4ac   : > { %v6255_v50 = vpop.f32.mrf.mxu0 }
 0x4ad   : > { %v5604_v58 = vmax.f32 %v5572_v48, 0.0  ;;  %v5453_v55 = vpop.permute.xlu1 %5452 }
 0x4ae   : > { %v5538_v60 = vsel %vm1024_vm3, %v6255_v50, %v5453_v55  ;;  %v4791_v2 = vpop.f32.mrf.mxu0 }
 0x4af   : > { %5978 = vst.msk [vmem:[%s9827_s19 + $0x58] sm:$0xff] %vm1057_vm4, %v5604_v58  ;;  %v5577_v19 = vadd.f32 %v9814_v35, %v5538_v60 }
 0x4b0   : > { %v6256_v29 = vpop.f32.mrf.mxu0 }
 0x4b1   : > { %v5609_v62 = vmax.f32 %v5577_v19, 0.0  ;;  %v5449_v21 = vpop.permute.xlu1 %5448  ;;  %v5455_v6 = vpop.permute.xlu0 %5454 }
 0x4b2   : > { %v5536_v23 = vsel %vm1024_vm3, %v4791_v2, %v5449_v21  ;;  %v5539_v63 = vsel %vm1024_vm3, %v6256_v29, %v5455_v6  ;;  %v4794_v59 = vpop.f32.mrf.mxu0 }
 0x4b3   : > { %5983 = vst.msk [vmem:[%s9827_s19 + $0xb0] sm:$0xff] %vm1057_vm4, %v5609_v62  ;;  %v5575_v13 = vadd.f32 %v9814_v35, %v5536_v23  ;;  %v5578_v7 = vadd.f32 %v9814_v35, %v5539_v63 }
 0x4b5   : > { %v5607_v34 = vmax.f32 %v5575_v13, 0.0  ;;  %v5610_v39 = vmax.f32 %v5578_v7, 0.0  ;;  %v5451_v57 = vpop.permute.xlu0 %5450 }
 0x4b6   : > { %v5537_v24 = vsel %vm1024_vm3, %v4794_v59, %v5451_v57 }
 0x4b7   : > { %5981 = vst.msk [vmem:[%s9827_s19 + $0x90] sm:$0xff] %vm1057_vm4, %v5607_v34  ;;  %5984 = vst.msk [vmem:[%s9827_s19 + $0xb8] sm:$0xff] %vm1057_vm4, %v5610_v39  ;;  %v5576_v31 = vadd.f32 %v9814_v35, %v5537_v24 }
 0x4b9   : > { %v5608_v33 = vmax.f32 %v5576_v31, 0.0  ;;  %v5461_v10 = vpop.permute.xlu1 %5460 }
 0x4bb   : > { %5982 = vst.msk [vmem:[%s9827_s19 + $0x98] sm:$0xff] %vm1057_vm4, %v5608_v33 }
 0x4bc   : > { %v6259_v14 = vpop.f32.mrf.mxu0 }
 0x4bd   : > { %v5542_v56 = vsel %vm1024_vm3, %v6259_v14, %v5461_v10  ;;  %v5457_v15 = vpop.permute.xlu1 %5456  ;;  %v5463_v44 = vpop.permute.xlu0 %5462 }
 0x4be   : > { %v5581_v38 = vadd.f32 %v9814_v35, %v5542_v56  ;;  %v4807_v40 = vpop.f32.mrf.mxu0 }
 0x4bf   : > { %v5540_v54 = vsel %vm1024_vm3, %v4807_v40, %v5457_v15 }
 0x4c0   : > { %v5613_v52 = vmax.f32 %v5581_v38, 0.0  ;;  %v5579_v26 = vadd.f32 %v9814_v35, %v5540_v54  ;;  %v6260_v32 = vpop.f32.mrf.mxu0 }
 0x4c1   : > { %v5543_v42 = vsel %vm1024_vm3, %v6260_v32, %v5463_v44  ;;  %v5459_v11 = vpop.permute.xlu0 %5458 }
 0x4c2   : > { %5987 = vst.msk [vmem:[%s9827_s19 + $0xf0] sm:$0xff] %vm1057_vm4, %v5613_v52  ;;  %v5611_v5 = vmax.f32 %v5579_v26, 0.0  ;;  %v5582_v17 = vadd.f32 %v9814_v35, %v5543_v42  ;;  %v4810_v46 = vpop.f32.mrf.mxu0 }
 0x4c3   : > { %v5541_v41 = vsel %vm1024_vm3, %v4810_v46, %v5459_v11 }
 0x4c4   : > { %5985 = vst.msk [vmem:[%s9827_s19 + $0xd0] sm:$0xff] %vm1057_vm4, %v5611_v5  ;;  %v5614_v4 = vmax.f32 %v5582_v17, 0.0  ;;  %v5580_v9 = vadd.f32 %v9814_v35, %v5541_v41 }
 0x4c5   : > { %v5469_v28 = vpop.permute.xlu1 %5468 }
 0x4c6   : > { %5988 = vst.msk [vmem:[%s9827_s19 + $0xf8] sm:$0xff] %vm1057_vm4, %v5614_v4  ;;  %v5612_v51 = vmax.f32 %v5580_v9, 0.0 }
 0x4c8   : > { %5986 = vst.msk [vmem:[%s9827_s19 + $0xd8] sm:$0xff] %vm1057_vm4, %v5612_v51 }
 0x4c9   : > { %v5471_v45 = vpop.permute.xlu0 %5470  ;;  %v5465_v3 = vpop.permute.xlu1 %5464 }
 0x4cc   : > { %v6263_v20 = vpop.f32.mrf.mxu0 }
 0x4cd   : > { %v5546_v30 = vsel %vm1024_vm3, %v6263_v20, %v5469_v28  ;;  %v5467_v0 = vpop.permute.xlu0 %5466 }
 0x4ce   : > { %v5585_v18 = vadd.f32 %v9814_v35, %v5546_v30  ;;  %v4823_v1 = vpop.f32.mrf.mxu0 }
 0x4cf   : > { %v5544_v27 = vsel %vm1024_vm3, %v4823_v1, %v5465_v3 }
 0x4d0   : > { %v5617_v61 = vmax.f32 %v5585_v18, 0.0  ;;  %v5583_v53 = vadd.f32 %v9814_v35, %v5544_v27  ;;  %v6264_v49 = vpop.f32.mrf.mxu0 }
 0x4d1   : > { %v5547_v8 = vsel %vm1024_vm3, %v6264_v49, %v5471_v45  ;;  %v5477_v16 = vpop.permute.xlu1 %5476 }
 0x4d2   : > { %5991 = vst.msk [vmem:[%s9827_s19 + $0x130] sm:$0xff] %vm1057_vm4, %v5617_v61  ;;  %v5615_v12 = vmax.f32 %v5583_v53, 0.0  ;;  %v5586_v36 = vadd.f32 %v9814_v35, %v5547_v8  ;;  %v4826_v47 = vpop.f32.mrf.mxu0 }
 0x4d3   : > { %v5545_v43 = vsel %vm1024_vm3, %v4826_v47, %v5467_v0 }
 0x4d4   : > { %5989 = vst.msk [vmem:[%s9827_s19 + $0x110] sm:$0xff] %vm1057_vm4, %v5615_v12  ;;  %v5618_v22 = vmax.f32 %v5586_v36, 0.0  ;;  %v5584_v37 = vadd.f32 %v9814_v35, %v5545_v43 }
 0x4d5   : > { %v5479_v48 = vpop.permute.xlu0 %5478  ;;  %v5473_v55 = vpop.permute.xlu1 %5472 }
 0x4d6   : > { %5992 = vst.msk [vmem:[%s9827_s19 + $0x138] sm:$0xff] %vm1057_vm4, %v5618_v22  ;;  %v5616_v25 = vmax.f32 %v5584_v37, 0.0 }
 0x4d8   : > { %5990 = vst.msk [vmem:[%s9827_s19 + $0x118] sm:$0xff] %vm1057_vm4, %v5616_v25 }
 0x4d9   : > { %v5475_v23 = vpop.permute.xlu0 %5474 }
 0x4dc   : > { %v6267_v50 = vpop.f32.mrf.mxu0 }
 0x4dd   : > { %v5550_v58 = vsel %vm1024_vm3, %v6267_v50, %v5477_v16  ;;  %v5485_v24 = vpop.permute.xlu1 %5484 }
 0x4de   : > { %v5589_v60 = vadd.f32 %v9814_v35, %v5550_v58  ;;  %v4839_v2 = vpop.f32.mrf.mxu0 }
 0x4df   : > { %v5548_v19 = vsel %vm1024_vm3, %v4839_v2, %v5473_v55 }
 0x4e0   : > { %v5621_v29 = vmax.f32 %v5589_v60, 0.0  ;;  %v5587_v62 = vadd.f32 %v9814_v35, %v5548_v19  ;;  %v6268_v21 = vpop.f32.mrf.mxu0 }
 0x4e1   : > { %v5551_v6 = vsel %vm1024_vm3, %v6268_v21, %v5479_v48  ;;  %v5487_v31 = vpop.permute.xlu0 %5486  ;;  %v5481_v14 = vpop.permute.xlu1 %5480 }
 0x4e2   : > { %5995 = vst.msk [vmem:[%s9827_s19 + $0x170] sm:$0xff] %vm1057_vm4, %v5621_v29  ;;  %v5619_v63 = vmax.f32 %v5587_v62, 0.0  ;;  %v5590_v13 = vadd.f32 %v9814_v35, %v5551_v6  ;;  %v4842_v7 = vpop.f32.mrf.mxu0 }
 0x4e3   : > { %v5549_v34 = vsel %vm1024_vm3, %v4842_v7, %v5475_v23 }
 0x4e4   : > { %5993 = vst.msk [vmem:[%s9827_s19 + $0x150] sm:$0xff] %vm1057_vm4, %v5619_v63  ;;  %v5622_v39 = vmax.f32 %v5590_v13, 0.0  ;;  %v5588_v59 = vadd.f32 %v9814_v35, %v5549_v34 }
 0x4e5   : > { %v5483_v26 = vpop.permute.xlu0 %5482 }
 0x4e6   : > { %5996 = vst.msk [vmem:[%s9827_s19 + $0x178] sm:$0xff] %vm1057_vm4, %v5622_v39  ;;  %v5620_v57 = vmax.f32 %v5588_v59, 0.0 }
 0x4e8   : > { %5994 = vst.msk [vmem:[%s9827_s19 + $0x158] sm:$0xff] %vm1057_vm4, %v5620_v57 }
 0x4ec   : > { %v6271_v33 = vpop.f32.mrf.mxu0 }
 0x4ed   : > { %v5554_v10 = vsel %vm1024_vm3, %v6271_v33, %v5485_v24 }
 0x4ee   : > { %v5593_v56 = vadd.f32 %v9814_v35, %v5554_v10  ;;  %v4855_v15 = vpop.f32.mrf.mxu0 }
 0x4ef   : > { %v5552_v44 = vsel %vm1024_vm3, %v4855_v15, %v5481_v14 }
 0x4f0   : > { %v5625_v38 = vmax.f32 %v5593_v56, 0.0  ;;  %v5591_v40 = vadd.f32 %v9814_v35, %v5552_v44  ;;  %v6272_v54 = vpop.f32.mrf.mxu0 }
 0x4f1   : > { %v5555_v52 = vsel %vm1024_vm3, %v6272_v54, %v5487_v31 }
 0x4f2   : > { %5999 = vst.msk [vmem:[%s9827_s19 + $0x1b0] sm:$0xff] %vm1057_vm4, %v5625_v38  ;;  %v5623_v32 = vmax.f32 %v5591_v40, 0.0  ;;  %v5594_v42 = vadd.f32 %v9814_v35, %v5555_v52  ;;  %v4858_v11 = vpop.f32.mrf.mxu0 }
 0x4f3   : > { %v5553_v5 = vsel %vm1024_vm3, %v4858_v11, %v5483_v26 }
 0x4f4   : > { %5997 = vst.msk [vmem:[%s9827_s19 + $0x190] sm:$0xff] %vm1057_vm4, %v5623_v32  ;;  %v5626_v17 = vmax.f32 %v5594_v42, 0.0  ;;  %v5592_v46 = vadd.f32 %v9814_v35, %v5553_v5 }
 0x4f6   : > { %6000 = vst.msk [vmem:[%s9827_s19 + $0x1b8] sm:$0xff] %vm1057_vm4, %v5626_v17  ;;  %v5624_v41 = vmax.f32 %v5592_v46, 0.0 }
 0x4f8   : > { %5998 = vst.msk [vmem:[%s9827_s19 + $0x198] sm:$0xff] %vm1057_vm4, %v5624_v41 }
 0x4fd   : > { %v6275_v4 = vpop.f32.mrf.mxu0 }
 0x4ff   : > { %v5489_v9 = vpop.permute.xlu1 %5488  ;;  %v4871_v51 = vpop.f32.mrf.mxu0 }
 0x500   : > { %v5556_v28 = vsel %vm1024_vm3, %v4871_v51, %v5489_v9 }
 0x501   : > { %v5595_v45 = vadd.f32 %v9814_v35, %v5556_v28  ;;  %v6276_v20 = vpop.f32.mrf.mxu0 }
 0x503   : > { %v5627_v30 = vmax.f32 %v5595_v45, 0.0  ;;  %v5493_v3 = vpop.permute.xlu1 %5492  ;;  %v4874_v18 = vpop.f32.mrf.mxu0 }
 0x504   : > { %v5558_v1 = vsel %vm1024_vm3, %v6275_v4, %v5493_v3  ;;  %v5491_v27 = vpop.permute.xlu0 %5490 }
 0x505   : > { %6001 = vst.msk [vmem:[%s9827_s19 + $0x1d0] sm:$0xff] %vm1057_vm4, %v5627_v30  ;;  %v5597_v61 = vadd.f32 %v9814_v35, %v5558_v1  ;;  %v5557_v53 = vsel %vm1024_vm3, %v4874_v18, %v5491_v27 }
 0x506   : > { %v5596_v49 = vadd.f32 %v9814_v35, %v5557_v53 }
 0x507   : > { %v5629_v8 = vmax.f32 %v5597_v61, 0.0 }
 0x508   : > { %v5628_v0 = vmax.f32 %v5596_v49, 0.0  ;;  %v5495_v12 = vpop.permute.xlu0 %5494 }
 0x509   : > { %6003 = vst.msk [vmem:[%s9827_s19 + $0x1f0] sm:$0xff] %vm1057_vm4, %v5629_v8  ;;  %v5559_v36 = vsel %vm1024_vm3, %v6276_v20, %v5495_v12 }
 0x50a   : > { %6002 = vst.msk [vmem:[%s9827_s19 + $0x1d8] sm:$0xff] %vm1057_vm4, %v5628_v0  ;;  %v5598_v47 = vadd.f32 %v9814_v35, %v5559_v36 }
 0x50c   : > { %v5630_v43 = vmax.f32 %v5598_v47, 0.0 }
 0x50e   : > { %6004 = vst.msk [vmem:[%s9827_s19 + $0x1f8] sm:$0xff] %vm1057_vm4, %v5630_v43 }
 0x50f PF: > { %s15_s18 = sadd.s32 1, %s6485_s18  }
 0x510   : > { %p12_p4 = scmp.ge.s32.totalorder %s15_s18, 4  }
 0x512   :  { %14 = sbr.rel (!%p12_p4) target bundleno = 1 (0x1), region = 76 }

</bundles_post_ra>
